<compile_context>
chip_gen: v7x
topology: tpu7x:2x2x1
jax: 0.10.0
libtpu: 0.0.40
codegen_flags: <defaults>
</compile_context>

<pallas_src>
import functools
import math

import numpy as np
import jax
import jax.numpy as jnp
from jax.experimental import pallas as pl
from jax.experimental.pallas import tpu as pltpu

NUM_LEGENDRE_POLYS = 10
LANE = 128
SUB_ROWS = 16          # sub-tile rows processed per inner-loop iteration (2 vregs)
MAX_BLOCK_ROWS = 64    # sublane rows per grid step (<= 8192 points per step)


def _cdiv(a: int, b: int) -> int:
    return -(-a // b)


def _round_up(a: int, b: int) -> int:
    return _cdiv(a, b) * b


def _norm_const(l: int, m: int) -> float:
    # K(l, m) = sqrt((2l+1)/(4*pi) * (l-m)!/(l+m)!)
    return math.sqrt(
        (2 * l + 1) / (4.0 * math.pi) * math.factorial(l - m) / math.factorial(l + m)
    )


def _sh_kernel(lonlat_ref, out_ref, *, L: int, sub_rows: int, num_sub: int):
    """Compute L**2 real spherical harmonics for a (block_rows, 128) tile of points.

    lonlat_ref : (2, block_rows, 128)   row 0 = lon (deg), row 1 = lat (deg)
    out_ref    : (L*L, block_rows, 128) feature-major, lane-dense stores
    """
    deg2rad = math.pi / 180.0
    sqrt2 = math.sqrt(2.0)
    out_dtype = out_ref.dtype

    def compute_sub_tile(g):
        # Small (sub_rows, 128) working set -> no vreg spills at large blocks.
        r0 = pl.multiple_of(g * sub_rows, sub_rows)
        rsl = pl.ds(r0, sub_rows)

        phi = lonlat_ref[0, rsl, :] * deg2rad    # azimuth (from longitude)
        theta = lonlat_ref[1, rsl, :] * deg2rad  # latitude passed as "theta"

        ct = jnp.cos(theta)
        st = jnp.sin(theta)
        cphi = jnp.cos(phi)
        sphi = jnp.sin(phi)

        def emit(l, m, p_lm, cm, sm):
            base = l * l + l
            k = _norm_const(l, m)
            if m == 0:
                out_ref[base, rsl, :] = (k * p_lm).astype(out_dtype)
            else:
                q = (sqrt2 * k) * p_lm           # shared between +m / -m stores
                out_ref[base + m, rsl, :] = (q * cm).astype(out_dtype)
                out_ref[base - m, rsl, :] = (q * sm).astype(out_dtype)

        # m-major evaluation with a rolling window over l: only pmm, p_prev,
        # p_prev2, cm, sm, ct, st, cphi, sphi live at any time.
        pmm = jnp.ones_like(ct)   # P_{m,m}, starts at P_{0,0} = 1
        cm = jnp.ones_like(ct)    # cos(m*phi), m = 0
        sm = jnp.zeros_like(ct)   # sin(m*phi), m = 0

        for m in range(L):
            p_prev2 = pmm                                # P_{m,m}
            emit(m, m, p_prev2, cm, sm)
            if m + 1 < L:
                p_prev = float(2 * m + 1) * ct * pmm     # P_{m+1,m}
                emit(m + 1, m, p_prev, cm, sm)
                for l in range(m + 2, L):
                    a_l = float(2 * l - 1) / float(l - m)
                    b_l = float(l + m - 1) / float(l - m)
                    p_curr = a_l * ct * p_prev - b_l * p_prev2
                    emit(l, m, p_curr, cm, sm)
                    p_prev2, p_prev = p_prev, p_curr
                # Advance to m+1 via recurrences (no extra transcendentals).
                pmm = float(2 * m + 1) * st * pmm        # P_{m+1,m+1}
                cm, sm = cm * cphi - sm * sphi, sm * cphi + cm * sphi

    @pl.loop(0, num_sub)
    def _(g):
        compute_sub_tile(g)


def spherical_harmonics_embedding(
    x: jax.Array,
    num_legendre_polys: int = NUM_LEGENDRE_POLYS,
    lonlat_dims=(-1, -2),
) -> jax.Array:
    # TODO(synk): x.shape[-1] > 2 branch (x_other stack/cat) has no clean semantics
    # (stack along dim 0 then cat along -1 in the reference) and is not implemented.
    assert x.shape[-1] == 2, "only the lon/lat-only (last dim == 2) path is supported"

    L = int(num_legendre_polys)
    embed_dim = L * L

    lon = x[..., lonlat_dims[0]].astype(jnp.float32)
    lat = x[..., lonlat_dims[1]].astype(jnp.float32)
    batch_shape = lon.shape
    n = int(np.prod(batch_shape)) if batch_shape else 1

    # Adaptive block size: as large as MAX_BLOCK_ROWS, but shrink for small n so
    # the grid has >= 2 steps when possible (feeds both TensorCores on v7x).
    rows_needed = max(1, _cdiv(n, LANE))
    block_rows = min(MAX_BLOCK_ROWS, _round_up(_cdiv(rows_needed, 2), SUB_ROWS))
    block_rows = max(block_rows, SUB_ROWS)
    num_blocks = _cdiv(rows_needed, block_rows)
    rows_total = num_blocks * block_rows
    n_pad = rows_total * LANE
    num_sub = block_rows // SUB_ROWS

    # One packed input: row 0 = lon, row 1 = lat, points dense on (sublane, lane).
    lonlat = jnp.stack([lon.reshape(-1), lat.reshape(-1)], axis=0)
    lonlat = jnp.pad(lonlat, ((0, 0), (0, n_pad - n)))
    lonlat = lonlat.reshape(2, rows_total, LANE)

    out = pl.pallas_call(
        functools.partial(_sh_kernel, L=L, sub_rows=SUB_ROWS, num_sub=num_sub),
        out_shape=jax.ShapeDtypeStruct(
            (num_blocks, embed_dim, block_rows, LANE), jnp.float32
        ),
        grid_spec=pltpu.PrefetchScalarGridSpec(
            num_scalar_prefetch=0,
            grid=(num_blocks,),
            in_specs=[
                pl.BlockSpec((2, block_rows, LANE), lambda i: (0, i, 0)),
            ],
            # Leading block dim of the output indexes the grid step -> each
            # step writes ONE contiguous slab of embed_dim*block_rows*128 floats.
            out_specs=pl.BlockSpec(
                (None, embed_dim, block_rows, LANE), lambda i: (i, 0, 0, 0)
            ),
        ),
        compiler_params=pltpu.CompilerParams(dimension_semantics=("parallel",)),
    )(lonlat)

    # Back to the module's point-major layout: (..., embed_dim).
    # TODO(synk): this transpose is the remaining HBM-traffic lever (see header).
    out = out.transpose(0, 2, 3, 1).reshape(n_pad, embed_dim)
    out = out[:n].reshape(*batch_shape, embed_dim)
    return out


def _reference_sh(lon_deg, lat_deg, L):
    """Pure-numpy float64 reference with identical conventions."""
    phi = np.deg2rad(np.asarray(lon_deg, dtype=np.float64))
    theta = np.deg2rad(np.asarray(lat_deg, dtype=np.float64))
    ct, st = np.cos(theta), np.sin(theta)
    out = np.zeros(phi.shape + (L * L,), dtype=np.float64)
    for m in range(L):
        pmm = np.ones_like(ct)
        for k in range(1, m + 1):
            pmm = (2 * k - 1) * st * pmm
        vals = {m: pmm}
        if m + 1 < L:
            p_prev2, p_prev = pmm, (2 * m + 1) * ct * pmm
            vals[m + 1] = p_prev
            for l in range(m + 2, L):
                p_curr = ((2 * l - 1) * ct * p_prev - (l + m - 1) * p_prev2) / (l - m)
                vals[l] = p_curr
                p_prev2, p_prev = p_prev, p_curr
        cm, sm = np.cos(m * phi), np.sin(m * phi)
        for l, p in vals.items():
            k_norm = _norm_const(l, m)
            base = l * l + l
            if m == 0:
                out[..., base] = k_norm * p
            else:
                out[..., base + m] = math.sqrt(2.0) * k_norm * cm * p
                out[..., base - m] = math.sqrt(2.0) * k_norm * sm * p
    return out


if __name__ == "__main__":
    key = jax.random.PRNGKey(0)

    # --- small shape matching the module's typical usage -------------------
    k_lon, k_lat = jax.random.split(key)
    batch, seq = 2, 8
    lon = jax.random.uniform(k_lon, (batch, seq), minval=-180.0, maxval=180.0)
    lat = jax.random.uniform(k_lat, (batch, seq), minval=-90.0, maxval=90.0)
    # x[..., -2] = lat, x[..., -1] = lon  (matches lonlat_dims=(-1, -2))
    x = jnp.stack([lat, lon], axis=-1).astype(jnp.float32)

    out = jax.block_until_ready(spherical_harmonics_embedding(x))
    assert out.shape == (batch, seq, NUM_LEGENDRE_POLYS ** 2), out.shape

    ref = _reference_sh(np.asarray(lon), np.asarray(lat), NUM_LEGENDRE_POLYS)
    np.testing.assert_allclose(np.asarray(out), ref, rtol=1e-3, atol=2e-5)

    # --- larger shape: exercises multi-block grid + inner sub-tile loop -----
    k_lon2, k_lat2 = jax.random.split(jax.random.PRNGKey(0), 2)
    batch2, seq2 = 4, 2048
    lon2 = jax.random.uniform(k_lon2, (batch2, seq2), minval=-180.0, maxval=180.0)
    lat2 = jax.random.uniform(k_lat2, (batch2, seq2), minval=-90.0, maxval=90.0)
    x2 = jnp.stack([lat2, lon2], axis=-1).astype(jnp.float32)

    out2 = jax.block_until_ready(spherical_harmonics_embedding(x2))
    assert out2.shape == (batch2, seq2, NUM_LEGENDRE_POLYS ** 2), out2.shape
    ref2 = _reference_sh(np.asarray(lon2), np.asarray(lat2), NUM_LEGENDRE_POLYS)
    np.testing.assert_allclose(np.asarray(out2), ref2, rtol=1e-3, atol=2e-5)

    print("KERNEL_OK")
</pallas_src>

<mosaic_0001>
module attributes {stable_mosaic.version = 11 : i64} {
  func.func @_sh_kernel(%arg0: i32, %arg1: memref<2x16x128xf32, #tpu.memory_space<vmem>>, %arg2: memref<1x100x16x128xf32, #tpu.memory_space<vmem>>) attributes {dimension_semantics = [#tpu.dimension_semantics<parallel>], iteration_bounds = array<i64: 1>, scalar_prefetch = 0 : i64, scratch_operands = 0 : i64, tpu.core_type = #tpu.core_type<tc>, window_params = [{transform_indices = @transform_0, window_bounds = array<i64: 2, 16, 128>}, {transform_indices = @transform_1, window_bounds = array<i64: 1, 100, 16, 128>}]} {
    %c0_i32 = arith.constant 0 : i32
    %c1_i32 = arith.constant 1 : i32
    %0 = arith.muli %c0_i32, %c1_i32 : i32
    %c0_i32_0 = arith.constant 0 : i32
    %1 = arith.addi %c0_i32_0, %0 : i32
    %c16_i32 = arith.constant 16 : i32
    %2 = arith.muli %1, %c16_i32 : i32
    %3 = tpu.assume_multiple %2, 16 : i32
    %c0 = arith.constant 0 : index
    %4 = arith.index_cast %3 : i32 to index
    %c0_1 = arith.constant 0 : index
    %5 = vector.load %arg1[%c0, %4, %c0_1] : memref<2x16x128xf32, #tpu.memory_space<vmem>>, vector<1x16x128xf32>
    %6 = vector.shape_cast %5 : vector<1x16x128xf32> to vector<16x128xf32>
    %cst = arith.constant 0.0174532924 : f32
    %7 = vector.broadcast %cst : f32 to vector<16x128xf32>
    %8 = arith.mulf %6, %7 : vector<16x128xf32>
    %c1 = arith.constant 1 : index
    %9 = arith.index_cast %3 : i32 to index
    %c0_2 = arith.constant 0 : index
    %10 = vector.load %arg1[%c1, %9, %c0_2] : memref<2x16x128xf32, #tpu.memory_space<vmem>>, vector<1x16x128xf32>
    %11 = vector.shape_cast %10 : vector<1x16x128xf32> to vector<16x128xf32>
    %cst_3 = arith.constant 0.0174532924 : f32
    %12 = vector.broadcast %cst_3 : f32 to vector<16x128xf32>
    %13 = arith.mulf %11, %12 : vector<16x128xf32>
    %14 = math.cos %13 : vector<16x128xf32>
    %15 = math.sin %13 : vector<16x128xf32>
    %16 = math.cos %8 : vector<16x128xf32>
    %17 = math.sin %8 : vector<16x128xf32>
    %cst_4 = arith.constant 1.000000e+00 : f32
    %18 = vector.broadcast %cst_4 : f32 to vector<16x128xf32>
    %cst_5 = arith.constant 1.000000e+00 : f32
    %19 = vector.broadcast %cst_5 : f32 to vector<16x128xf32>
    %cst_6 = arith.constant 0.000000e+00 : f32
    %20 = vector.broadcast %cst_6 : f32 to vector<16x128xf32>
    %cst_7 = arith.constant 0.282094806 : f32
    %21 = vector.broadcast %cst_7 : f32 to vector<16x128xf32>
    %22 = arith.mulf %21, %18 : vector<16x128xf32>
    %c0_8 = arith.constant 0 : index
    %c0_9 = arith.constant 0 : index
    %23 = arith.index_cast %3 : i32 to index
    %c0_10 = arith.constant 0 : index
    %24 = vector.load %arg2[%c0_8, %c0_9, %23, %c0_10] : memref<1x100x16x128xf32, #tpu.memory_space<vmem>>, vector<1x1x16x128xf32>
    %25 = vector.shape_cast %24 : vector<1x1x16x128xf32> to vector<16x128xf32>
    %26 = vector.shape_cast %22 : vector<16x128xf32> to vector<1x1x16x128xf32>
    tpu.vector_store %arg2[%c0_8, %c0_9, %23, %c0_10], %26 {strides = array<i32>} : memref<1x100x16x128xf32, #tpu.memory_space<vmem>>, vector<1x1x16x128xf32>,
    %cst_11 = arith.constant 1.000000e+00 : f32
    %27 = vector.broadcast %cst_11 : f32 to vector<16x128xf32>
    %28 = arith.mulf %27, %14 : vector<16x128xf32>
    %29 = arith.mulf %28, %18 : vector<16x128xf32>
    %cst_12 = arith.constant 0.488602519 : f32
    %30 = vector.broadcast %cst_12 : f32 to vector<16x128xf32>
    %31 = arith.mulf %30, %29 : vector<16x128xf32>
    %c0_13 = arith.constant 0 : index
    %c2 = arith.constant 2 : index
    %32 = arith.index_cast %3 : i32 to index
    %c0_14 = arith.constant 0 : index
    %33 = vector.load %arg2[%c0_13, %c2, %32, %c0_14] : memref<1x100x16x128xf32, #tpu.memory_space<vmem>>, vector<1x1x16x128xf32>
    %34 = vector.shape_cast %33 : vector<1x1x16x128xf32> to vector<16x128xf32>
    %35 = vector.shape_cast %31 : vector<16x128xf32> to vector<1x1x16x128xf32>
    tpu.vector_store %arg2[%c0_13, %c2, %32, %c0_14], %35 {strides = array<i32>} : memref<1x100x16x128xf32, #tpu.memory_space<vmem>>, vector<1x1x16x128xf32>,
    %cst_15 = arith.constant 1.500000e+00 : f32
    %36 = vector.broadcast %cst_15 : f32 to vector<16x128xf32>
    %37 = arith.mulf %36, %14 : vector<16x128xf32>
    %38 = arith.mulf %37, %29 : vector<16x128xf32>
    %cst_16 = arith.constant 5.000000e-01 : f32
    %39 = vector.broadcast %cst_16 : f32 to vector<16x128xf32>
    %40 = arith.mulf %39, %18 : vector<16x128xf32>
    %41 = arith.subf %38, %40 : vector<16x128xf32>
    %cst_17 = arith.constant 0.63078314 : f32
    %42 = vector.broadcast %cst_17 : f32 to vector<16x128xf32>
    %43 = arith.mulf %42, %41 : vector<16x128xf32>
    %c0_18 = arith.constant 0 : index
    %c6 = arith.constant 6 : index
    %44 = arith.index_cast %3 : i32 to index
    %c0_19 = arith.constant 0 : index
    %45 = vector.load %arg2[%c0_18, %c6, %44, %c0_19] : memref<1x100x16x128xf32, #tpu.memory_space<vmem>>, vector<1x1x16x128xf32>
    %46 = vector.shape_cast %45 : vector<1x1x16x128xf32> to vector<16x128xf32>
    %47 = vector.shape_cast %43 : vector<16x128xf32> to vector<1x1x16x128xf32>
    tpu.vector_store %arg2[%c0_18, %c6, %44, %c0_19], %47 {strides = array<i32>} : memref<1x100x16x128xf32, #tpu.memory_space<vmem>>, vector<1x1x16x128xf32>,
    %cst_20 = arith.constant 1.66666663 : f32
    %48 = vector.broadcast %cst_20 : f32 to vector<16x128xf32>
    %49 = arith.mulf %48, %14 : vector<16x128xf32>
    %50 = arith.mulf %49, %41 : vector<16x128xf32>
    %cst_21 = arith.constant 0.666666686 : f32
    %51 = vector.broadcast %cst_21 : f32 to vector<16x128xf32>
    %52 = arith.mulf %51, %29 : vector<16x128xf32>
    %53 = arith.subf %50, %52 : vector<16x128xf32>
    %cst_22 = arith.constant 0.746352672 : f32
    %54 = vector.broadcast %cst_22 : f32 to vector<16x128xf32>
    %55 = arith.mulf %54, %53 : vector<16x128xf32>
    %c0_23 = arith.constant 0 : index
    %c12 = arith.constant 12 : index
    %56 = arith.index_cast %3 : i32 to index
    %c0_24 = arith.constant 0 : index
    %57 = vector.load %arg2[%c0_23, %c12, %56, %c0_24] : memref<1x100x16x128xf32, #tpu.memory_space<vmem>>, vector<1x1x16x128xf32>
    %58 = vector.shape_cast %57 : vector<1x1x16x128xf32> to vector<16x128xf32>
    %59 = vector.shape_cast %55 : vector<16x128xf32> to vector<1x1x16x128xf32>
    tpu.vector_store %arg2[%c0_23, %c12, %56, %c0_24], %59 {strides = array<i32>} : memref<1x100x16x128xf32, #tpu.memory_space<vmem>>, vector<1x1x16x128xf32>,
    %cst_25 = arith.constant 1.750000e+00 : f32
    %60 = vector.broadcast %cst_25 : f32 to vector<16x128xf32>
    %61 = arith.mulf %60, %14 : vector<16x128xf32>
    %62 = arith.mulf %61, %53 : vector<16x128xf32>
    %cst_26 = arith.constant 7.500000e-01 : f32
    %63 = vector.broadcast %cst_26 : f32 to vector<16x128xf32>
    %64 = arith.mulf %63, %41 : vector<16x128xf32>
    %65 = arith.subf %62, %64 : vector<16x128xf32>
    %cst_27 = arith.constant 0.846284389 : f32
    %66 = vector.broadcast %cst_27 : f32 to vector<16x128xf32>
    %67 = arith.mulf %66, %65 : vector<16x128xf32>
    %c0_28 = arith.constant 0 : index
    %c20 = arith.constant 20 : index
    %68 = arith.index_cast %3 : i32 to index
    %c0_29 = arith.constant 0 : index
    %69 = vector.load %arg2[%c0_28, %c20, %68, %c0_29] : memref<1x100x16x128xf32, #tpu.memory_space<vmem>>, vector<1x1x16x128xf32>
    %70 = vector.shape_cast %69 : vector<1x1x16x128xf32> to vector<16x128xf32>
    %71 = vector.shape_cast %67 : vector<16x128xf32> to vector<1x1x16x128xf32>
    tpu.vector_store %arg2[%c0_28, %c20, %68, %c0_29], %71 {strides = array<i32>} : memref<1x100x16x128xf32, #tpu.memory_space<vmem>>, vector<1x1x16x128xf32>,
    %cst_30 = arith.constant 1.800000e+00 : f32
    %72 = vector.broadcast %cst_30 : f32 to vector<16x128xf32>
    %73 = arith.mulf %72, %14 : vector<16x128xf32>
    %74 = arith.mulf %73, %65 : vector<16x128xf32>
    %cst_31 = arith.constant 8.000000e-01 : f32
    %75 = vector.broadcast %cst_31 : f32 to vector<16x128xf32>
    %76 = arith.mulf %75, %53 : vector<16x128xf32>
    %77 = arith.subf %74, %76 : vector<16x128xf32>
    %cst_32 = arith.constant 0.935602605 : f32
    %78 = vector.broadcast %cst_32 : f32 to vector<16x128xf32>
    %79 = arith.mulf %78, %77 : vector<16x128xf32>
    %c0_33 = arith.constant 0 : index
    %c30 = arith.constant 30 : index
    %80 = arith.index_cast %3 : i32 to index
    %c0_34 = arith.constant 0 : index
    %81 = vector.load %arg2[%c0_33, %c30, %80, %c0_34] : memref<1x100x16x128xf32, #tpu.memory_space<vmem>>, vector<1x1x16x128xf32>
    %82 = vector.shape_cast %81 : vector<1x1x16x128xf32> to vector<16x128xf32>
    %83 = vector.shape_cast %79 : vector<16x128xf32> to vector<1x1x16x128xf32>
    tpu.vector_store %arg2[%c0_33, %c30, %80, %c0_34], %83 {strides = array<i32>} : memref<1x100x16x128xf32, #tpu.memory_space<vmem>>, vector<1x1x16x128xf32>,
    %cst_35 = arith.constant 1.83333337 : f32
    %84 = vector.broadcast %cst_35 : f32 to vector<16x128xf32>
    %85 = arith.mulf %84, %14 : vector<16x128xf32>
    %86 = arith.mulf %85, %77 : vector<16x128xf32>
    %cst_36 = arith.constant 0.833333313 : f32
    %87 = vector.broadcast %cst_36 : f32 to vector<16x128xf32>
    %88 = arith.mulf %87, %65 : vector<16x128xf32>
    %89 = arith.subf %86, %88 : vector<16x128xf32>
    %cst_37 = arith.constant 1.01710725 : f32
    %90 = vector.broadcast %cst_37 : f32 to vector<16x128xf32>
    %91 = arith.mulf %90, %89 : vector<16x128xf32>
    %c0_38 = arith.constant 0 : index
    %c42 = arith.constant 42 : index
    %92 = arith.index_cast %3 : i32 to index
    %c0_39 = arith.constant 0 : index
    %93 = vector.load %arg2[%c0_38, %c42, %92, %c0_39] : memref<1x100x16x128xf32, #tpu.memory_space<vmem>>, vector<1x1x16x128xf32>
    %94 = vector.shape_cast %93 : vector<1x1x16x128xf32> to vector<16x128xf32>
    %95 = vector.shape_cast %91 : vector<16x128xf32> to vector<1x1x16x128xf32>
    tpu.vector_store %arg2[%c0_38, %c42, %92, %c0_39], %95 {strides = array<i32>} : memref<1x100x16x128xf32, #tpu.memory_space<vmem>>, vector<1x1x16x128xf32>,
    %cst_40 = arith.constant 1.85714281 : f32
    %96 = vector.broadcast %cst_40 : f32 to vector<16x128xf32>
    %97 = arith.mulf %96, %14 : vector<16x128xf32>
    %98 = arith.mulf %97, %89 : vector<16x128xf32>
    %cst_41 = arith.constant 0.857142865 : f32
    %99 = vector.broadcast %cst_41 : f32 to vector<16x128xf32>
    %100 = arith.mulf %99, %77 : vector<16x128xf32>
    %101 = arith.subf %98, %100 : vector<16x128xf32>
    %cst_42 = arith.constant 1.09254849 : f32
    %102 = vector.broadcast %cst_42 : f32 to vector<16x128xf32>
    %103 = arith.mulf %102, %101 : vector<16x128xf32>
    %c0_43 = arith.constant 0 : index
    %c56 = arith.constant 56 : index
    %104 = arith.index_cast %3 : i32 to index
    %c0_44 = arith.constant 0 : index
    %105 = vector.load %arg2[%c0_43, %c56, %104, %c0_44] : memref<1x100x16x128xf32, #tpu.memory_space<vmem>>, vector<1x1x16x128xf32>
    %106 = vector.shape_cast %105 : vector<1x1x16x128xf32> to vector<16x128xf32>
    %107 = vector.shape_cast %103 : vector<16x128xf32> to vector<1x1x16x128xf32>
    tpu.vector_store %arg2[%c0_43, %c56, %104, %c0_44], %107 {strides = array<i32>} : memref<1x100x16x128xf32, #tpu.memory_space<vmem>>, vector<1x1x16x128xf32>,
    %cst_45 = arith.constant 1.875000e+00 : f32
    %108 = vector.broadcast %cst_45 : f32 to vector<16x128xf32>
    %109 = arith.mulf %108, %14 : vector<16x128xf32>
    %110 = arith.mulf %109, %101 : vector<16x128xf32>
    %cst_46 = arith.constant 8.750000e-01 : f32
    %111 = vector.broadcast %cst_46 : f32 to vector<16x128xf32>
    %112 = arith.mulf %111, %89 : vector<16x128xf32>
    %113 = arith.subf %110, %112 : vector<16x128xf32>
    %cst_47 = arith.constant 1.16310668 : f32
    %114 = vector.broadcast %cst_47 : f32 to vector<16x128xf32>
    %115 = arith.mulf %114, %113 : vector<16x128xf32>
    %c0_48 = arith.constant 0 : index
    %c72 = arith.constant 72 : index
    %116 = arith.index_cast %3 : i32 to index
    %c0_49 = arith.constant 0 : index
    %117 = vector.load %arg2[%c0_48, %c72, %116, %c0_49] : memref<1x100x16x128xf32, #tpu.memory_space<vmem>>, vector<1x1x16x128xf32>
    %118 = vector.shape_cast %117 : vector<1x1x16x128xf32> to vector<16x128xf32>
    %119 = vector.shape_cast %115 : vector<16x128xf32> to vector<1x1x16x128xf32>
    tpu.vector_store %arg2[%c0_48, %c72, %116, %c0_49], %119 {strides = array<i32>} : memref<1x100x16x128xf32, #tpu.memory_space<vmem>>, vector<1x1x16x128xf32>,
    %cst_50 = arith.constant 1.88888884 : f32
    %120 = vector.broadcast %cst_50 : f32 to vector<16x128xf32>
    %121 = arith.mulf %120, %14 : vector<16x128xf32>
    %122 = arith.mulf %121, %113 : vector<16x128xf32>
    %cst_51 = arith.constant 0.888888895 : f32
    %123 = vector.broadcast %cst_51 : f32 to vector<16x128xf32>
    %124 = arith.mulf %123, %101 : vector<16x128xf32>
    %125 = arith.subf %122, %124 : vector<16x128xf32>
    %cst_52 = arith.constant 1.22962272 : f32
    %126 = vector.broadcast %cst_52 : f32 to vector<16x128xf32>
    %127 = arith.mulf %126, %125 : vector<16x128xf32>
    %c0_53 = arith.constant 0 : index
    %c90 = arith.constant 90 : index
    %128 = arith.index_cast %3 : i32 to index
    %c0_54 = arith.constant 0 : index
    %129 = vector.load %arg2[%c0_53, %c90, %128, %c0_54] : memref<1x100x16x128xf32, #tpu.memory_space<vmem>>, vector<1x1x16x128xf32>
    %130 = vector.shape_cast %129 : vector<1x1x16x128xf32> to vector<16x128xf32>
    %131 = vector.shape_cast %127 : vector<16x128xf32> to vector<1x1x16x128xf32>
    tpu.vector_store %arg2[%c0_53, %c90, %128, %c0_54], %131 {strides = array<i32>} : memref<1x100x16x128xf32, #tpu.memory_space<vmem>>, vector<1x1x16x128xf32>,
    %cst_55 = arith.constant 1.000000e+00 : f32
    %132 = vector.broadcast %cst_55 : f32 to vector<16x128xf32>
    %133 = arith.mulf %132, %15 : vector<16x128xf32>
    %134 = arith.mulf %133, %18 : vector<16x128xf32>
    %135 = arith.mulf %19, %16 : vector<16x128xf32>
    %136 = arith.mulf %20, %17 : vector<16x128xf32>
    %137 = arith.subf %135, %136 : vector<16x128xf32>
    %138 = arith.mulf %20, %16 : vector<16x128xf32>
    %139 = arith.mulf %19, %17 : vector<16x128xf32>
    %140 = arith.addf %138, %139 : vector<16x128xf32>
    %cst_56 = arith.constant 0.488602519 : f32
    %141 = vector.broadcast %cst_56 : f32 to vector<16x128xf32>
    %142 = arith.mulf %141, %134 : vector<16x128xf32>
    %143 = arith.mulf %142, %137 : vector<16x128xf32>
    %c0_57 = arith.constant 0 : index
    %c3 = arith.constant 3 : index
    %144 = arith.index_cast %3 : i32 to index
    %c0_58 = arith.constant 0 : index
    %145 = vector.load %arg2[%c0_57, %c3, %144, %c0_58] : memref<1x100x16x128xf32, #tpu.memory_space<vmem>>, vector<1x1x16x128xf32>
    %146 = vector.shape_cast %145 : vector<1x1x16x128xf32> to vector<16x128xf32>
    %147 = vector.shape_cast %143 : vector<16x128xf32> to vector<1x1x16x128xf32>
    tpu.vector_store %arg2[%c0_57, %c3, %144, %c0_58], %147 {strides = array<i32>} : memref<1x100x16x128xf32, #tpu.memory_space<vmem>>, vector<1x1x16x128xf32>,
    %148 = arith.mulf %142, %140 : vector<16x128xf32>
    %c0_59 = arith.constant 0 : index
    %c1_60 = arith.constant 1 : index
    %149 = arith.index_cast %3 : i32 to index
    %c0_61 = arith.constant 0 : index
    %150 = vector.load %arg2[%c0_59, %c1_60, %149, %c0_61] : memref<1x100x16x128xf32, #tpu.memory_space<vmem>>, vector<1x1x16x128xf32>
    %151 = vector.shape_cast %150 : vector<1x1x16x128xf32> to vector<16x128xf32>
    %152 = vector.shape_cast %148 : vector<16x128xf32> to vector<1x1x16x128xf32>
    tpu.vector_store %arg2[%c0_59, %c1_60, %149, %c0_61], %152 {strides = array<i32>} : memref<1x100x16x128xf32, #tpu.memory_space<vmem>>, vector<1x1x16x128xf32>,
    %cst_62 = arith.constant 3.000000e+00 : f32
    %153 = vector.broadcast %cst_62 : f32 to vector<16x128xf32>
    %154 = arith.mulf %153, %14 : vector<16x128xf32>
    %155 = arith.mulf %154, %134 : vector<16x128xf32>
    %cst_63 = arith.constant 0.3641828 : f32
    %156 = vector.broadcast %cst_63 : f32 to vector<16x128xf32>
    %157 = arith.mulf %156, %155 : vector<16x128xf32>
    %158 = arith.mulf %157, %137 : vector<16x128xf32>
    %c0_64 = arith.constant 0 : index
    %c7 = arith.constant 7 : index
    %159 = arith.index_cast %3 : i32 to index
    %c0_65 = arith.constant 0 : index
    %160 = vector.load %arg2[%c0_64, %c7, %159, %c0_65] : memref<1x100x16x128xf32, #tpu.memory_space<vmem>>, vector<1x1x16x128xf32>
    %161 = vector.shape_cast %160 : vector<1x1x16x128xf32> to vector<16x128xf32>
    %162 = vector.shape_cast %158 : vector<16x128xf32> to vector<1x1x16x128xf32>
    tpu.vector_store %arg2[%c0_64, %c7, %159, %c0_65], %162 {strides = array<i32>} : memref<1x100x16x128xf32, #tpu.memory_space<vmem>>, vector<1x1x16x128xf32>,
    %163 = arith.mulf %157, %140 : vector<16x128xf32>
    %c0_66 = arith.constant 0 : index
    %c5 = arith.constant 5 : index
    %164 = arith.index_cast %3 : i32 to index
    %c0_67 = arith.constant 0 : index
    %165 = vector.load %arg2[%c0_66, %c5, %164, %c0_67] : memref<1x100x16x128xf32, #tpu.memory_space<vmem>>, vector<1x1x16x128xf32>
    %166 = vector.shape_cast %165 : vector<1x1x16x128xf32> to vector<16x128xf32>
    %167 = vector.shape_cast %163 : vector<16x128xf32> to vector<1x1x16x128xf32>
    tpu.vector_store %arg2[%c0_66, %c5, %164, %c0_67], %167 {strides = array<i32>} : memref<1x100x16x128xf32, #tpu.memory_space<vmem>>, vector<1x1x16x128xf32>,
    %cst_68 = arith.constant 2.500000e+00 : f32
    %168 = vector.broadcast %cst_68 : f32 to vector<16x128xf32>
    %169 = arith.mulf %168, %14 : vector<16x128xf32>
    %170 = arith.mulf %169, %155 : vector<16x128xf32>
    %cst_69 = arith.constant 1.500000e+00 : f32
    %171 = vector.broadcast %cst_69 : f32 to vector<16x128xf32>
    %172 = arith.mulf %171, %134 : vector<16x128xf32>
    %173 = arith.subf %170, %172 : vector<16x128xf32>
    %cst_70 = arith.constant 0.304697186 : f32
    %174 = vector.broadcast %cst_70 : f32 to vector<16x128xf32>
    %175 = arith.mulf %174, %173 : vector<16x128xf32>
    %176 = arith.mulf %175, %137 : vector<16x128xf32>
    %c0_71 = arith.constant 0 : index
    %c13 = arith.constant 13 : index
    %177 = arith.index_cast %3 : i32 to index
    %c0_72 = arith.constant 0 : index
    %178 = vector.load %arg2[%c0_71, %c13, %177, %c0_72] : memref<1x100x16x128xf32, #tpu.memory_space<vmem>>, vector<1x1x16x128xf32>
    %179 = vector.shape_cast %178 : vector<1x1x16x128xf32> to vector<16x128xf32>
    %180 = vector.shape_cast %176 : vector<16x128xf32> to vector<1x1x16x128xf32>
    tpu.vector_store %arg2[%c0_71, %c13, %177, %c0_72], %180 {strides = array<i32>} : memref<1x100x16x128xf32, #tpu.memory_space<vmem>>, vector<1x1x16x128xf32>,
    %181 = arith.mulf %175, %140 : vector<16x128xf32>
    %c0_73 = arith.constant 0 : index
    %c11 = arith.constant 11 : index
    %182 = arith.index_cast %3 : i32 to index
    %c0_74 = arith.constant 0 : index
    %183 = vector.load %arg2[%c0_73, %c11, %182, %c0_74] : memref<1x100x16x128xf32, #tpu.memory_space<vmem>>, vector<1x1x16x128xf32>
    %184 = vector.shape_cast %183 : vector<1x1x16x128xf32> to vector<16x128xf32>
    %185 = vector.shape_cast %181 : vector<16x128xf32> to vector<1x1x16x128xf32>
    tpu.vector_store %arg2[%c0_73, %c11, %182, %c0_74], %185 {strides = array<i32>} : memref<1x100x16x128xf32, #tpu.memory_space<vmem>>, vector<1x1x16x128xf32>,
    %cst_75 = arith.constant 2.33333325 : f32
    %186 = vector.broadcast %cst_75 : f32 to vector<16x128xf32>
    %187 = arith.mulf %186, %14 : vector<16x128xf32>
    %188 = arith.mulf %187, %173 : vector<16x128xf32>
    %cst_76 = arith.constant 1.33333337 : f32
    %189 = vector.broadcast %cst_76 : f32 to vector<16x128xf32>
    %190 = arith.mulf %189, %155 : vector<16x128xf32>
    %191 = arith.subf %188, %190 : vector<16x128xf32>
    %cst_77 = arith.constant 0.267618626 : f32
    %192 = vector.broadcast %cst_77 : f32 to vector<16x128xf32>
    %193 = arith.mulf %192, %191 : vector<16x128xf32>
    %194 = arith.mulf %193, %137 : vector<16x128xf32>
    %c0_78 = arith.constant 0 : index
    %c21 = arith.constant 21 : index
    %195 = arith.index_cast %3 : i32 to index
    %c0_79 = arith.constant 0 : index
    %196 = vector.load %arg2[%c0_78, %c21, %195, %c0_79] : memref<1x100x16x128xf32, #tpu.memory_space<vmem>>, vector<1x1x16x128xf32>
    %197 = vector.shape_cast %196 : vector<1x1x16x128xf32> to vector<16x128xf32>
    %198 = vector.shape_cast %194 : vector<16x128xf32> to vector<1x1x16x128xf32>
    tpu.vector_store %arg2[%c0_78, %c21, %195, %c0_79], %198 {strides = array<i32>} : memref<1x100x16x128xf32, #tpu.memory_space<vmem>>, vector<1x1x16x128xf32>,
    %199 = arith.mulf %193, %140 : vector<16x128xf32>
    %c0_80 = arith.constant 0 : index
    %c19 = arith.constant 19 : index
    %200 = arith.index_cast %3 : i32 to index
    %c0_81 = arith.constant 0 : index
    %201 = vector.load %arg2[%c0_80, %c19, %200, %c0_81] : memref<1x100x16x128xf32, #tpu.memory_space<vmem>>, vector<1x1x16x128xf32>
    %202 = vector.shape_cast %201 : vector<1x1x16x128xf32> to vector<16x128xf32>
    %203 = vector.shape_cast %199 : vector<16x128xf32> to vector<1x1x16x128xf32>
    tpu.vector_store %arg2[%c0_80, %c19, %200, %c0_81], %203 {strides = array<i32>} : memref<1x100x16x128xf32, #tpu.memory_space<vmem>>, vector<1x1x16x128xf32>,
    %cst_82 = arith.constant 2.250000e+00 : f32
    %204 = vector.broadcast %cst_82 : f32 to vector<16x128xf32>
    %205 = arith.mulf %204, %14 : vector<16x128xf32>
    %206 = arith.mulf %205, %191 : vector<16x128xf32>
    %cst_83 = arith.constant 1.250000e+00 : f32
    %207 = vector.broadcast %cst_83 : f32 to vector<16x128xf32>
    %208 = arith.mulf %207, %173 : vector<16x128xf32>
    %209 = arith.subf %206, %208 : vector<16x128xf32>
    %cst_84 = arith.constant 0.241571546 : f32
    %210 = vector.broadcast %cst_84 : f32 to vector<16x128xf32>
    %211 = arith.mulf %210, %209 : vector<16x128xf32>
    %212 = arith.mulf %211, %137 : vector<16x128xf32>
    %c0_85 = arith.constant 0 : index
    %c31 = arith.constant 31 : index
    %213 = arith.index_cast %3 : i32 to index
    %c0_86 = arith.constant 0 : index
    %214 = vector.load %arg2[%c0_85, %c31, %213, %c0_86] : memref<1x100x16x128xf32, #tpu.memory_space<vmem>>, vector<1x1x16x128xf32>
    %215 = vector.shape_cast %214 : vector<1x1x16x128xf32> to vector<16x128xf32>
    %216 = vector.shape_cast %212 : vector<16x128xf32> to vector<1x1x16x128xf32>
    tpu.vector_store %arg2[%c0_85, %c31, %213, %c0_86], %216 {strides = array<i32>} : memref<1x100x16x128xf32, #tpu.memory_space<vmem>>, vector<1x1x16x128xf32>,
    %217 = arith.mulf %211, %140 : vector<16x128xf32>
    %c0_87 = arith.constant 0 : index
    %c29 = arith.constant 29 : index
    %218 = arith.index_cast %3 : i32 to index
    %c0_88 = arith.constant 0 : index
    %219 = vector.load %arg2[%c0_87, %c29, %218, %c0_88] : memref<1x100x16x128xf32, #tpu.memory_space<vmem>>, vector<1x1x16x128xf32>
    %220 = vector.shape_cast %219 : vector<1x1x16x128xf32> to vector<16x128xf32>
    %221 = vector.shape_cast %217 : vector<16x128xf32> to vector<1x1x16x128xf32>
    tpu.vector_store %arg2[%c0_87, %c29, %218, %c0_88], %221 {strides = array<i32>} : memref<1x100x16x128xf32, #tpu.memory_space<vmem>>, vector<1x1x16x128xf32>,
    %cst_89 = arith.constant 2.200000e+00 : f32
    %222 = vector.broadcast %cst_89 : f32 to vector<16x128xf32>
    %223 = arith.mulf %222, %14 : vector<16x128xf32>
    %224 = arith.mulf %223, %209 : vector<16x128xf32>
    %cst_90 = arith.constant 1.200000e+00 : f32
    %225 = vector.broadcast %cst_90 : f32 to vector<16x128xf32>
    %226 = arith.mulf %225, %191 : vector<16x128xf32>
    %227 = arith.subf %224, %226 : vector<16x128xf32>
    %cst_91 = arith.constant 2.219510e-01 : f32
    %228 = vector.broadcast %cst_91 : f32 to vector<16x128xf32>
    %229 = arith.mulf %228, %227 : vector<16x128xf32>
    %230 = arith.mulf %229, %137 : vector<16x128xf32>
    %c0_92 = arith.constant 0 : index
    %c43 = arith.constant 43 : index
    %231 = arith.index_cast %3 : i32 to index
    %c0_93 = arith.constant 0 : index
    %232 = vector.load %arg2[%c0_92, %c43, %231, %c0_93] : memref<1x100x16x128xf32, #tpu.memory_space<vmem>>, vector<1x1x16x128xf32>
    %233 = vector.shape_cast %232 : vector<1x1x16x128xf32> to vector<16x128xf32>
    %234 = vector.shape_cast %230 : vector<16x128xf32> to vector<1x1x16x128xf32>
    tpu.vector_store %arg2[%c0_92, %c43, %231, %c0_93], %234 {strides = array<i32>} : memref<1x100x16x128xf32, #tpu.memory_space<vmem>>, vector<1x1x16x128xf32>,
    %235 = arith.mulf %229, %140 : vector<16x128xf32>
    %c0_94 = arith.constant 0 : index
    %c41 = arith.constant 41 : index
    %236 = arith.index_cast %3 : i32 to index
    %c0_95 = arith.constant 0 : index
    %237 = vector.load %arg2[%c0_94, %c41, %236, %c0_95] : memref<1x100x16x128xf32, #tpu.memory_space<vmem>>, vector<1x1x16x128xf32>
    %238 = vector.shape_cast %237 : vector<1x1x16x128xf32> to vector<16x128xf32>
    %239 = vector.shape_cast %235 : vector<16x128xf32> to vector<1x1x16x128xf32>
    tpu.vector_store %arg2[%c0_94, %c41, %236, %c0_95], %239 {strides = array<i32>} : memref<1x100x16x128xf32, #tpu.memory_space<vmem>>, vector<1x1x16x128xf32>,
    %cst_96 = arith.constant 2.16666675 : f32
    %240 = vector.broadcast %cst_96 : f32 to vector<16x128xf32>
    %241 = arith.mulf %240, %14 : vector<16x128xf32>
    %242 = arith.mulf %241, %227 : vector<16x128xf32>
    %cst_97 = arith.constant 1.16666663 : f32
    %243 = vector.broadcast %cst_97 : f32 to vector<16x128xf32>
    %244 = arith.mulf %243, %209 : vector<16x128xf32>
    %245 = arith.subf %242, %244 : vector<16x128xf32>
    %cst_98 = arith.constant 0.206472248 : f32
    %246 = vector.broadcast %cst_98 : f32 to vector<16x128xf32>
    %247 = arith.mulf %246, %245 : vector<16x128xf32>
    %248 = arith.mulf %247, %137 : vector<16x128xf32>
    %c0_99 = arith.constant 0 : index
    %c57 = arith.constant 57 : index
    %249 = arith.index_cast %3 : i32 to index
    %c0_100 = arith.constant 0 : index
    %250 = vector.load %arg2[%c0_99, %c57, %249, %c0_100] : memref<1x100x16x128xf32, #tpu.memory_space<vmem>>, vector<1x1x16x128xf32>
    %251 = vector.shape_cast %250 : vector<1x1x16x128xf32> to vector<16x128xf32>
    %252 = vector.shape_cast %248 : vector<16x128xf32> to vector<1x1x16x128xf32>
    tpu.vector_store %arg2[%c0_99, %c57, %249, %c0_100], %252 {strides = array<i32>} : memref<1x100x16x128xf32, #tpu.memory_space<vmem>>, vector<1x1x16x128xf32>,
    %253 = arith.mulf %247, %140 : vector<16x128xf32>
    %c0_101 = arith.constant 0 : index
    %c55 = arith.constant 55 : index
    %254 = arith.index_cast %3 : i32 to index
    %c0_102 = arith.constant 0 : index
    %255 = vector.load %arg2[%c0_101, %c55, %254, %c0_102] : memref<1x100x16x128xf32, #tpu.memory_space<vmem>>, vector<1x1x16x128xf32>
    %256 = vector.shape_cast %255 : vector<1x1x16x128xf32> to vector<16x128xf32>
    %257 = vector.shape_cast %253 : vector<16x128xf32> to vector<1x1x16x128xf32>
    tpu.vector_store %arg2[%c0_101, %c55, %254, %c0_102], %257 {strides = array<i32>} : memref<1x100x16x128xf32, #tpu.memory_space<vmem>>, vector<1x1x16x128xf32>,
    %cst_103 = arith.constant 2.14285707 : f32
    %258 = vector.broadcast %cst_103 : f32 to vector<16x128xf32>
    %259 = arith.mulf %258, %14 : vector<16x128xf32>
    %260 = arith.mulf %259, %245 : vector<16x128xf32>
    %cst_104 = arith.constant 1.14285719 : f32
    %261 = vector.broadcast %cst_104 : f32 to vector<16x128xf32>
    %262 = arith.mulf %261, %227 : vector<16x128xf32>
    %263 = arith.subf %260, %262 : vector<16x128xf32>
    %cst_105 = arith.constant 0.193851098 : f32
    %264 = vector.broadcast %cst_105 : f32 to vector<16x128xf32>
    %265 = arith.mulf %264, %263 : vector<16x128xf32>
    %266 = arith.mulf %265, %137 : vector<16x128xf32>
    %c0_106 = arith.constant 0 : index
    %c73 = arith.constant 73 : index
    %267 = arith.index_cast %3 : i32 to index
    %c0_107 = arith.constant 0 : index
    %268 = vector.load %arg2[%c0_106, %c73, %267, %c0_107] : memref<1x100x16x128xf32, #tpu.memory_space<vmem>>, vector<1x1x16x128xf32>
    %269 = vector.shape_cast %268 : vector<1x1x16x128xf32> to vector<16x128xf32>
    %270 = vector.shape_cast %266 : vector<16x128xf32> to vector<1x1x16x128xf32>
    tpu.vector_store %arg2[%c0_106, %c73, %267, %c0_107], %270 {strides = array<i32>} : memref<1x100x16x128xf32, #tpu.memory_space<vmem>>, vector<1x1x16x128xf32>,
    %271 = arith.mulf %265, %140 : vector<16x128xf32>
    %c0_108 = arith.constant 0 : index
    %c71 = arith.constant 71 : index
    %272 = arith.index_cast %3 : i32 to index
    %c0_109 = arith.constant 0 : index
    %273 = vector.load %arg2[%c0_108, %c71, %272, %c0_109] : memref<1x100x16x128xf32, #tpu.memory_space<vmem>>, vector<1x1x16x128xf32>
    %274 = vector.shape_cast %273 : vector<1x1x16x128xf32> to vector<16x128xf32>
    %275 = vector.shape_cast %271 : vector<16x128xf32> to vector<1x1x16x128xf32>
    tpu.vector_store %arg2[%c0_108, %c71, %272, %c0_109], %275 {strides = array<i32>} : memref<1x100x16x128xf32, #tpu.memory_space<vmem>>, vector<1x1x16x128xf32>,
    %cst_110 = arith.constant 2.125000e+00 : f32
    %276 = vector.broadcast %cst_110 : f32 to vector<16x128xf32>
    %277 = arith.mulf %276, %14 : vector<16x128xf32>
    %278 = arith.mulf %277, %263 : vector<16x128xf32>
    %cst_111 = arith.constant 1.125000e+00 : f32
    %279 = vector.broadcast %cst_111 : f32 to vector<16x128xf32>
    %280 = arith.mulf %279, %245 : vector<16x128xf32>
    %281 = arith.subf %278, %280 : vector<16x128xf32>
    %cst_112 = arith.constant 0.18330133 : f32
    %282 = vector.broadcast %cst_112 : f32 to vector<16x128xf32>
    %283 = arith.mulf %282, %281 : vector<16x128xf32>
    %284 = arith.mulf %283, %137 : vector<16x128xf32>
    %c0_113 = arith.constant 0 : index
    %c91 = arith.constant 91 : index
    %285 = arith.index_cast %3 : i32 to index
    %c0_114 = arith.constant 0 : index
    %286 = vector.load %arg2[%c0_113, %c91, %285, %c0_114] : memref<1x100x16x128xf32, #tpu.memory_space<vmem>>, vector<1x1x16x128xf32>
    %287 = vector.shape_cast %286 : vector<1x1x16x128xf32> to vector<16x128xf32>
    %288 = vector.shape_cast %284 : vector<16x128xf32> to vector<1x1x16x128xf32>
    tpu.vector_store %arg2[%c0_113, %c91, %285, %c0_114], %288 {strides = array<i32>} : memref<1x100x16x128xf32, #tpu.memory_space<vmem>>, vector<1x1x16x128xf32>,
    %289 = arith.mulf %283, %140 : vector<16x128xf32>
    %c0_115 = arith.constant 0 : index
    %c89 = arith.constant 89 : index
    %290 = arith.index_cast %3 : i32 to index
    %c0_116 = arith.constant 0 : index
    %291 = vector.load %arg2[%c0_115, %c89, %290, %c0_116] : memref<1x100x16x128xf32, #tpu.memory_space<vmem>>, vector<1x1x16x128xf32>
    %292 = vector.shape_cast %291 : vector<1x1x16x128xf32> to vector<16x128xf32>
    %293 = vector.shape_cast %289 : vector<16x128xf32> to vector<1x1x16x128xf32>
    tpu.vector_store %arg2[%c0_115, %c89, %290, %c0_116], %293 {strides = array<i32>} : memref<1x100x16x128xf32, #tpu.memory_space<vmem>>, vector<1x1x16x128xf32>,
    %cst_117 = arith.constant 3.000000e+00 : f32
    %294 = vector.broadcast %cst_117 : f32 to vector<16x128xf32>
    %295 = arith.mulf %294, %15 : vector<16x128xf32>
    %296 = arith.mulf %295, %134 : vector<16x128xf32>
    %297 = arith.mulf %137, %16 : vector<16x128xf32>
    %298 = arith.mulf %140, %17 : vector<16x128xf32>
    %299 = arith.subf %297, %298 : vector<16x128xf32>
    %300 = arith.mulf %140, %16 : vector<16x128xf32>
    %301 = arith.mulf %137, %17 : vector<16x128xf32>
    %302 = arith.addf %300, %301 : vector<16x128xf32>
    %cst_118 = arith.constant 0.1820914 : f32
    %303 = vector.broadcast %cst_118 : f32 to vector<16x128xf32>
    %304 = arith.mulf %303, %296 : vector<16x128xf32>
    %305 = arith.mulf %304, %299 : vector<16x128xf32>
    %c0_119 = arith.constant 0 : index
    %c8 = arith.constant 8 : index
    %306 = arith.index_cast %3 : i32 to index
    %c0_120 = arith.constant 0 : index
    %307 = vector.load %arg2[%c0_119, %c8, %306, %c0_120] : memref<1x100x16x128xf32, #tpu.memory_space<vmem>>, vector<1x1x16x128xf32>
    %308 = vector.shape_cast %307 : vector<1x1x16x128xf32> to vector<16x128xf32>
    %309 = vector.shape_cast %305 : vector<16x128xf32> to vector<1x1x16x128xf32>
    tpu.vector_store %arg2[%c0_119, %c8, %306, %c0_120], %309 {strides = array<i32>} : memref<1x100x16x128xf32, #tpu.memory_space<vmem>>, vector<1x1x16x128xf32>,
    %310 = arith.mulf %304, %302 : vector<16x128xf32>
    %c0_121 = arith.constant 0 : index
    %c4 = arith.constant 4 : index
    %311 = arith.index_cast %3 : i32 to index
    %c0_122 = arith.constant 0 : index
    %312 = vector.load %arg2[%c0_121, %c4, %311, %c0_122] : memref<1x100x16x128xf32, #tpu.memory_space<vmem>>, vector<1x1x16x128xf32>
    %313 = vector.shape_cast %312 : vector<1x1x16x128xf32> to vector<16x128xf32>
    %314 = vector.shape_cast %310 : vector<16x128xf32> to vector<1x1x16x128xf32>
    tpu.vector_store %arg2[%c0_121, %c4, %311, %c0_122], %314 {strides = array<i32>} : memref<1x100x16x128xf32, #tpu.memory_space<vmem>>, vector<1x1x16x128xf32>,
    %cst_123 = arith.constant 5.000000e+00 : f32
    %315 = vector.broadcast %cst_123 : f32 to vector<16x128xf32>
    %316 = arith.mulf %315, %14 : vector<16x128xf32>
    %317 = arith.mulf %316, %296 : vector<16x128xf32>
    %cst_124 = arith.constant 0.0963537171 : f32
    %318 = vector.broadcast %cst_124 : f32 to vector<16x128xf32>
    %319 = arith.mulf %318, %317 : vector<16x128xf32>
    %320 = arith.mulf %319, %299 : vector<16x128xf32>
    %c0_125 = arith.constant 0 : index
    %c14 = arith.constant 14 : index
    %321 = arith.index_cast %3 : i32 to index
    %c0_126 = arith.constant 0 : index
    %322 = vector.load %arg2[%c0_125, %c14, %321, %c0_126] : memref<1x100x16x128xf32, #tpu.memory_space<vmem>>, vector<1x1x16x128xf32>
    %323 = vector.shape_cast %322 : vector<1x1x16x128xf32> to vector<16x128xf32>
    %324 = vector.shape_cast %320 : vector<16x128xf32> to vector<1x1x16x128xf32>
    tpu.vector_store %arg2[%c0_125, %c14, %321, %c0_126], %324 {strides = array<i32>} : memref<1x100x16x128xf32, #tpu.memory_space<vmem>>, vector<1x1x16x128xf32>,
    %325 = arith.mulf %319, %302 : vector<16x128xf32>
    %c0_127 = arith.constant 0 : index
    %c10 = arith.constant 10 : index
    %326 = arith.index_cast %3 : i32 to index
    %c0_128 = arith.constant 0 : index
    %327 = vector.load %arg2[%c0_127, %c10, %326, %c0_128] : memref<1x100x16x128xf32, #tpu.memory_space<vmem>>, vector<1x1x16x128xf32>
    %328 = vector.shape_cast %327 : vector<1x1x16x128xf32> to vector<16x128xf32>
    %329 = vector.shape_cast %325 : vector<16x128xf32> to vector<1x1x16x128xf32>
    tpu.vector_store %arg2[%c0_127, %c10, %326, %c0_128], %329 {strides = array<i32>} : memref<1x100x16x128xf32, #tpu.memory_space<vmem>>, vector<1x1x16x128xf32>,
    %cst_129 = arith.constant 3.500000e+00 : f32
    %330 = vector.broadcast %cst_129 : f32 to vector<16x128xf32>
    %331 = arith.mulf %330, %14 : vector<16x128xf32>
    %332 = arith.mulf %331, %317 : vector<16x128xf32>
    %cst_130 = arith.constant 2.500000e+00 : f32
    %333 = vector.broadcast %cst_130 : f32 to vector<16x128xf32>
    %334 = arith.mulf %333, %296 : vector<16x128xf32>
    %335 = arith.subf %332, %334 : vector<16x128xf32>
    %cst_131 = arith.constant 0.063078314 : f32
    %336 = vector.broadcast %cst_131 : f32 to vector<16x128xf32>
    %337 = arith.mulf %336, %335 : vector<16x128xf32>
    %338 = arith.mulf %337, %299 : vector<16x128xf32>
    %c0_132 = arith.constant 0 : index
    %c22 = arith.constant 22 : index
    %339 = arith.index_cast %3 : i32 to index
    %c0_133 = arith.constant 0 : index
    %340 = vector.load %arg2[%c0_132, %c22, %339, %c0_133] : memref<1x100x16x128xf32, #tpu.memory_space<vmem>>, vector<1x1x16x128xf32>
    %341 = vector.shape_cast %340 : vector<1x1x16x128xf32> to vector<16x128xf32>
    %342 = vector.shape_cast %338 : vector<16x128xf32> to vector<1x1x16x128xf32>
    tpu.vector_store %arg2[%c0_132, %c22, %339, %c0_133], %342 {strides = array<i32>} : memref<1x100x16x128xf32, #tpu.memory_space<vmem>>, vector<1x1x16x128xf32>,
    %343 = arith.mulf %337, %302 : vector<16x128xf32>
    %c0_134 = arith.constant 0 : index
    %c18 = arith.constant 18 : index
    %344 = arith.index_cast %3 : i32 to index
    %c0_135 = arith.constant 0 : index
    %345 = vector.load %arg2[%c0_134, %c18, %344, %c0_135] : memref<1x100x16x128xf32, #tpu.memory_space<vmem>>, vector<1x1x16x128xf32>
    %346 = vector.shape_cast %345 : vector<1x1x16x128xf32> to vector<16x128xf32>
    %347 = vector.shape_cast %343 : vector<16x128xf32> to vector<1x1x16x128xf32>
    tpu.vector_store %arg2[%c0_134, %c18, %344, %c0_135], %347 {strides = array<i32>} : memref<1x100x16x128xf32, #tpu.memory_space<vmem>>, vector<1x1x16x128xf32>,
    %cst_136 = arith.constant 3.000000e+00 : f32
    %348 = vector.broadcast %cst_136 : f32 to vector<16x128xf32>
    %349 = arith.mulf %348, %14 : vector<16x128xf32>
    %350 = arith.mulf %349, %335 : vector<16x128xf32>
    %cst_137 = arith.constant 2.000000e+00 : f32
    %351 = vector.broadcast %cst_137 : f32 to vector<16x128xf32>
    %352 = arith.mulf %351, %317 : vector<16x128xf32>
    %353 = arith.subf %350, %352 : vector<16x128xf32>
    %cst_138 = arith.constant 0.0456527323 : f32
    %354 = vector.broadcast %cst_138 : f32 to vector<16x128xf32>
    %355 = arith.mulf %354, %353 : vector<16x128xf32>
    %356 = arith.mulf %355, %299 : vector<16x128xf32>
    %c0_139 = arith.constant 0 : index
    %c32 = arith.constant 32 : index
    %357 = arith.index_cast %3 : i32 to index
    %c0_140 = arith.constant 0 : index
    %358 = vector.load %arg2[%c0_139, %c32, %357, %c0_140] : memref<1x100x16x128xf32, #tpu.memory_space<vmem>>, vector<1x1x16x128xf32>
    %359 = vector.shape_cast %358 : vector<1x1x16x128xf32> to vector<16x128xf32>
    %360 = vector.shape_cast %356 : vector<16x128xf32> to vector<1x1x16x128xf32>
    tpu.vector_store %arg2[%c0_139, %c32, %357, %c0_140], %360 {strides = array<i32>} : memref<1x100x16x128xf32, #tpu.memory_space<vmem>>, vector<1x1x16x128xf32>,
    %361 = arith.mulf %355, %302 : vector<16x128xf32>
    %c0_141 = arith.constant 0 : index
    %c28 = arith.constant 28 : index
    %362 = arith.index_cast %3 : i32 to index
    %c0_142 = arith.constant 0 : index
    %363 = vector.load %arg2[%c0_141, %c28, %362, %c0_142] : memref<1x100x16x128xf32, #tpu.memory_space<vmem>>, vector<1x1x16x128xf32>
    %364 = vector.shape_cast %363 : vector<1x1x16x128xf32> to vector<16x128xf32>
    %365 = vector.shape_cast %361 : vector<16x128xf32> to vector<1x1x16x128xf32>
    tpu.vector_store %arg2[%c0_141, %c28, %362, %c0_142], %365 {strides = array<i32>} : memref<1x100x16x128xf32, #tpu.memory_space<vmem>>, vector<1x1x16x128xf32>,
    %cst_143 = arith.constant 2.750000e+00 : f32
    %366 = vector.broadcast %cst_143 : f32 to vector<16x128xf32>
    %367 = arith.mulf %366, %14 : vector<16x128xf32>
    %368 = arith.mulf %367, %353 : vector<16x128xf32>
    %cst_144 = arith.constant 1.750000e+00 : f32
    %369 = vector.broadcast %cst_144 : f32 to vector<16x128xf32>
    %370 = arith.mulf %369, %335 : vector<16x128xf32>
    %371 = arith.subf %368, %370 : vector<16x128xf32>
    %cst_145 = arith.constant 0.0350935347 : f32
    %372 = vector.broadcast %cst_145 : f32 to vector<16x128xf32>
    %373 = arith.mulf %372, %371 : vector<16x128xf32>
    %374 = arith.mulf %373, %299 : vector<16x128xf32>
    %c0_146 = arith.constant 0 : index
    %c44 = arith.constant 44 : index
    %375 = arith.index_cast %3 : i32 to index
    %c0_147 = arith.constant 0 : index
    %376 = vector.load %arg2[%c0_146, %c44, %375, %c0_147] : memref<1x100x16x128xf32, #tpu.memory_space<vmem>>, vector<1x1x16x128xf32>
    %377 = vector.shape_cast %376 : vector<1x1x16x128xf32> to vector<16x128xf32>
    %378 = vector.shape_cast %374 : vector<16x128xf32> to vector<1x1x16x128xf32>
    tpu.vector_store %arg2[%c0_146, %c44, %375, %c0_147], %378 {strides = array<i32>} : memref<1x100x16x128xf32, #tpu.memory_space<vmem>>, vector<1x1x16x128xf32>,
    %379 = arith.mulf %373, %302 : vector<16x128xf32>
    %c0_148 = arith.constant 0 : index
    %c40 = arith.constant 40 : index
    %380 = arith.index_cast %3 : i32 to index
    %c0_149 = arith.constant 0 : index
    %381 = vector.load %arg2[%c0_148, %c40, %380, %c0_149] : memref<1x100x16x128xf32, #tpu.memory_space<vmem>>, vector<1x1x16x128xf32>
    %382 = vector.shape_cast %381 : vector<1x1x16x128xf32> to vector<16x128xf32>
    %383 = vector.shape_cast %379 : vector<16x128xf32> to vector<1x1x16x128xf32>
    tpu.vector_store %arg2[%c0_148, %c40, %380, %c0_149], %383 {strides = array<i32>} : memref<1x100x16x128xf32, #tpu.memory_space<vmem>>, vector<1x1x16x128xf32>,
    %cst_150 = arith.constant 2.600000e+00 : f32
    %384 = vector.broadcast %cst_150 : f32 to vector<16x128xf32>
    %385 = arith.mulf %384, %14 : vector<16x128xf32>
    %386 = arith.mulf %385, %371 : vector<16x128xf32>
    %cst_151 = arith.constant 1.600000e+00 : f32
    %387 = vector.broadcast %cst_151 : f32 to vector<16x128xf32>
    %388 = arith.mulf %387, %353 : vector<16x128xf32>
    %389 = arith.subf %386, %388 : vector<16x128xf32>
    %cst_152 = arith.constant 0.0280973129 : f32
    %390 = vector.broadcast %cst_152 : f32 to vector<16x128xf32>
    %391 = arith.mulf %390, %389 : vector<16x128xf32>
    %392 = arith.mulf %391, %299 : vector<16x128xf32>
    %c0_153 = arith.constant 0 : index
    %c58 = arith.constant 58 : index
    %393 = arith.index_cast %3 : i32 to index
    %c0_154 = arith.constant 0 : index
    %394 = vector.load %arg2[%c0_153, %c58, %393, %c0_154] : memref<1x100x16x128xf32, #tpu.memory_space<vmem>>, vector<1x1x16x128xf32>
    %395 = vector.shape_cast %394 : vector<1x1x16x128xf32> to vector<16x128xf32>
    %396 = vector.shape_cast %392 : vector<16x128xf32> to vector<1x1x16x128xf32>
    tpu.vector_store %arg2[%c0_153, %c58, %393, %c0_154], %396 {strides = array<i32>} : memref<1x100x16x128xf32, #tpu.memory_space<vmem>>, vector<1x1x16x128xf32>,
    %397 = arith.mulf %391, %302 : vector<16x128xf32>
    %c0_155 = arith.constant 0 : index
    %c54 = arith.constant 54 : index
    %398 = arith.index_cast %3 : i32 to index
    %c0_156 = arith.constant 0 : index
    %399 = vector.load %arg2[%c0_155, %c54, %398, %c0_156] : memref<1x100x16x128xf32, #tpu.memory_space<vmem>>, vector<1x1x16x128xf32>
    %400 = vector.shape_cast %399 : vector<1x1x16x128xf32> to vector<16x128xf32>
    %401 = vector.shape_cast %397 : vector<16x128xf32> to vector<1x1x16x128xf32>
    tpu.vector_store %arg2[%c0_155, %c54, %398, %c0_156], %401 {strides = array<i32>} : memref<1x100x16x128xf32, #tpu.memory_space<vmem>>, vector<1x1x16x128xf32>,
    %cst_157 = arith.constant 2.500000e+00 : f32
    %402 = vector.broadcast %cst_157 : f32 to vector<16x128xf32>
    %403 = arith.mulf %402, %14 : vector<16x128xf32>
    %404 = arith.mulf %403, %389 : vector<16x128xf32>
    %cst_158 = arith.constant 1.500000e+00 : f32
    %405 = vector.broadcast %cst_158 : f32 to vector<16x128xf32>
    %406 = arith.mulf %405, %371 : vector<16x128xf32>
    %407 = arith.subf %404, %406 : vector<16x128xf32>
    %cst_159 = arith.constant 0.0231696386 : f32
    %408 = vector.broadcast %cst_159 : f32 to vector<16x128xf32>
    %409 = arith.mulf %408, %407 : vector<16x128xf32>
    %410 = arith.mulf %409, %299 : vector<16x128xf32>
    %c0_160 = arith.constant 0 : index
    %c74 = arith.constant 74 : index
    %411 = arith.index_cast %3 : i32 to index
    %c0_161 = arith.constant 0 : index
    %412 = vector.load %arg2[%c0_160, %c74, %411, %c0_161] : memref<1x100x16x128xf32, #tpu.memory_space<vmem>>, vector<1x1x16x128xf32>
    %413 = vector.shape_cast %412 : vector<1x1x16x128xf32> to vector<16x128xf32>
    %414 = vector.shape_cast %410 : vector<16x128xf32> to vector<1x1x16x128xf32>
    tpu.vector_store %arg2[%c0_160, %c74, %411, %c0_161], %414 {strides = array<i32>} : memref<1x100x16x128xf32, #tpu.memory_space<vmem>>, vector<1x1x16x128xf32>,
    %415 = arith.mulf %409, %302 : vector<16x128xf32>
    %c0_162 = arith.constant 0 : index
    %c70 = arith.constant 70 : index
    %416 = arith.index_cast %3 : i32 to index
    %c0_163 = arith.constant 0 : index
    %417 = vector.load %arg2[%c0_162, %c70, %416, %c0_163] : memref<1x100x16x128xf32, #tpu.memory_space<vmem>>, vector<1x1x16x128xf32>
    %418 = vector.shape_cast %417 : vector<1x1x16x128xf32> to vector<16x128xf32>
    %419 = vector.shape_cast %415 : vector<16x128xf32> to vector<1x1x16x128xf32>
    tpu.vector_store %arg2[%c0_162, %c70, %416, %c0_163], %419 {strides = array<i32>} : memref<1x100x16x128xf32, #tpu.memory_space<vmem>>, vector<1x1x16x128xf32>,
    %cst_164 = arith.constant 2.42857146 : f32
    %420 = vector.broadcast %cst_164 : f32 to vector<16x128xf32>
    %421 = arith.mulf %420, %14 : vector<16x128xf32>
    %422 = arith.mulf %421, %407 : vector<16x128xf32>
    %cst_165 = arith.constant 1.42857146 : f32
    %423 = vector.broadcast %cst_165 : f32 to vector<16x128xf32>
    %424 = arith.mulf %423, %389 : vector<16x128xf32>
    %425 = arith.subf %422, %424 : vector<16x128xf32>
    %cst_166 = arith.constant 0.0195399877 : f32
    %426 = vector.broadcast %cst_166 : f32 to vector<16x128xf32>
    %427 = arith.mulf %426, %425 : vector<16x128xf32>
    %428 = arith.mulf %427, %299 : vector<16x128xf32>
    %c0_167 = arith.constant 0 : index
    %c92 = arith.constant 92 : index
    %429 = arith.index_cast %3 : i32 to index
    %c0_168 = arith.constant 0 : index
    %430 = vector.load %arg2[%c0_167, %c92, %429, %c0_168] : memref<1x100x16x128xf32, #tpu.memory_space<vmem>>, vector<1x1x16x128xf32>
    %431 = vector.shape_cast %430 : vector<1x1x16x128xf32> to vector<16x128xf32>
    %432 = vector.shape_cast %428 : vector<16x128xf32> to vector<1x1x16x128xf32>
    tpu.vector_store %arg2[%c0_167, %c92, %429, %c0_168], %432 {strides = array<i32>} : memref<1x100x16x128xf32, #tpu.memory_space<vmem>>, vector<1x1x16x128xf32>,
    %433 = arith.mulf %427, %302 : vector<16x128xf32>
    %c0_169 = arith.constant 0 : index
    %c88 = arith.constant 88 : index
    %434 = arith.index_cast %3 : i32 to index
    %c0_170 = arith.constant 0 : index
    %435 = vector.load %arg2[%c0_169, %c88, %434, %c0_170] : memref<1x100x16x128xf32, #tpu.memory_space<vmem>>, vector<1x1x16x128xf32>
    %436 = vector.shape_cast %435 : vector<1x1x16x128xf32> to vector<16x128xf32>
    %437 = vector.shape_cast %433 : vector<16x128xf32> to vector<1x1x16x128xf32>
    tpu.vector_store %arg2[%c0_169, %c88, %434, %c0_170], %437 {strides = array<i32>} : memref<1x100x16x128xf32, #tpu.memory_space<vmem>>, vector<1x1x16x128xf32>,
    %cst_171 = arith.constant 5.000000e+00 : f32
    %438 = vector.broadcast %cst_171 : f32 to vector<16x128xf32>
    %439 = arith.mulf %438, %15 : vector<16x128xf32>
    %440 = arith.mulf %439, %296 : vector<16x128xf32>
    %441 = arith.mulf %299, %16 : vector<16x128xf32>
    %442 = arith.mulf %302, %17 : vector<16x128xf32>
    %443 = arith.subf %441, %442 : vector<16x128xf32>
    %444 = arith.mulf %302, %16 : vector<16x128xf32>
    %445 = arith.mulf %299, %17 : vector<16x128xf32>
    %446 = arith.addf %444, %445 : vector<16x128xf32>
    %cst_172 = arith.constant 0.0393362381 : f32
    %447 = vector.broadcast %cst_172 : f32 to vector<16x128xf32>
    %448 = arith.mulf %447, %440 : vector<16x128xf32>
    %449 = arith.mulf %448, %443 : vector<16x128xf32>
    %c0_173 = arith.constant 0 : index
    %c15 = arith.constant 15 : index
    %450 = arith.index_cast %3 : i32 to index
    %c0_174 = arith.constant 0 : index
    %451 = vector.load %arg2[%c0_173, %c15, %450, %c0_174] : memref<1x100x16x128xf32, #tpu.memory_space<vmem>>, vector<1x1x16x128xf32>
    %452 = vector.shape_cast %451 : vector<1x1x16x128xf32> to vector<16x128xf32>
    %453 = vector.shape_cast %449 : vector<16x128xf32> to vector<1x1x16x128xf32>
    tpu.vector_store %arg2[%c0_173, %c15, %450, %c0_174], %453 {strides = array<i32>} : memref<1x100x16x128xf32, #tpu.memory_space<vmem>>, vector<1x1x16x128xf32>,
    %454 = arith.mulf %448, %446 : vector<16x128xf32>
    %c0_175 = arith.constant 0 : index
    %c9 = arith.constant 9 : index
    %455 = arith.index_cast %3 : i32 to index
    %c0_176 = arith.constant 0 : index
    %456 = vector.load %arg2[%c0_175, %c9, %455, %c0_176] : memref<1x100x16x128xf32, #tpu.memory_space<vmem>>, vector<1x1x16x128xf32>
    %457 = vector.shape_cast %456 : vector<1x1x16x128xf32> to vector<16x128xf32>
    %458 = vector.shape_cast %454 : vector<16x128xf32> to vector<1x1x16x128xf32>
    tpu.vector_store %arg2[%c0_175, %c9, %455, %c0_176], %458 {strides = array<i32>} : memref<1x100x16x128xf32, #tpu.memory_space<vmem>>, vector<1x1x16x128xf32>,
    %cst_177 = arith.constant 7.000000e+00 : f32
    %459 = vector.broadcast %cst_177 : f32 to vector<16x128xf32>
    %460 = arith.mulf %459, %14 : vector<16x128xf32>
    %461 = arith.mulf %460, %440 : vector<16x128xf32>
    %cst_178 = arith.constant 0.0168583877 : f32
    %462 = vector.broadcast %cst_178 : f32 to vector<16x128xf32>
    %463 = arith.mulf %462, %461 : vector<16x128xf32>
    %464 = arith.mulf %463, %443 : vector<16x128xf32>
    %c0_179 = arith.constant 0 : index
    %c23 = arith.constant 23 : index
    %465 = arith.index_cast %3 : i32 to index
    %c0_180 = arith.constant 0 : index
    %466 = vector.load %arg2[%c0_179, %c23, %465, %c0_180] : memref<1x100x16x128xf32, #tpu.memory_space<vmem>>, vector<1x1x16x128xf32>
    %467 = vector.shape_cast %466 : vector<1x1x16x128xf32> to vector<16x128xf32>
    %468 = vector.shape_cast %464 : vector<16x128xf32> to vector<1x1x16x128xf32>
    tpu.vector_store %arg2[%c0_179, %c23, %465, %c0_180], %468 {strides = array<i32>} : memref<1x100x16x128xf32, #tpu.memory_space<vmem>>, vector<1x1x16x128xf32>,
    %469 = arith.mulf %463, %446 : vector<16x128xf32>
    %c0_181 = arith.constant 0 : index
    %c17 = arith.constant 17 : index
    %470 = arith.index_cast %3 : i32 to index
    %c0_182 = arith.constant 0 : index
    %471 = vector.load %arg2[%c0_181, %c17, %470, %c0_182] : memref<1x100x16x128xf32, #tpu.memory_space<vmem>>, vector<1x1x16x128xf32>
    %472 = vector.shape_cast %471 : vector<1x1x16x128xf32> to vector<16x128xf32>
    %473 = vector.shape_cast %469 : vector<16x128xf32> to vector<1x1x16x128xf32>
    tpu.vector_store %arg2[%c0_181, %c17, %470, %c0_182], %473 {strides = array<i32>} : memref<1x100x16x128xf32, #tpu.memory_space<vmem>>, vector<1x1x16x128xf32>,
    %cst_183 = arith.constant 4.500000e+00 : f32
    %474 = vector.broadcast %cst_183 : f32 to vector<16x128xf32>
    %475 = arith.mulf %474, %14 : vector<16x128xf32>
    %476 = arith.mulf %475, %461 : vector<16x128xf32>
    %cst_184 = arith.constant 3.500000e+00 : f32
    %477 = vector.broadcast %cst_184 : f32 to vector<16x128xf32>
    %478 = arith.mulf %477, %440 : vector<16x128xf32>
    %479 = arith.subf %476, %478 : vector<16x128xf32>
    %cst_185 = arith.constant 0.00931882485 : f32
    %480 = vector.broadcast %cst_185 : f32 to vector<16x128xf32>
    %481 = arith.mulf %480, %479 : vector<16x128xf32>
    %482 = arith.mulf %481, %443 : vector<16x128xf32>
    %c0_186 = arith.constant 0 : index
    %c33 = arith.constant 33 : index
    %483 = arith.index_cast %3 : i32 to index
    %c0_187 = arith.constant 0 : index
    %484 = vector.load %arg2[%c0_186, %c33, %483, %c0_187] : memref<1x100x16x128xf32, #tpu.memory_space<vmem>>, vector<1x1x16x128xf32>
    %485 = vector.shape_cast %484 : vector<1x1x16x128xf32> to vector<16x128xf32>
    %486 = vector.shape_cast %482 : vector<16x128xf32> to vector<1x1x16x128xf32>
    tpu.vector_store %arg2[%c0_186, %c33, %483, %c0_187], %486 {strides = array<i32>} : memref<1x100x16x128xf32, #tpu.memory_space<vmem>>, vector<1x1x16x128xf32>,
    %487 = arith.mulf %481, %446 : vector<16x128xf32>
    %c0_188 = arith.constant 0 : index
    %c27 = arith.constant 27 : index
    %488 = arith.index_cast %3 : i32 to index
    %c0_189 = arith.constant 0 : index
    %489 = vector.load %arg2[%c0_188, %c27, %488, %c0_189] : memref<1x100x16x128xf32, #tpu.memory_space<vmem>>, vector<1x1x16x128xf32>
    %490 = vector.shape_cast %489 : vector<1x1x16x128xf32> to vector<16x128xf32>
    %491 = vector.shape_cast %487 : vector<16x128xf32> to vector<1x1x16x128xf32>
    tpu.vector_store %arg2[%c0_188, %c27, %488, %c0_189], %491 {strides = array<i32>} : memref<1x100x16x128xf32, #tpu.memory_space<vmem>>, vector<1x1x16x128xf32>,
    %cst_190 = arith.constant 3.66666675 : f32
    %492 = vector.broadcast %cst_190 : f32 to vector<16x128xf32>
    %493 = arith.mulf %492, %14 : vector<16x128xf32>
    %494 = arith.mulf %493, %479 : vector<16x128xf32>
    %cst_191 = arith.constant 2.66666675 : f32
    %495 = vector.broadcast %cst_191 : f32 to vector<16x128xf32>
    %496 = arith.mulf %495, %461 : vector<16x128xf32>
    %497 = arith.subf %494, %496 : vector<16x128xf32>
    %cst_192 = arith.constant 0.0058489223 : f32
    %498 = vector.broadcast %cst_192 : f32 to vector<16x128xf32>
    %499 = arith.mulf %498, %497 : vector<16x128xf32>
    %500 = arith.mulf %499, %443 : vector<16x128xf32>
    %c0_193 = arith.constant 0 : index
    %c45 = arith.constant 45 : index
    %501 = arith.index_cast %3 : i32 to index
    %c0_194 = arith.constant 0 : index
    %502 = vector.load %arg2[%c0_193, %c45, %501, %c0_194] : memref<1x100x16x128xf32, #tpu.memory_space<vmem>>, vector<1x1x16x128xf32>
    %503 = vector.shape_cast %502 : vector<1x1x16x128xf32> to vector<16x128xf32>
    %504 = vector.shape_cast %500 : vector<16x128xf32> to vector<1x1x16x128xf32>
    tpu.vector_store %arg2[%c0_193, %c45, %501, %c0_194], %504 {strides = array<i32>} : memref<1x100x16x128xf32, #tpu.memory_space<vmem>>, vector<1x1x16x128xf32>,
    %505 = arith.mulf %499, %446 : vector<16x128xf32>
    %c0_195 = arith.constant 0 : index
    %c39 = arith.constant 39 : index
    %506 = arith.index_cast %3 : i32 to index
    %c0_196 = arith.constant 0 : index
    %507 = vector.load %arg2[%c0_195, %c39, %506, %c0_196] : memref<1x100x16x128xf32, #tpu.memory_space<vmem>>, vector<1x1x16x128xf32>
    %508 = vector.shape_cast %507 : vector<1x1x16x128xf32> to vector<16x128xf32>
    %509 = vector.shape_cast %505 : vector<16x128xf32> to vector<1x1x16x128xf32>
    tpu.vector_store %arg2[%c0_195, %c39, %506, %c0_196], %509 {strides = array<i32>} : memref<1x100x16x128xf32, #tpu.memory_space<vmem>>, vector<1x1x16x128xf32>,
    %cst_197 = arith.constant 3.250000e+00 : f32
    %510 = vector.broadcast %cst_197 : f32 to vector<16x128xf32>
    %511 = arith.mulf %510, %14 : vector<16x128xf32>
    %512 = arith.mulf %511, %497 : vector<16x128xf32>
    %cst_198 = arith.constant 2.250000e+00 : f32
    %513 = vector.broadcast %cst_198 : f32 to vector<16x128xf32>
    %514 = arith.mulf %513, %479 : vector<16x128xf32>
    %515 = arith.subf %512, %514 : vector<16x128xf32>
    %cst_199 = arith.constant 0.00397356041 : f32
    %516 = vector.broadcast %cst_199 : f32 to vector<16x128xf32>
    %517 = arith.mulf %516, %515 : vector<16x128xf32>
    %518 = arith.mulf %517, %443 : vector<16x128xf32>
    %c0_200 = arith.constant 0 : index
    %c59 = arith.constant 59 : index
    %519 = arith.index_cast %3 : i32 to index
    %c0_201 = arith.constant 0 : index
    %520 = vector.load %arg2[%c0_200, %c59, %519, %c0_201] : memref<1x100x16x128xf32, #tpu.memory_space<vmem>>, vector<1x1x16x128xf32>
    %521 = vector.shape_cast %520 : vector<1x1x16x128xf32> to vector<16x128xf32>
    %522 = vector.shape_cast %518 : vector<16x128xf32> to vector<1x1x16x128xf32>
    tpu.vector_store %arg2[%c0_200, %c59, %519, %c0_201], %522 {strides = array<i32>} : memref<1x100x16x128xf32, #tpu.memory_space<vmem>>, vector<1x1x16x128xf32>,
    %523 = arith.mulf %517, %446 : vector<16x128xf32>
    %c0_202 = arith.constant 0 : index
    %c53 = arith.constant 53 : index
    %524 = arith.index_cast %3 : i32 to index
    %c0_203 = arith.constant 0 : index
    %525 = vector.load %arg2[%c0_202, %c53, %524, %c0_203] : memref<1x100x16x128xf32, #tpu.memory_space<vmem>>, vector<1x1x16x128xf32>
    %526 = vector.shape_cast %525 : vector<1x1x16x128xf32> to vector<16x128xf32>
    %527 = vector.shape_cast %523 : vector<16x128xf32> to vector<1x1x16x128xf32>
    tpu.vector_store %arg2[%c0_202, %c53, %524, %c0_203], %527 {strides = array<i32>} : memref<1x100x16x128xf32, #tpu.memory_space<vmem>>, vector<1x1x16x128xf32>,
    %cst_204 = arith.constant 3.000000e+00 : f32
    %528 = vector.broadcast %cst_204 : f32 to vector<16x128xf32>
    %529 = arith.mulf %528, %14 : vector<16x128xf32>
    %530 = arith.mulf %529, %515 : vector<16x128xf32>
    %cst_205 = arith.constant 2.000000e+00 : f32
    %531 = vector.broadcast %cst_205 : f32 to vector<16x128xf32>
    %532 = arith.mulf %531, %497 : vector<16x128xf32>
    %533 = arith.subf %530, %532 : vector<16x128xf32>
    %cst_206 = arith.constant 0.00285198539 : f32
    %534 = vector.broadcast %cst_206 : f32 to vector<16x128xf32>
    %535 = arith.mulf %534, %533 : vector<16x128xf32>
    %536 = arith.mulf %535, %443 : vector<16x128xf32>
    %c0_207 = arith.constant 0 : index
    %c75 = arith.constant 75 : index
    %537 = arith.index_cast %3 : i32 to index
    %c0_208 = arith.constant 0 : index
    %538 = vector.load %arg2[%c0_207, %c75, %537, %c0_208] : memref<1x100x16x128xf32, #tpu.memory_space<vmem>>, vector<1x1x16x128xf32>
    %539 = vector.shape_cast %538 : vector<1x1x16x128xf32> to vector<16x128xf32>
    %540 = vector.shape_cast %536 : vector<16x128xf32> to vector<1x1x16x128xf32>
    tpu.vector_store %arg2[%c0_207, %c75, %537, %c0_208], %540 {strides = array<i32>} : memref<1x100x16x128xf32, #tpu.memory_space<vmem>>, vector<1x1x16x128xf32>,
    %541 = arith.mulf %535, %446 : vector<16x128xf32>
    %c0_209 = arith.constant 0 : index
    %c69 = arith.constant 69 : index
    %542 = arith.index_cast %3 : i32 to index
    %c0_210 = arith.constant 0 : index
    %543 = vector.load %arg2[%c0_209, %c69, %542, %c0_210] : memref<1x100x16x128xf32, #tpu.memory_space<vmem>>, vector<1x1x16x128xf32>
    %544 = vector.shape_cast %543 : vector<1x1x16x128xf32> to vector<16x128xf32>
    %545 = vector.shape_cast %541 : vector<16x128xf32> to vector<1x1x16x128xf32>
    tpu.vector_store %arg2[%c0_209, %c69, %542, %c0_210], %545 {strides = array<i32>} : memref<1x100x16x128xf32, #tpu.memory_space<vmem>>, vector<1x1x16x128xf32>,
    %cst_211 = arith.constant 2.83333325 : f32
    %546 = vector.broadcast %cst_211 : f32 to vector<16x128xf32>
    %547 = arith.mulf %546, %14 : vector<16x128xf32>
    %548 = arith.mulf %547, %533 : vector<16x128xf32>
    %cst_212 = arith.constant 1.83333337 : f32
    %549 = vector.broadcast %cst_212 : f32 to vector<16x128xf32>
    %550 = arith.mulf %549, %515 : vector<16x128xf32>
    %551 = arith.subf %548, %550 : vector<16x128xf32>
    %cst_213 = arith.constant 0.00213198736 : f32
    %552 = vector.broadcast %cst_213 : f32 to vector<16x128xf32>
    %553 = arith.mulf %552, %551 : vector<16x128xf32>
    %554 = arith.mulf %553, %443 : vector<16x128xf32>
    %c0_214 = arith.constant 0 : index
    %c93 = arith.constant 93 : index
    %555 = arith.index_cast %3 : i32 to index
    %c0_215 = arith.constant 0 : index
    %556 = vector.load %arg2[%c0_214, %c93, %555, %c0_215] : memref<1x100x16x128xf32, #tpu.memory_space<vmem>>, vector<1x1x16x128xf32>
    %557 = vector.shape_cast %556 : vector<1x1x16x128xf32> to vector<16x128xf32>
    %558 = vector.shape_cast %554 : vector<16x128xf32> to vector<1x1x16x128xf32>
    tpu.vector_store %arg2[%c0_214, %c93, %555, %c0_215], %558 {strides = array<i32>} : memref<1x100x16x128xf32, #tpu.memory_space<vmem>>, vector<1x1x16x128xf32>,
    %559 = arith.mulf %553, %446 : vector<16x128xf32>
    %c0_216 = arith.constant 0 : index
    %c87 = arith.constant 87 : index
    %560 = arith.index_cast %3 : i32 to index
    %c0_217 = arith.constant 0 : index
    %561 = vector.load %arg2[%c0_216, %c87, %560, %c0_217] : memref<1x100x16x128xf32, #tpu.memory_space<vmem>>, vector<1x1x16x128xf32>
    %562 = vector.shape_cast %561 : vector<1x1x16x128xf32> to vector<16x128xf32>
    %563 = vector.shape_cast %559 : vector<16x128xf32> to vector<1x1x16x128xf32>
    tpu.vector_store %arg2[%c0_216, %c87, %560, %c0_217], %563 {strides = array<i32>} : memref<1x100x16x128xf32, #tpu.memory_space<vmem>>, vector<1x1x16x128xf32>,
    %cst_218 = arith.constant 7.000000e+00 : f32
    %564 = vector.broadcast %cst_218 : f32 to vector<16x128xf32>
    %565 = arith.mulf %564, %15 : vector<16x128xf32>
    %566 = arith.mulf %565, %440 : vector<16x128xf32>
    %567 = arith.mulf %443, %16 : vector<16x128xf32>
    %568 = arith.mulf %446, %17 : vector<16x128xf32>
    %569 = arith.subf %567, %568 : vector<16x128xf32>
    %570 = arith.mulf %446, %16 : vector<16x128xf32>
    %571 = arith.mulf %443, %17 : vector<16x128xf32>
    %572 = arith.addf %570, %571 : vector<16x128xf32>
    %cst_219 = arith.constant 5.960340e-03 : f32
    %573 = vector.broadcast %cst_219 : f32 to vector<16x128xf32>
    %574 = arith.mulf %573, %566 : vector<16x128xf32>
    %575 = arith.mulf %574, %569 : vector<16x128xf32>
    %c0_220 = arith.constant 0 : index
    %c24 = arith.constant 24 : index
    %576 = arith.index_cast %3 : i32 to index
    %c0_221 = arith.constant 0 : index
    %577 = vector.load %arg2[%c0_220, %c24, %576, %c0_221] : memref<1x100x16x128xf32, #tpu.memory_space<vmem>>, vector<1x1x16x128xf32>
    %578 = vector.shape_cast %577 : vector<1x1x16x128xf32> to vector<16x128xf32>
    %579 = vector.shape_cast %575 : vector<16x128xf32> to vector<1x1x16x128xf32>
    tpu.vector_store %arg2[%c0_220, %c24, %576, %c0_221], %579 {strides = array<i32>} : memref<1x100x16x128xf32, #tpu.memory_space<vmem>>, vector<1x1x16x128xf32>,
    %580 = arith.mulf %574, %572 : vector<16x128xf32>
    %c0_222 = arith.constant 0 : index
    %c16 = arith.constant 16 : index
    %581 = arith.index_cast %3 : i32 to index
    %c0_223 = arith.constant 0 : index
    %582 = vector.load %arg2[%c0_222, %c16, %581, %c0_223] : memref<1x100x16x128xf32, #tpu.memory_space<vmem>>, vector<1x1x16x128xf32>
    %583 = vector.shape_cast %582 : vector<1x1x16x128xf32> to vector<16x128xf32>
    %584 = vector.shape_cast %580 : vector<16x128xf32> to vector<1x1x16x128xf32>
    tpu.vector_store %arg2[%c0_222, %c16, %581, %c0_223], %584 {strides = array<i32>} : memref<1x100x16x128xf32, #tpu.memory_space<vmem>>, vector<1x1x16x128xf32>,
    %cst_224 = arith.constant 9.000000e+00 : f32
    %585 = vector.broadcast %cst_224 : f32 to vector<16x128xf32>
    %586 = arith.mulf %585, %14 : vector<16x128xf32>
    %587 = arith.mulf %586, %566 : vector<16x128xf32>
    %cst_225 = arith.constant 0.00219646795 : f32
    %588 = vector.broadcast %cst_225 : f32 to vector<16x128xf32>
    %589 = arith.mulf %588, %587 : vector<16x128xf32>
    %590 = arith.mulf %589, %569 : vector<16x128xf32>
    %c0_226 = arith.constant 0 : index
    %c34 = arith.constant 34 : index
    %591 = arith.index_cast %3 : i32 to index
    %c0_227 = arith.constant 0 : index
    %592 = vector.load %arg2[%c0_226, %c34, %591, %c0_227] : memref<1x100x16x128xf32, #tpu.memory_space<vmem>>, vector<1x1x16x128xf32>
    %593 = vector.shape_cast %592 : vector<1x1x16x128xf32> to vector<16x128xf32>
    %594 = vector.shape_cast %590 : vector<16x128xf32> to vector<1x1x16x128xf32>
    tpu.vector_store %arg2[%c0_226, %c34, %591, %c0_227], %594 {strides = array<i32>} : memref<1x100x16x128xf32, #tpu.memory_space<vmem>>, vector<1x1x16x128xf32>,
    %595 = arith.mulf %589, %572 : vector<16x128xf32>
    %c0_228 = arith.constant 0 : index
    %c26 = arith.constant 26 : index
    %596 = arith.index_cast %3 : i32 to index
    %c0_229 = arith.constant 0 : index
    %597 = vector.load %arg2[%c0_228, %c26, %596, %c0_229] : memref<1x100x16x128xf32, #tpu.memory_space<vmem>>, vector<1x1x16x128xf32>
    %598 = vector.shape_cast %597 : vector<1x1x16x128xf32> to vector<16x128xf32>
    %599 = vector.shape_cast %595 : vector<16x128xf32> to vector<1x1x16x128xf32>
    tpu.vector_store %arg2[%c0_228, %c26, %596, %c0_229], %599 {strides = array<i32>} : memref<1x100x16x128xf32, #tpu.memory_space<vmem>>, vector<1x1x16x128xf32>,
    %cst_230 = arith.constant 5.500000e+00 : f32
    %600 = vector.broadcast %cst_230 : f32 to vector<16x128xf32>
    %601 = arith.mulf %600, %14 : vector<16x128xf32>
    %602 = arith.mulf %601, %587 : vector<16x128xf32>
    %cst_231 = arith.constant 4.500000e+00 : f32
    %603 = vector.broadcast %cst_231 : f32 to vector<16x128xf32>
    %604 = arith.mulf %603, %566 : vector<16x128xf32>
    %605 = arith.subf %602, %604 : vector<16x128xf32>
    %cst_232 = arith.constant 0.00106786226 : f32
    %606 = vector.broadcast %cst_232 : f32 to vector<16x128xf32>
    %607 = arith.mulf %606, %605 : vector<16x128xf32>
    %608 = arith.mulf %607, %569 : vector<16x128xf32>
    %c0_233 = arith.constant 0 : index
    %c46 = arith.constant 46 : index
    %609 = arith.index_cast %3 : i32 to index
    %c0_234 = arith.constant 0 : index
    %610 = vector.load %arg2[%c0_233, %c46, %609, %c0_234] : memref<1x100x16x128xf32, #tpu.memory_space<vmem>>, vector<1x1x16x128xf32>
    %611 = vector.shape_cast %610 : vector<1x1x16x128xf32> to vector<16x128xf32>
    %612 = vector.shape_cast %608 : vector<16x128xf32> to vector<1x1x16x128xf32>
    tpu.vector_store %arg2[%c0_233, %c46, %609, %c0_234], %612 {strides = array<i32>} : memref<1x100x16x128xf32, #tpu.memory_space<vmem>>, vector<1x1x16x128xf32>,
    %613 = arith.mulf %607, %572 : vector<16x128xf32>
    %c0_235 = arith.constant 0 : index
    %c38 = arith.constant 38 : index
    %614 = arith.index_cast %3 : i32 to index
    %c0_236 = arith.constant 0 : index
    %615 = vector.load %arg2[%c0_235, %c38, %614, %c0_236] : memref<1x100x16x128xf32, #tpu.memory_space<vmem>>, vector<1x1x16x128xf32>
    %616 = vector.shape_cast %615 : vector<1x1x16x128xf32> to vector<16x128xf32>
    %617 = vector.shape_cast %613 : vector<16x128xf32> to vector<1x1x16x128xf32>
    tpu.vector_store %arg2[%c0_235, %c38, %614, %c0_236], %617 {strides = array<i32>} : memref<1x100x16x128xf32, #tpu.memory_space<vmem>>, vector<1x1x16x128xf32>,
    %cst_237 = arith.constant 4.33333349 : f32
    %618 = vector.broadcast %cst_237 : f32 to vector<16x128xf32>
    %619 = arith.mulf %618, %14 : vector<16x128xf32>
    %620 = arith.mulf %619, %605 : vector<16x128xf32>
    %cst_238 = arith.constant 3.33333325 : f32
    %621 = vector.broadcast %cst_238 : f32 to vector<16x128xf32>
    %622 = arith.mulf %621, %587 : vector<16x128xf32>
    %623 = arith.subf %620, %622 : vector<16x128xf32>
    %cst_239 = arith.constant 5.9903675E-4 : f32
    %624 = vector.broadcast %cst_239 : f32 to vector<16x128xf32>
    %625 = arith.mulf %624, %623 : vector<16x128xf32>
    %626 = arith.mulf %625, %569 : vector<16x128xf32>
    %c0_240 = arith.constant 0 : index
    %c60 = arith.constant 60 : index
    %627 = arith.index_cast %3 : i32 to index
    %c0_241 = arith.constant 0 : index
    %628 = vector.load %arg2[%c0_240, %c60, %627, %c0_241] : memref<1x100x16x128xf32, #tpu.memory_space<vmem>>, vector<1x1x16x128xf32>
    %629 = vector.shape_cast %628 : vector<1x1x16x128xf32> to vector<16x128xf32>
    %630 = vector.shape_cast %626 : vector<16x128xf32> to vector<1x1x16x128xf32>
    tpu.vector_store %arg2[%c0_240, %c60, %627, %c0_241], %630 {strides = array<i32>} : memref<1x100x16x128xf32, #tpu.memory_space<vmem>>, vector<1x1x16x128xf32>,
    %631 = arith.mulf %625, %572 : vector<16x128xf32>
    %c0_242 = arith.constant 0 : index
    %c52 = arith.constant 52 : index
    %632 = arith.index_cast %3 : i32 to index
    %c0_243 = arith.constant 0 : index
    %633 = vector.load %arg2[%c0_242, %c52, %632, %c0_243] : memref<1x100x16x128xf32, #tpu.memory_space<vmem>>, vector<1x1x16x128xf32>
    %634 = vector.shape_cast %633 : vector<1x1x16x128xf32> to vector<16x128xf32>
    %635 = vector.shape_cast %631 : vector<16x128xf32> to vector<1x1x16x128xf32>
    tpu.vector_store %arg2[%c0_242, %c52, %632, %c0_243], %635 {strides = array<i32>} : memref<1x100x16x128xf32, #tpu.memory_space<vmem>>, vector<1x1x16x128xf32>,
    %cst_244 = arith.constant 3.750000e+00 : f32
    %636 = vector.broadcast %cst_244 : f32 to vector<16x128xf32>
    %637 = arith.mulf %636, %14 : vector<16x128xf32>
    %638 = arith.mulf %637, %623 : vector<16x128xf32>
    %cst_245 = arith.constant 2.750000e+00 : f32
    %639 = vector.broadcast %cst_245 : f32 to vector<16x128xf32>
    %640 = arith.mulf %639, %605 : vector<16x128xf32>
    %641 = arith.subf %638, %640 : vector<16x128xf32>
    %cst_246 = arith.constant 3.68189736E-4 : f32
    %642 = vector.broadcast %cst_246 : f32 to vector<16x128xf32>
    %643 = arith.mulf %642, %641 : vector<16x128xf32>
    %644 = arith.mulf %643, %569 : vector<16x128xf32>
    %c0_247 = arith.constant 0 : index
    %c76 = arith.constant 76 : index
    %645 = arith.index_cast %3 : i32 to index
    %c0_248 = arith.constant 0 : index
    %646 = vector.load %arg2[%c0_247, %c76, %645, %c0_248] : memref<1x100x16x128xf32, #tpu.memory_space<vmem>>, vector<1x1x16x128xf32>
    %647 = vector.shape_cast %646 : vector<1x1x16x128xf32> to vector<16x128xf32>
    %648 = vector.shape_cast %644 : vector<16x128xf32> to vector<1x1x16x128xf32>
    tpu.vector_store %arg2[%c0_247, %c76, %645, %c0_248], %648 {strides = array<i32>} : memref<1x100x16x128xf32, #tpu.memory_space<vmem>>, vector<1x1x16x128xf32>,
    %649 = arith.mulf %643, %572 : vector<16x128xf32>
    %c0_249 = arith.constant 0 : index
    %c68 = arith.constant 68 : index
    %650 = arith.index_cast %3 : i32 to index
    %c0_250 = arith.constant 0 : index
    %651 = vector.load %arg2[%c0_249, %c68, %650, %c0_250] : memref<1x100x16x128xf32, #tpu.memory_space<vmem>>, vector<1x1x16x128xf32>
    %652 = vector.shape_cast %651 : vector<1x1x16x128xf32> to vector<16x128xf32>
    %653 = vector.shape_cast %649 : vector<16x128xf32> to vector<1x1x16x128xf32>
    tpu.vector_store %arg2[%c0_249, %c68, %650, %c0_250], %653 {strides = array<i32>} : memref<1x100x16x128xf32, #tpu.memory_space<vmem>>, vector<1x1x16x128xf32>,
    %cst_251 = arith.constant 3.400000e+00 : f32
    %654 = vector.broadcast %cst_251 : f32 to vector<16x128xf32>
    %655 = arith.mulf %654, %14 : vector<16x128xf32>
    %656 = arith.mulf %655, %641 : vector<16x128xf32>
    %cst_252 = arith.constant 2.400000e+00 : f32
    %657 = vector.broadcast %cst_252 : f32 to vector<16x128xf32>
    %658 = arith.mulf %657, %623 : vector<16x128xf32>
    %659 = arith.subf %656, %658 : vector<16x128xf32>
    %cst_253 = arith.constant 2.41400034E-4 : f32
    %660 = vector.broadcast %cst_253 : f32 to vector<16x128xf32>
    %661 = arith.mulf %660, %659 : vector<16x128xf32>
    %662 = arith.mulf %661, %569 : vector<16x128xf32>
    %c0_254 = arith.constant 0 : index
    %c94 = arith.constant 94 : index
    %663 = arith.index_cast %3 : i32 to index
    %c0_255 = arith.constant 0 : index
    %664 = vector.load %arg2[%c0_254, %c94, %663, %c0_255] : memref<1x100x16x128xf32, #tpu.memory_space<vmem>>, vector<1x1x16x128xf32>
    %665 = vector.shape_cast %664 : vector<1x1x16x128xf32> to vector<16x128xf32>
    %666 = vector.shape_cast %662 : vector<16x128xf32> to vector<1x1x16x128xf32>
    tpu.vector_store %arg2[%c0_254, %c94, %663, %c0_255], %666 {strides = array<i32>} : memref<1x100x16x128xf32, #tpu.memory_space<vmem>>, vector<1x1x16x128xf32>,
    %667 = arith.mulf %661, %572 : vector<16x128xf32>
    %c0_256 = arith.constant 0 : index
    %c86 = arith.constant 86 : index
    %668 = arith.index_cast %3 : i32 to index
    %c0_257 = arith.constant 0 : index
    %669 = vector.load %arg2[%c0_256, %c86, %668, %c0_257] : memref<1x100x16x128xf32, #tpu.memory_space<vmem>>, vector<1x1x16x128xf32>
    %670 = vector.shape_cast %669 : vector<1x1x16x128xf32> to vector<16x128xf32>
    %671 = vector.shape_cast %667 : vector<16x128xf32> to vector<1x1x16x128xf32>
    tpu.vector_store %arg2[%c0_256, %c86, %668, %c0_257], %671 {strides = array<i32>} : memref<1x100x16x128xf32, #tpu.memory_space<vmem>>, vector<1x1x16x128xf32>,
    %cst_258 = arith.constant 9.000000e+00 : f32
    %672 = vector.broadcast %cst_258 : f32 to vector<16x128xf32>
    %673 = arith.mulf %672, %15 : vector<16x128xf32>
    %674 = arith.mulf %673, %566 : vector<16x128xf32>
    %675 = arith.mulf %569, %16 : vector<16x128xf32>
    %676 = arith.mulf %572, %17 : vector<16x128xf32>
    %677 = arith.subf %675, %676 : vector<16x128xf32>
    %678 = arith.mulf %572, %16 : vector<16x128xf32>
    %679 = arith.mulf %569, %17 : vector<16x128xf32>
    %680 = arith.addf %678, %679 : vector<16x128xf32>
    %cst_259 = arith.constant 6.9458416E-4 : f32
    %681 = vector.broadcast %cst_259 : f32 to vector<16x128xf32>
    %682 = arith.mulf %681, %674 : vector<16x128xf32>
    %683 = arith.mulf %682, %677 : vector<16x128xf32>
    %c0_260 = arith.constant 0 : index
    %c35 = arith.constant 35 : index
    %684 = arith.index_cast %3 : i32 to index
    %c0_261 = arith.constant 0 : index
    %685 = vector.load %arg2[%c0_260, %c35, %684, %c0_261] : memref<1x100x16x128xf32, #tpu.memory_space<vmem>>, vector<1x1x16x128xf32>
    %686 = vector.shape_cast %685 : vector<1x1x16x128xf32> to vector<16x128xf32>
    %687 = vector.shape_cast %683 : vector<16x128xf32> to vector<1x1x16x128xf32>
    tpu.vector_store %arg2[%c0_260, %c35, %684, %c0_261], %687 {strides = array<i32>} : memref<1x100x16x128xf32, #tpu.memory_space<vmem>>, vector<1x1x16x128xf32>,
    %688 = arith.mulf %682, %680 : vector<16x128xf32>
    %c0_262 = arith.constant 0 : index
    %c25 = arith.constant 25 : index
    %689 = arith.index_cast %3 : i32 to index
    %c0_263 = arith.constant 0 : index
    %690 = vector.load %arg2[%c0_262, %c25, %689, %c0_263] : memref<1x100x16x128xf32, #tpu.memory_space<vmem>>, vector<1x1x16x128xf32>
    %691 = vector.shape_cast %690 : vector<1x1x16x128xf32> to vector<16x128xf32>
    %692 = vector.shape_cast %688 : vector<16x128xf32> to vector<1x1x16x128xf32>
    tpu.vector_store %arg2[%c0_262, %c25, %689, %c0_263], %692 {strides = array<i32>} : memref<1x100x16x128xf32, #tpu.memory_space<vmem>>, vector<1x1x16x128xf32>,
    %cst_264 = arith.constant 1.100000e+01 : f32
    %693 = vector.broadcast %cst_264 : f32 to vector<16x128xf32>
    %694 = arith.mulf %693, %14 : vector<16x128xf32>
    %695 = arith.mulf %694, %674 : vector<16x128xf32>
    %cst_265 = arith.constant 2.27668992E-4 : f32
    %696 = vector.broadcast %cst_265 : f32 to vector<16x128xf32>
    %697 = arith.mulf %696, %695 : vector<16x128xf32>
    %698 = arith.mulf %697, %677 : vector<16x128xf32>
    %c0_266 = arith.constant 0 : index
    %c47 = arith.constant 47 : index
    %699 = arith.index_cast %3 : i32 to index
    %c0_267 = arith.constant 0 : index
    %700 = vector.load %arg2[%c0_266, %c47, %699, %c0_267] : memref<1x100x16x128xf32, #tpu.memory_space<vmem>>, vector<1x1x16x128xf32>
    %701 = vector.shape_cast %700 : vector<1x1x16x128xf32> to vector<16x128xf32>
    %702 = vector.shape_cast %698 : vector<16x128xf32> to vector<1x1x16x128xf32>
    tpu.vector_store %arg2[%c0_266, %c47, %699, %c0_267], %702 {strides = array<i32>} : memref<1x100x16x128xf32, #tpu.memory_space<vmem>>, vector<1x1x16x128xf32>,
    %703 = arith.mulf %697, %680 : vector<16x128xf32>
    %c0_268 = arith.constant 0 : index
    %c37 = arith.constant 37 : index
    %704 = arith.index_cast %3 : i32 to index
    %c0_269 = arith.constant 0 : index
    %705 = vector.load %arg2[%c0_268, %c37, %704, %c0_269] : memref<1x100x16x128xf32, #tpu.memory_space<vmem>>, vector<1x1x16x128xf32>
    %706 = vector.shape_cast %705 : vector<1x1x16x128xf32> to vector<16x128xf32>
    %707 = vector.shape_cast %703 : vector<16x128xf32> to vector<1x1x16x128xf32>
    tpu.vector_store %arg2[%c0_268, %c37, %704, %c0_269], %707 {strides = array<i32>} : memref<1x100x16x128xf32, #tpu.memory_space<vmem>>, vector<1x1x16x128xf32>,
    %cst_270 = arith.constant 6.500000e+00 : f32
    %708 = vector.broadcast %cst_270 : f32 to vector<16x128xf32>
    %709 = arith.mulf %708, %14 : vector<16x128xf32>
    %710 = arith.mulf %709, %695 : vector<16x128xf32>
    %cst_271 = arith.constant 5.500000e+00 : f32
    %711 = vector.broadcast %cst_271 : f32 to vector<16x128xf32>
    %712 = arith.mulf %711, %674 : vector<16x128xf32>
    %713 = arith.subf %710, %712 : vector<16x128xf32>
    %cst_272 = arith.constant 9.98394607E-5 : f32
    %714 = vector.broadcast %cst_272 : f32 to vector<16x128xf32>
    %715 = arith.mulf %714, %713 : vector<16x128xf32>
    %716 = arith.mulf %715, %677 : vector<16x128xf32>
    %c0_273 = arith.constant 0 : index
    %c61 = arith.constant 61 : index
    %717 = arith.index_cast %3 : i32 to index
    %c0_274 = arith.constant 0 : index
    %718 = vector.load %arg2[%c0_273, %c61, %717, %c0_274] : memref<1x100x16x128xf32, #tpu.memory_space<vmem>>, vector<1x1x16x128xf32>
    %719 = vector.shape_cast %718 : vector<1x1x16x128xf32> to vector<16x128xf32>
    %720 = vector.shape_cast %716 : vector<16x128xf32> to vector<1x1x16x128xf32>
    tpu.vector_store %arg2[%c0_273, %c61, %717, %c0_274], %720 {strides = array<i32>} : memref<1x100x16x128xf32, #tpu.memory_space<vmem>>, vector<1x1x16x128xf32>,
    %721 = arith.mulf %715, %680 : vector<16x128xf32>
    %c0_275 = arith.constant 0 : index
    %c51 = arith.constant 51 : index
    %722 = arith.index_cast %3 : i32 to index
    %c0_276 = arith.constant 0 : index
    %723 = vector.load %arg2[%c0_275, %c51, %722, %c0_276] : memref<1x100x16x128xf32, #tpu.memory_space<vmem>>, vector<1x1x16x128xf32>
    %724 = vector.shape_cast %723 : vector<1x1x16x128xf32> to vector<16x128xf32>
    %725 = vector.shape_cast %721 : vector<16x128xf32> to vector<1x1x16x128xf32>
    tpu.vector_store %arg2[%c0_275, %c51, %722, %c0_276], %725 {strides = array<i32>} : memref<1x100x16x128xf32, #tpu.memory_space<vmem>>, vector<1x1x16x128xf32>,
    %cst_277 = arith.constant 5.000000e+00 : f32
    %726 = vector.broadcast %cst_277 : f32 to vector<16x128xf32>
    %727 = arith.mulf %726, %14 : vector<16x128xf32>
    %728 = arith.mulf %727, %713 : vector<16x128xf32>
    %cst_278 = arith.constant 4.000000e+00 : f32
    %729 = vector.broadcast %cst_278 : f32 to vector<16x128xf32>
    %730 = arith.mulf %729, %695 : vector<16x128xf32>
    %731 = arith.subf %728, %730 : vector<16x128xf32>
    %cst_279 = arith.constant 5.1058727E-5 : f32
    %732 = vector.broadcast %cst_279 : f32 to vector<16x128xf32>
    %733 = arith.mulf %732, %731 : vector<16x128xf32>
    %734 = arith.mulf %733, %677 : vector<16x128xf32>
    %c0_280 = arith.constant 0 : index
    %c77 = arith.constant 77 : index
    %735 = arith.index_cast %3 : i32 to index
    %c0_281 = arith.constant 0 : index
    %736 = vector.load %arg2[%c0_280, %c77, %735, %c0_281] : memref<1x100x16x128xf32, #tpu.memory_space<vmem>>, vector<1x1x16x128xf32>
    %737 = vector.shape_cast %736 : vector<1x1x16x128xf32> to vector<16x128xf32>
    %738 = vector.shape_cast %734 : vector<16x128xf32> to vector<1x1x16x128xf32>
    tpu.vector_store %arg2[%c0_280, %c77, %735, %c0_281], %738 {strides = array<i32>} : memref<1x100x16x128xf32, #tpu.memory_space<vmem>>, vector<1x1x16x128xf32>,
    %739 = arith.mulf %733, %680 : vector<16x128xf32>
    %c0_282 = arith.constant 0 : index
    %c67 = arith.constant 67 : index
    %740 = arith.index_cast %3 : i32 to index
    %c0_283 = arith.constant 0 : index
    %741 = vector.load %arg2[%c0_282, %c67, %740, %c0_283] : memref<1x100x16x128xf32, #tpu.memory_space<vmem>>, vector<1x1x16x128xf32>
    %742 = vector.shape_cast %741 : vector<1x1x16x128xf32> to vector<16x128xf32>
    %743 = vector.shape_cast %739 : vector<16x128xf32> to vector<1x1x16x128xf32>
    tpu.vector_store %arg2[%c0_282, %c67, %740, %c0_283], %743 {strides = array<i32>} : memref<1x100x16x128xf32, #tpu.memory_space<vmem>>, vector<1x1x16x128xf32>,
    %cst_284 = arith.constant 4.250000e+00 : f32
    %744 = vector.broadcast %cst_284 : f32 to vector<16x128xf32>
    %745 = arith.mulf %744, %14 : vector<16x128xf32>
    %746 = arith.mulf %745, %731 : vector<16x128xf32>
    %cst_285 = arith.constant 3.250000e+00 : f32
    %747 = vector.broadcast %cst_285 : f32 to vector<16x128xf32>
    %748 = arith.mulf %747, %713 : vector<16x128xf32>
    %749 = arith.subf %746, %748 : vector<16x128xf32>
    %cst_286 = arith.constant 2.88528227E-5 : f32
    %750 = vector.broadcast %cst_286 : f32 to vector<16x128xf32>
    %751 = arith.mulf %750, %749 : vector<16x128xf32>
    %752 = arith.mulf %751, %677 : vector<16x128xf32>
    %c0_287 = arith.constant 0 : index
    %c95 = arith.constant 95 : index
    %753 = arith.index_cast %3 : i32 to index
    %c0_288 = arith.constant 0 : index
    %754 = vector.load %arg2[%c0_287, %c95, %753, %c0_288] : memref<1x100x16x128xf32, #tpu.memory_space<vmem>>, vector<1x1x16x128xf32>
    %755 = vector.shape_cast %754 : vector<1x1x16x128xf32> to vector<16x128xf32>
    %756 = vector.shape_cast %752 : vector<16x128xf32> to vector<1x1x16x128xf32>
    tpu.vector_store %arg2[%c0_287, %c95, %753, %c0_288], %756 {strides = array<i32>} : memref<1x100x16x128xf32, #tpu.memory_space<vmem>>, vector<1x1x16x128xf32>,
    %757 = arith.mulf %751, %680 : vector<16x128xf32>
    %c0_289 = arith.constant 0 : index
    %c85 = arith.constant 85 : index
    %758 = arith.index_cast %3 : i32 to index
    %c0_290 = arith.constant 0 : index
    %759 = vector.load %arg2[%c0_289, %c85, %758, %c0_290] : memref<1x100x16x128xf32, #tpu.memory_space<vmem>>, vector<1x1x16x128xf32>
    %760 = vector.shape_cast %759 : vector<1x1x16x128xf32> to vector<16x128xf32>
    %761 = vector.shape_cast %757 : vector<16x128xf32> to vector<1x1x16x128xf32>
    tpu.vector_store %arg2[%c0_289, %c85, %758, %c0_290], %761 {strides = array<i32>} : memref<1x100x16x128xf32, #tpu.memory_space<vmem>>, vector<1x1x16x128xf32>,
    %cst_291 = arith.constant 1.100000e+01 : f32
    %762 = vector.broadcast %cst_291 : f32 to vector<16x128xf32>
    %763 = arith.mulf %762, %15 : vector<16x128xf32>
    %764 = arith.mulf %763, %674 : vector<16x128xf32>
    %765 = arith.mulf %677, %16 : vector<16x128xf32>
    %766 = arith.mulf %680, %17 : vector<16x128xf32>
    %767 = arith.subf %765, %766 : vector<16x128xf32>
    %768 = arith.mulf %680, %16 : vector<16x128xf32>
    %769 = arith.mulf %677, %17 : vector<16x128xf32>
    %770 = arith.addf %768, %769 : vector<16x128xf32>
    %cst_292 = arith.constant 6.5722379E-5 : f32
    %771 = vector.broadcast %cst_292 : f32 to vector<16x128xf32>
    %772 = arith.mulf %771, %764 : vector<16x128xf32>
    %773 = arith.mulf %772, %767 : vector<16x128xf32>
    %c0_293 = arith.constant 0 : index
    %c48 = arith.constant 48 : index
    %774 = arith.index_cast %3 : i32 to index
    %c0_294 = arith.constant 0 : index
    %775 = vector.load %arg2[%c0_293, %c48, %774, %c0_294] : memref<1x100x16x128xf32, #tpu.memory_space<vmem>>, vector<1x1x16x128xf32>
    %776 = vector.shape_cast %775 : vector<1x1x16x128xf32> to vector<16x128xf32>
    %777 = vector.shape_cast %773 : vector<16x128xf32> to vector<1x1x16x128xf32>
    tpu.vector_store %arg2[%c0_293, %c48, %774, %c0_294], %777 {strides = array<i32>} : memref<1x100x16x128xf32, #tpu.memory_space<vmem>>, vector<1x1x16x128xf32>,
    %778 = arith.mulf %772, %770 : vector<16x128xf32>
    %c0_295 = arith.constant 0 : index
    %c36 = arith.constant 36 : index
    %779 = arith.index_cast %3 : i32 to index
    %c0_296 = arith.constant 0 : index
    %780 = vector.load %arg2[%c0_295, %c36, %779, %c0_296] : memref<1x100x16x128xf32, #tpu.memory_space<vmem>>, vector<1x1x16x128xf32>
    %781 = vector.shape_cast %780 : vector<1x1x16x128xf32> to vector<16x128xf32>
    %782 = vector.shape_cast %778 : vector<16x128xf32> to vector<1x1x16x128xf32>
    tpu.vector_store %arg2[%c0_295, %c36, %779, %c0_296], %782 {strides = array<i32>} : memref<1x100x16x128xf32, #tpu.memory_space<vmem>>, vector<1x1x16x128xf32>,
    %cst_297 = arith.constant 1.300000e+01 : f32
    %783 = vector.broadcast %cst_297 : f32 to vector<16x128xf32>
    %784 = arith.mulf %783, %14 : vector<16x128xf32>
    %785 = arith.mulf %784, %764 : vector<16x128xf32>
    %cst_298 = arith.constant 1.95801276E-5 : f32
    %786 = vector.broadcast %cst_298 : f32 to vector<16x128xf32>
    %787 = arith.mulf %786, %785 : vector<16x128xf32>
    %788 = arith.mulf %787, %767 : vector<16x128xf32>
    %c0_299 = arith.constant 0 : index
    %c62 = arith.constant 62 : index
    %789 = arith.index_cast %3 : i32 to index
    %c0_300 = arith.constant 0 : index
    %790 = vector.load %arg2[%c0_299, %c62, %789, %c0_300] : memref<1x100x16x128xf32, #tpu.memory_space<vmem>>, vector<1x1x16x128xf32>
    %791 = vector.shape_cast %790 : vector<1x1x16x128xf32> to vector<16x128xf32>
    %792 = vector.shape_cast %788 : vector<16x128xf32> to vector<1x1x16x128xf32>
    tpu.vector_store %arg2[%c0_299, %c62, %789, %c0_300], %792 {strides = array<i32>} : memref<1x100x16x128xf32, #tpu.memory_space<vmem>>, vector<1x1x16x128xf32>,
    %793 = arith.mulf %787, %770 : vector<16x128xf32>
    %c0_301 = arith.constant 0 : index
    %c50 = arith.constant 50 : index
    %794 = arith.index_cast %3 : i32 to index
    %c0_302 = arith.constant 0 : index
    %795 = vector.load %arg2[%c0_301, %c50, %794, %c0_302] : memref<1x100x16x128xf32, #tpu.memory_space<vmem>>, vector<1x1x16x128xf32>
    %796 = vector.shape_cast %795 : vector<1x1x16x128xf32> to vector<16x128xf32>
    %797 = vector.shape_cast %793 : vector<16x128xf32> to vector<1x1x16x128xf32>
    tpu.vector_store %arg2[%c0_301, %c50, %794, %c0_302], %797 {strides = array<i32>} : memref<1x100x16x128xf32, #tpu.memory_space<vmem>>, vector<1x1x16x128xf32>,
    %cst_303 = arith.constant 7.500000e+00 : f32
    %798 = vector.broadcast %cst_303 : f32 to vector<16x128xf32>
    %799 = arith.mulf %798, %14 : vector<16x128xf32>
    %800 = arith.mulf %799, %785 : vector<16x128xf32>
    %cst_304 = arith.constant 6.500000e+00 : f32
    %801 = vector.broadcast %cst_304 : f32 to vector<16x128xf32>
    %802 = arith.mulf %801, %764 : vector<16x128xf32>
    %803 = arith.subf %800, %802 : vector<16x128xf32>
    %cst_305 = arith.constant 7.87853241E-6 : f32
    %804 = vector.broadcast %cst_305 : f32 to vector<16x128xf32>
    %805 = arith.mulf %804, %803 : vector<16x128xf32>
    %806 = arith.mulf %805, %767 : vector<16x128xf32>
    %c0_306 = arith.constant 0 : index
    %c78 = arith.constant 78 : index
    %807 = arith.index_cast %3 : i32 to index
    %c0_307 = arith.constant 0 : index
    %808 = vector.load %arg2[%c0_306, %c78, %807, %c0_307] : memref<1x100x16x128xf32, #tpu.memory_space<vmem>>, vector<1x1x16x128xf32>
    %809 = vector.shape_cast %808 : vector<1x1x16x128xf32> to vector<16x128xf32>
    %810 = vector.shape_cast %806 : vector<16x128xf32> to vector<1x1x16x128xf32>
    tpu.vector_store %arg2[%c0_306, %c78, %807, %c0_307], %810 {strides = array<i32>} : memref<1x100x16x128xf32, #tpu.memory_space<vmem>>, vector<1x1x16x128xf32>,
    %811 = arith.mulf %805, %770 : vector<16x128xf32>
    %c0_308 = arith.constant 0 : index
    %c66 = arith.constant 66 : index
    %812 = arith.index_cast %3 : i32 to index
    %c0_309 = arith.constant 0 : index
    %813 = vector.load %arg2[%c0_308, %c66, %812, %c0_309] : memref<1x100x16x128xf32, #tpu.memory_space<vmem>>, vector<1x1x16x128xf32>
    %814 = vector.shape_cast %813 : vector<1x1x16x128xf32> to vector<16x128xf32>
    %815 = vector.shape_cast %811 : vector<16x128xf32> to vector<1x1x16x128xf32>
    tpu.vector_store %arg2[%c0_308, %c66, %812, %c0_309], %815 {strides = array<i32>} : memref<1x100x16x128xf32, #tpu.memory_space<vmem>>, vector<1x1x16x128xf32>,
    %cst_310 = arith.constant 5.66666651 : f32
    %816 = vector.broadcast %cst_310 : f32 to vector<16x128xf32>
    %817 = arith.mulf %816, %14 : vector<16x128xf32>
    %818 = arith.mulf %817, %803 : vector<16x128xf32>
    %cst_311 = arith.constant 4.66666651 : f32
    %819 = vector.broadcast %cst_311 : f32 to vector<16x128xf32>
    %820 = arith.mulf %819, %785 : vector<16x128xf32>
    %821 = arith.subf %818, %820 : vector<16x128xf32>
    %cst_312 = arith.constant 3.72488353E-6 : f32
    %822 = vector.broadcast %cst_312 : f32 to vector<16x128xf32>
    %823 = arith.mulf %822, %821 : vector<16x128xf32>
    %824 = arith.mulf %823, %767 : vector<16x128xf32>
    %c0_313 = arith.constant 0 : index
    %c96 = arith.constant 96 : index
    %825 = arith.index_cast %3 : i32 to index
    %c0_314 = arith.constant 0 : index
    %826 = vector.load %arg2[%c0_313, %c96, %825, %c0_314] : memref<1x100x16x128xf32, #tpu.memory_space<vmem>>, vector<1x1x16x128xf32>
    %827 = vector.shape_cast %826 : vector<1x1x16x128xf32> to vector<16x128xf32>
    %828 = vector.shape_cast %824 : vector<16x128xf32> to vector<1x1x16x128xf32>
    tpu.vector_store %arg2[%c0_313, %c96, %825, %c0_314], %828 {strides = array<i32>} : memref<1x100x16x128xf32, #tpu.memory_space<vmem>>, vector<1x1x16x128xf32>,
    %829 = arith.mulf %823, %770 : vector<16x128xf32>
    %c0_315 = arith.constant 0 : index
    %c84 = arith.constant 84 : index
    %830 = arith.index_cast %3 : i32 to index
    %c0_316 = arith.constant 0 : index
    %831 = vector.load %arg2[%c0_315, %c84, %830, %c0_316] : memref<1x100x16x128xf32, #tpu.memory_space<vmem>>, vector<1x1x16x128xf32>
    %832 = vector.shape_cast %831 : vector<1x1x16x128xf32> to vector<16x128xf32>
    %833 = vector.shape_cast %829 : vector<16x128xf32> to vector<1x1x16x128xf32>
    tpu.vector_store %arg2[%c0_315, %c84, %830, %c0_316], %833 {strides = array<i32>} : memref<1x100x16x128xf32, #tpu.memory_space<vmem>>, vector<1x1x16x128xf32>,
    %cst_317 = arith.constant 1.300000e+01 : f32
    %834 = vector.broadcast %cst_317 : f32 to vector<16x128xf32>
    %835 = arith.mulf %834, %15 : vector<16x128xf32>
    %836 = arith.mulf %835, %764 : vector<16x128xf32>
    %837 = arith.mulf %767, %16 : vector<16x128xf32>
    %838 = arith.mulf %770, %17 : vector<16x128xf32>
    %839 = arith.subf %837, %838 : vector<16x128xf32>
    %840 = arith.mulf %770, %16 : vector<16x128xf32>
    %841 = arith.mulf %767, %17 : vector<16x128xf32>
    %842 = arith.addf %840, %841 : vector<16x128xf32>
    %cst_318 = arith.constant 5.23300923E-6 : f32
    %843 = vector.broadcast %cst_318 : f32 to vector<16x128xf32>
    %844 = arith.mulf %843, %836 : vector<16x128xf32>
    %845 = arith.mulf %844, %839 : vector<16x128xf32>
    %c0_319 = arith.constant 0 : index
    %c63 = arith.constant 63 : index
    %846 = arith.index_cast %3 : i32 to index
    %c0_320 = arith.constant 0 : index
    %847 = vector.load %arg2[%c0_319, %c63, %846, %c0_320] : memref<1x100x16x128xf32, #tpu.memory_space<vmem>>, vector<1x1x16x128xf32>
    %848 = vector.shape_cast %847 : vector<1x1x16x128xf32> to vector<16x128xf32>
    %849 = vector.shape_cast %845 : vector<16x128xf32> to vector<1x1x16x128xf32>
    tpu.vector_store %arg2[%c0_319, %c63, %846, %c0_320], %849 {strides = array<i32>} : memref<1x100x16x128xf32, #tpu.memory_space<vmem>>, vector<1x1x16x128xf32>,
    %850 = arith.mulf %844, %842 : vector<16x128xf32>
    %c0_321 = arith.constant 0 : index
    %c49 = arith.constant 49 : index
    %851 = arith.index_cast %3 : i32 to index
    %c0_322 = arith.constant 0 : index
    %852 = vector.load %arg2[%c0_321, %c49, %851, %c0_322] : memref<1x100x16x128xf32, #tpu.memory_space<vmem>>, vector<1x1x16x128xf32>
    %853 = vector.shape_cast %852 : vector<1x1x16x128xf32> to vector<16x128xf32>
    %854 = vector.shape_cast %850 : vector<16x128xf32> to vector<1x1x16x128xf32>
    tpu.vector_store %arg2[%c0_321, %c49, %851, %c0_322], %854 {strides = array<i32>} : memref<1x100x16x128xf32, #tpu.memory_space<vmem>>, vector<1x1x16x128xf32>,
    %cst_323 = arith.constant 1.500000e+01 : f32
    %855 = vector.broadcast %cst_323 : f32 to vector<16x128xf32>
    %856 = arith.mulf %855, %14 : vector<16x128xf32>
    %857 = arith.mulf %856, %836 : vector<16x128xf32>
    %cst_324 = arith.constant 1.43841669E-6 : f32
    %858 = vector.broadcast %cst_324 : f32 to vector<16x128xf32>
    %859 = arith.mulf %858, %857 : vector<16x128xf32>
    %860 = arith.mulf %859, %839 : vector<16x128xf32>
    %c0_325 = arith.constant 0 : index
    %c79 = arith.constant 79 : index
    %861 = arith.index_cast %3 : i32 to index
    %c0_326 = arith.constant 0 : index
    %862 = vector.load %arg2[%c0_325, %c79, %861, %c0_326] : memref<1x100x16x128xf32, #tpu.memory_space<vmem>>, vector<1x1x16x128xf32>
    %863 = vector.shape_cast %862 : vector<1x1x16x128xf32> to vector<16x128xf32>
    %864 = vector.shape_cast %860 : vector<16x128xf32> to vector<1x1x16x128xf32>
    tpu.vector_store %arg2[%c0_325, %c79, %861, %c0_326], %864 {strides = array<i32>} : memref<1x100x16x128xf32, #tpu.memory_space<vmem>>, vector<1x1x16x128xf32>,
    %865 = arith.mulf %859, %842 : vector<16x128xf32>
    %c0_327 = arith.constant 0 : index
    %c65 = arith.constant 65 : index
    %866 = arith.index_cast %3 : i32 to index
    %c0_328 = arith.constant 0 : index
    %867 = vector.load %arg2[%c0_327, %c65, %866, %c0_328] : memref<1x100x16x128xf32, #tpu.memory_space<vmem>>, vector<1x1x16x128xf32>
    %868 = vector.shape_cast %867 : vector<1x1x16x128xf32> to vector<16x128xf32>
    %869 = vector.shape_cast %865 : vector<16x128xf32> to vector<1x1x16x128xf32>
    tpu.vector_store %arg2[%c0_327, %c65, %866, %c0_328], %869 {strides = array<i32>} : memref<1x100x16x128xf32, #tpu.memory_space<vmem>>, vector<1x1x16x128xf32>,
    %cst_329 = arith.constant 8.500000e+00 : f32
    %870 = vector.broadcast %cst_329 : f32 to vector<16x128xf32>
    %871 = arith.mulf %870, %14 : vector<16x128xf32>
    %872 = arith.mulf %871, %857 : vector<16x128xf32>
    %cst_330 = arith.constant 7.500000e+00 : f32
    %873 = vector.broadcast %cst_330 : f32 to vector<16x128xf32>
    %874 = arith.mulf %873, %836 : vector<16x128xf32>
    %875 = arith.subf %872, %874 : vector<16x128xf32>
    %cst_331 = arith.constant 5.37640631E-7 : f32
    %876 = vector.broadcast %cst_331 : f32 to vector<16x128xf32>
    %877 = arith.mulf %876, %875 : vector<16x128xf32>
    %878 = arith.mulf %877, %839 : vector<16x128xf32>
    %c0_332 = arith.constant 0 : index
    %c97 = arith.constant 97 : index
    %879 = arith.index_cast %3 : i32 to index
    %c0_333 = arith.constant 0 : index
    %880 = vector.load %arg2[%c0_332, %c97, %879, %c0_333] : memref<1x100x16x128xf32, #tpu.memory_space<vmem>>, vector<1x1x16x128xf32>
    %881 = vector.shape_cast %880 : vector<1x1x16x128xf32> to vector<16x128xf32>
    %882 = vector.shape_cast %878 : vector<16x128xf32> to vector<1x1x16x128xf32>
    tpu.vector_store %arg2[%c0_332, %c97, %879, %c0_333], %882 {strides = array<i32>} : memref<1x100x16x128xf32, #tpu.memory_space<vmem>>, vector<1x1x16x128xf32>,
    %883 = arith.mulf %877, %842 : vector<16x128xf32>
    %c0_334 = arith.constant 0 : index
    %c83 = arith.constant 83 : index
    %884 = arith.index_cast %3 : i32 to index
    %c0_335 = arith.constant 0 : index
    %885 = vector.load %arg2[%c0_334, %c83, %884, %c0_335] : memref<1x100x16x128xf32, #tpu.memory_space<vmem>>, vector<1x1x16x128xf32>
    %886 = vector.shape_cast %885 : vector<1x1x16x128xf32> to vector<16x128xf32>
    %887 = vector.shape_cast %883 : vector<16x128xf32> to vector<1x1x16x128xf32>
    tpu.vector_store %arg2[%c0_334, %c83, %884, %c0_335], %887 {strides = array<i32>} : memref<1x100x16x128xf32, #tpu.memory_space<vmem>>, vector<1x1x16x128xf32>,
    %cst_336 = arith.constant 1.500000e+01 : f32
    %888 = vector.broadcast %cst_336 : f32 to vector<16x128xf32>
    %889 = arith.mulf %888, %15 : vector<16x128xf32>
    %890 = arith.mulf %889, %836 : vector<16x128xf32>
    %891 = arith.mulf %839, %16 : vector<16x128xf32>
    %892 = arith.mulf %842, %17 : vector<16x128xf32>
    %893 = arith.subf %891, %892 : vector<16x128xf32>
    %894 = arith.mulf %842, %16 : vector<16x128xf32>
    %895 = arith.mulf %839, %17 : vector<16x128xf32>
    %896 = arith.addf %894, %895 : vector<16x128xf32>
    %cst_337 = arith.constant 3.59604172E-7 : f32
    %897 = vector.broadcast %cst_337 : f32 to vector<16x128xf32>
    %898 = arith.mulf %897, %890 : vector<16x128xf32>
    %899 = arith.mulf %898, %893 : vector<16x128xf32>
    %c0_338 = arith.constant 0 : index
    %c80 = arith.constant 80 : index
    %900 = arith.index_cast %3 : i32 to index
    %c0_339 = arith.constant 0 : index
    %901 = vector.load %arg2[%c0_338, %c80, %900, %c0_339] : memref<1x100x16x128xf32, #tpu.memory_space<vmem>>, vector<1x1x16x128xf32>
    %902 = vector.shape_cast %901 : vector<1x1x16x128xf32> to vector<16x128xf32>
    %903 = vector.shape_cast %899 : vector<16x128xf32> to vector<1x1x16x128xf32>
    tpu.vector_store %arg2[%c0_338, %c80, %900, %c0_339], %903 {strides = array<i32>} : memref<1x100x16x128xf32, #tpu.memory_space<vmem>>, vector<1x1x16x128xf32>,
    %904 = arith.mulf %898, %896 : vector<16x128xf32>
    %c0_340 = arith.constant 0 : index
    %c64 = arith.constant 64 : index
    %905 = arith.index_cast %3 : i32 to index
    %c0_341 = arith.constant 0 : index
    %906 = vector.load %arg2[%c0_340, %c64, %905, %c0_341] : memref<1x100x16x128xf32, #tpu.memory_space<vmem>>, vector<1x1x16x128xf32>
    %907 = vector.shape_cast %906 : vector<1x1x16x128xf32> to vector<16x128xf32>
    %908 = vector.shape_cast %904 : vector<16x128xf32> to vector<1x1x16x128xf32>
    tpu.vector_store %arg2[%c0_340, %c64, %905, %c0_341], %908 {strides = array<i32>} : memref<1x100x16x128xf32, #tpu.memory_space<vmem>>, vector<1x1x16x128xf32>,
    %cst_342 = arith.constant 1.700000e+01 : f32
    %909 = vector.broadcast %cst_342 : f32 to vector<16x128xf32>
    %910 = arith.mulf %909, %14 : vector<16x128xf32>
    %911 = arith.mulf %910, %890 : vector<16x128xf32>
    %cst_343 = arith.constant 9.220460e-08 : f32
    %912 = vector.broadcast %cst_343 : f32 to vector<16x128xf32>
    %913 = arith.mulf %912, %911 : vector<16x128xf32>
    %914 = arith.mulf %913, %893 : vector<16x128xf32>
    %c0_344 = arith.constant 0 : index
    %c98 = arith.constant 98 : index
    %915 = arith.index_cast %3 : i32 to index
    %c0_345 = arith.constant 0 : index
    %916 = vector.load %arg2[%c0_344, %c98, %915, %c0_345] : memref<1x100x16x128xf32, #tpu.memory_space<vmem>>, vector<1x1x16x128xf32>
    %917 = vector.shape_cast %916 : vector<1x1x16x128xf32> to vector<16x128xf32>
    %918 = vector.shape_cast %914 : vector<16x128xf32> to vector<1x1x16x128xf32>
    tpu.vector_store %arg2[%c0_344, %c98, %915, %c0_345], %918 {strides = array<i32>} : memref<1x100x16x128xf32, #tpu.memory_space<vmem>>, vector<1x1x16x128xf32>,
    %919 = arith.mulf %913, %896 : vector<16x128xf32>
    %c0_346 = arith.constant 0 : index
    %c82 = arith.constant 82 : index
    %920 = arith.index_cast %3 : i32 to index
    %c0_347 = arith.constant 0 : index
    %921 = vector.load %arg2[%c0_346, %c82, %920, %c0_347] : memref<1x100x16x128xf32, #tpu.memory_space<vmem>>, vector<1x1x16x128xf32>
    %922 = vector.shape_cast %921 : vector<1x1x16x128xf32> to vector<16x128xf32>
    %923 = vector.shape_cast %919 : vector<16x128xf32> to vector<1x1x16x128xf32>
    tpu.vector_store %arg2[%c0_346, %c82, %920, %c0_347], %923 {strides = array<i32>} : memref<1x100x16x128xf32, #tpu.memory_space<vmem>>, vector<1x1x16x128xf32>,
    %cst_348 = arith.constant 1.700000e+01 : f32
    %924 = vector.broadcast %cst_348 : f32 to vector<16x128xf32>
    %925 = arith.mulf %924, %15 : vector<16x128xf32>
    %926 = arith.mulf %925, %890 : vector<16x128xf32>
    %927 = arith.mulf %893, %16 : vector<16x128xf32>
    %928 = arith.mulf %896, %17 : vector<16x128xf32>
    %929 = arith.subf %927, %928 : vector<16x128xf32>
    %930 = arith.mulf %896, %16 : vector<16x128xf32>
    %931 = arith.mulf %893, %17 : vector<16x128xf32>
    %932 = arith.addf %930, %931 : vector<16x128xf32>
    %cst_349 = arith.constant 2.17328342E-8 : f32
    %933 = vector.broadcast %cst_349 : f32 to vector<16x128xf32>
    %934 = arith.mulf %933, %926 : vector<16x128xf32>
    %935 = arith.mulf %934, %929 : vector<16x128xf32>
    %c0_350 = arith.constant 0 : index
    %c99 = arith.constant 99 : index
    %936 = arith.index_cast %3 : i32 to index
    %c0_351 = arith.constant 0 : index
    %937 = vector.load %arg2[%c0_350, %c99, %936, %c0_351] : memref<1x100x16x128xf32, #tpu.memory_space<vmem>>, vector<1x1x16x128xf32>
    %938 = vector.shape_cast %937 : vector<1x1x16x128xf32> to vector<16x128xf32>
    %939 = vector.shape_cast %935 : vector<16x128xf32> to vector<1x1x16x128xf32>
    tpu.vector_store %arg2[%c0_350, %c99, %936, %c0_351], %939 {strides = array<i32>} : memref<1x100x16x128xf32, #tpu.memory_space<vmem>>, vector<1x1x16x128xf32>,
    %940 = arith.mulf %934, %932 : vector<16x128xf32>
    %c0_352 = arith.constant 0 : index
    %c81 = arith.constant 81 : index
    %941 = arith.index_cast %3 : i32 to index
    %c0_353 = arith.constant 0 : index
    %942 = vector.load %arg2[%c0_352, %c81, %941, %c0_353] : memref<1x100x16x128xf32, #tpu.memory_space<vmem>>, vector<1x1x16x128xf32>
    %943 = vector.shape_cast %942 : vector<1x1x16x128xf32> to vector<16x128xf32>
    %944 = vector.shape_cast %940 : vector<16x128xf32> to vector<1x1x16x128xf32>
    tpu.vector_store %arg2[%c0_352, %c81, %941, %c0_353], %944 {strides = array<i32>} : memref<1x100x16x128xf32, #tpu.memory_space<vmem>>, vector<1x1x16x128xf32>,
    %c1_i32_354 = arith.constant 1 : i32
    return
  }
  func.func @transform_0(%arg0: i32) -> (i32, i32, i32) {
    %c0_i32 = arith.constant 0 : i32
    %c0_i32_0 = arith.constant 0 : i32
    %c0_i32_1 = arith.constant 0 : i32
    return %c0_i32, %arg0, %c0_i32_0 : i32, i32, i32
  }
  func.func @transform_1(%arg0: i32) -> (i32, i32, i32, i32) {
    %c0_i32 = arith.constant 0 : i32
    %c0_i32_0 = arith.constant 0 : i32
    %c0_i32_1 = arith.constant 0 : i32
    %c0_i32_2 = arith.constant 0 : i32
    return %arg0, %c0_i32, %c0_i32_0, %c0_i32_1 : i32, i32, i32, i32
  }
}

</mosaic_0001>

<bundles_post_ra>
// kernel: tpu_custom_call.1
= control target key start
LH: loop header
LB: loop body
LE: loop exit
PB: predicated region body
PF: predicated region fallthrough
CT: control target
= control target key end

     0   :  { %6 = vsyncpa [#allocation3], 0  ;;  %s3358_s0 = inlined_call_operand.hbm [shape: f32[2,16,128], index: 0, kind: input, shape index: {}]   ;;  %s3359_s1 = inlined_call_operand.hbm [shape: f32[1,100,16,128], index: 1, kind: output, shape index: {}]  }
   0x1   :  { %7 = vsyncpa [#allocation4], 0  ;;  %s2234_s6 = smov [#allocation2]   ;;  %s2186_s10 = scalar_lea.hbm %s3358_s0, 512 }
   0x2   :  { %s13_s7 = sshll.u32 %s2234_s6, 4  ;;  %p2187_p0 = scmp.ne.s32.totalorder %s3358_s0, %s2186_s10  ;;  %s14_s7 = int_to_ptr.vmem [resolvable:$true] %s13_s7 }
   0x3   :  { %p2190_p1 = scmp.lt.u32.totalorder %s2186_s10, %s3358_s0 }
   0x5   :  { %p2192_p2 = pnand %p2190_p1, %p2187_p0 }
   0x7   :  { %2195 = shalt.err (!%p2192_p2)
}
   0x8   :  { %s2196_s15 = scalar_lea.vmem %s14_s7, 512  ;;  %p2201_p4 = scmp.lt.s32.totalorder %s14_s7, %s14_s7 }
   0x9   :  { %p2197_p3 = scmp.ne.s32.totalorder %s14_s7, %s2196_s15  ;;  %p2202_p5 = scmp.lt.s32.totalorder %s2196_s15, %s2196_s15 }
   0xb   :  { %p2203_p6 = por %p2202_p5, %p2201_p4 }
   0xd   :  { %p2204_p7 = pnand %p2203_p6, %p2197_p3 }
   0xf   :  { %2207 = shalt.err (!%p2204_p7)
}
  0x10   :  { %s2235_s16 = smov 128   ;;  %s2236_s17 = smov 8  }
  0x11   :  { %19 = dma.hbm_to_vmem [thread:$0]  %s3358_s0, 512, %s14_s7, [#allocation3], %s2235_s16, %s2235_s16, %s2236_s17  }
  0x12   :  { %2230 = dma.done.wait [#allocation3], 512  }
  0x13   :  { %2231 = vsyncadd [#allocation3], 4294966784  ;;  %v2237_v0 = vmov 0.2820948   ;;  %v29_v1 = vld [vmem:[#allocation2 + $0x10] sm:$0xff]  ;;  %v30_v2 = vld [vmem:[#allocation2 + $0x18] sm:$0xff] }
  0x14   :  { %861 = vst [vmem:[#allocation5] sm:$0xff] %v2237_v0  ;;  %862 = vst [vmem:[#allocation5 + $0x8] sm:$0xff] %v2237_v0  ;;  %v23_v3 = vld [vmem:[#allocation2] sm:$0xff]  ;;  %v2270_v4 = vmul.f32 0.017453292, %v29_v1  ;;  %s2244_s0 = smov [#allocation5]  }
  0x15   :  { %v2272_v5 = vmul.f32 0.017453292, %v30_v2  ;;  %v2274_v6 = vmul.f32 0.017453292, %v23_v3  ;;  %v2238_v34 = vmov 683565275  }
  0x16   :  { %v33_v7 = vand.u32 2147483647, %v2270_v4  ;;  %v36_v8 = vand.u32 2139095040, %v2270_v4  ;;  %v2239_v36 = vmov 2475754826   ;;  %vm35_vm13 = vcmp.lt.s32.totalorder %v2270_v4, 0 }
  0x17   :  { %v136_v9 = vand.u32 2147483647, %v2272_v5  ;;  %v139_v10 = vand.u32 2139095040, %v2272_v5  ;;  %v450_v15 = vand.u32 2139095040, %v2274_v6  ;;  %v447_v28 = vand.u32 2147483647, %v2274_v6 }
  0x18   :  { %v37_v11 = vshrl.u32 %v36_v8, 23  ;;  %v40_v12 = vand.u32 8388607, %v33_v7  ;;  %v2240_v38 = vmov 2131351028   ;;  %s1997_s20 = sshll.u32 %s2244_s0, 4  ;;  %s1998_s20 = int_to_ptr.vmem [resolvable:$true] %s1997_s20 }
  0x19   :  { %v140_v13 = vshrl.u32 %v139_v10, 23  ;;  %v143_v14 = vand.u32 8388607, %v136_v9  ;;  %v451_v18 = vshrl.u32 %v450_v15, 23  ;;  %v2241_v40 = vmov 2102212464   ;;  %p2213_p9 = scmp.lt.s32.totalorder %s1998_s20, %s1998_s20 }
  0x1a   :  { %v2109_v16 = vadd.s32 4294967169, %v37_v11  ;;  %v41_v20 = vor.u32 8388608, %v40_v12  ;;  %v2242_v42 = vmov 920167782   ;;  %v2243_v50 = vmov 1326507024  }
  0x1b   :  { %v2113_v17 = vadd.s32 4294967169, %v140_v13  ;;  %v144_v21 = vor.u32 8388608, %v143_v14  ;;  %v2125_v23 = vadd.s32 4294967169, %v451_v18  ;;  %s2208_s21 = scalar_lea.vmem %s1998_s20, 25600 }
  0x1c   :  { %v43_v19 = vadd.s32 1, %v2109_v16  ;;  %v2286_v29 = vshll.u32 %v41_v20, 8  ;;  %p2209_p8 = scmp.ne.s32.totalorder %s1998_s20, %s2208_s21  ;;  %p2214_p10 = scmp.lt.s32.totalorder %s2208_s21, %s2208_s21 }
  0x1d   :  { %v146_v22 = vadd.s32 1, %v2113_v17  ;;  %v2288_v31 = vshll.u32 %v144_v21, 8  ;;  %v2290_v32 = vadd.s32 1, %v2125_v23 }
  0x1e   :  { %vm44_vm0 = vcmp.gt.s32.totalorder %v43_v19, 0  ;;  %p2215_p11 = por %p2214_p10, %p2213_p9 }
  0x1f   :  { %v45_v24 = vsel %vm44_vm0, %v43_v19, 0  ;;  %vm147_vm1 = vcmp.gt.s32.totalorder %v146_v22, 0  ;;  %vm458_vm6 = vcmp.gt.s32.totalorder %v2290_v32, 0 }
  0x20   :  { %v46_v25 = vshrl.u32 %v45_v24, 5  ;;  %v47_v26 = vand.u32 31, %v45_v24  ;;  %v148_v27 = vsel %vm147_vm1, %v146_v22, 0  ;;  %vm2400_vm1 = vcmp.le.f32.partialorder %v33_v7, 0.7853982  ;;  %p2216_p12 = pnand %p2215_p11, %p2209_p8 }
  0x21   :  { %v150_v30 = vand.u32 31, %v148_v27  ;;  %v2297_v44 = vshrl.u32 %v148_v27, 5 }
  0x22   :  { %v48_v33 = vsub.s32 32, %v47_v26  ;;  %v50_v35 = vshll.u32 %v2238_v34, %v47_v26  ;;  %v53_v37 = vshll.u32 %v2239_v36, %v47_v26  ;;  %v56_v39 = vshll.u32 %v2240_v38, %v47_v26 }
  0x23   :  { %v59_v41 = vshll.u32 %v2241_v40, %v47_v26  ;;  %v62_v43 = vshll.u32 %v2242_v42, %v47_v26  ;;  %vm65_vm2 = vcmp.lt.s32.totalorder %v46_v25, 1  ;;  %vm66_vm3 = vcmp.lt.s32.totalorder %v46_v25, 2 }
  0x24   :  { %v49_v45 = vshrl.u32 %v2238_v34, %v48_v33  ;;  %v51_v46 = vshrl.u32 %v2239_v36, %v48_v33  ;;  %v54_v47 = vshrl.u32 %v2240_v38, %v48_v33  ;;  %v57_v48 = vshrl.u32 %v2241_v40, %v48_v33 }
  0x25   :  { %v60_v49 = vshrl.u32 %v2242_v42, %v48_v33  ;;  %v63_v51 = vshrl.u32 %v2243_v50, %v48_v33  ;;  %vm68_vm4 = vcmp.lt.s32.totalorder %v46_v25, 4  ;;  %v151_v55 = vsub.s32 32, %v150_v30 }
  0x26   :  { %v52_v52 = vor.u32 %v51_v46, %v50_v35  ;;  %v55_v53 = vor.u32 %v54_v47, %v53_v37  ;;  %v58_v54 = vor.u32 %v57_v48, %v56_v39  ;;  %vm67_vm5 = vcmp.lt.s32.totalorder %v46_v25, 3 }
  0x27   :  { %v61_v56 = vor.u32 %v60_v49, %v59_v41  ;;  %v64_v57 = vor.u32 %v63_v51, %v62_v43  ;;  %v153_v58 = vshll.u32 %v2238_v34, %v150_v30  ;;  %v156_v2 = vshll.u32 %v2239_v36, %v150_v30 }
  0x28   :  { %v69_v59 = vsel %vm65_vm2, %v49_v45, %v52_v52  ;;  %v70_v60 = vsel %vm68_vm4, %v58_v54, 2102212464  ;;  %v73_v61 = vsel %vm65_vm2, %v52_v52, %v55_v53  ;;  %v77_v62 = vsel %vm65_vm2, %v55_v53, %v58_v54 }
  0x29   :  { %v71_v63 = vsel %vm67_vm5, %v55_v53, %v70_v60  ;;  %v74_v0 = vsel %vm68_vm4, %v61_v56, 920167782  ;;  %v78_v1 = vsel %vm68_vm4, %v64_v57, 1326507024  ;;  %v152_v10 = vshrl.u32 %v2238_v34, %v151_v55 }
  0x2a   :  { %v75_v3 = vsel %vm67_vm5, %v58_v54, %v74_v0  ;;  %v79_v8 = vsel %vm67_vm5, %v61_v56, %v78_v1  ;;  %v154_v11 = vshrl.u32 %v2239_v36, %v151_v55  ;;  %v72_v12 = vsel %vm66_vm3, %v69_v59, %v71_v63 }
  0x2b   :  { %v76_v13 = vsel %vm66_vm3, %v73_v61, %v75_v3  ;;  %v80_v14 = vsel %vm66_vm3, %v77_v62, %v79_v8  ;;  %v157_v15 = vshrl.u32 %v2240_v38, %v151_v55  ;;  %v159_v22 = vshll.u32 %v2240_v38, %v150_v30  ;;  %v24_v61 = vld [vmem:[#allocation2 + $0x8] sm:$0xff] }
  0x2c   :  { %v2318_v16 = vmul.u32.u64.low %v2286_v29, %v80_v14  ;;  %v2319_v17 = vmul.u32.u64.high %v2286_v29, %v80_v14, %v2318_v16  ;;  %v2322_v18 = vmul.u32.u64.low %v2286_v29, %v76_v13  ;;  %v2323_v19 = vmul.u32.u64.high %v2286_v29, %v76_v13, %v2322_v18 }
  0x2d   :  { %v155_v20 = vor.u32 %v154_v11, %v153_v58  ;;  %v158_v21 = vor.u32 %v157_v15, %v156_v2  ;;  %v160_v23 = vshrl.u32 %v2241_v40, %v151_v55  ;;  %v162_v24 = vshll.u32 %v2241_v40, %v150_v30 }
  0x2e   :  { %v163_v25 = vshrl.u32 %v2242_v42, %v151_v55  ;;  %v165_v26 = vshll.u32 %v2242_v42, %v150_v30  ;;  %v166_v27 = vshrl.u32 %v2243_v50, %v151_v55  ;;  %v88_v33 = vmul.u32 %v2286_v29, %v72_v12 }
  0x2f   :  { %v161_v35 = vor.u32 %v160_v23, %v159_v22  ;;  %vm168_vm7 = vcmp.lt.s32.totalorder %v2297_v44, 1  ;;  %vm169_vm8 = vcmp.lt.s32.totalorder %v2297_v44, 2  ;;  %vm90_vm9 = vc.u32 %v2319_v17, %v2322_v18 }
  0x30   :  { %v91_v37 = vadd.s32 1, %v2323_v19  ;;  %v164_v39 = vor.u32 %v163_v25, %v162_v24  ;;  %vm170_vm10 = vcmp.lt.s32.totalorder %v2297_v44, 3  ;;  %v167_v41 = vor.u32 %v166_v27, %v165_v26 }
  0x31   :  { %vm171_vm11 = vcmp.lt.s32.totalorder %v2297_v44, 4  ;;  %v172_v30 = vsel %vm168_vm7, %v152_v10, %v155_v20  ;;  %v176_v43 = vsel %vm168_vm7, %v155_v20, %v158_v21  ;;  %v180_v47 = vsel %vm168_vm7, %v158_v21, %v161_v35 }
  0x32   :  { %v92_v29 = vsel %vm90_vm9, %v91_v37, %v2323_v19  ;;  %v173_v45 = vsel %vm171_vm11, %v161_v35, 2102212464  ;;  %v177_v46 = vsel %vm171_vm11, %v164_v39, 920167782  ;;  %v181_v52 = vsel %vm171_vm11, %v167_v41, 1326507024 }
  0x33   :  { %v93_v48 = vadd.s32 %v92_v29, %v88_v33  ;;  %v174_v49 = vsel %vm170_vm10, %v158_v21, %v173_v45  ;;  %v178_v51 = vsel %vm170_vm10, %v161_v35, %v177_v46  ;;  %v182_v55 = vsel %vm170_vm10, %v164_v39, %v181_v52 }
  0x34   :  { %v175_v53 = vsel %vm169_vm8, %v172_v30, %v174_v49  ;;  %v179_v54 = vsel %vm169_vm8, %v176_v43, %v178_v51  ;;  %v459_v56 = vsel %vm458_vm6, %v2290_v32, 0  ;;  %v183_v58 = vsel %vm169_vm8, %v180_v47, %v182_v55 }
  0x35   :  { %v94_v57 = vadd.s32 536870912, %v93_v48  ;;  %v2351_v59 = vmul.u32.u64.low %v2288_v31, %v179_v54  ;;  %v2352_v60 = vmul.u32.u64.high %v2288_v31, %v179_v54, %v2351_v59  ;;  %v461_v1 = vand.u32 31, %v459_v56 }
  0x36   :  { %v2356_v62 = vmul.u32.u64.low %v2288_v31, %v183_v58  ;;  %v2357_v63 = vmul.u32.u64.high %v2288_v31, %v183_v58, %v2356_v62  ;;  %v191_v2 = vmul.u32 %v2288_v31, %v175_v53  ;;  %v454_v32 = vand.u32 8388607, %v447_v28 }
  0x37   :  { %v2359_v0 = vshrl.u32 %v94_v57, 30  ;;  %v2364_v44 = vmul.f32 0.017453292, %v24_v61  ;;  %v194_v8 = vadd.s32 1, %v2352_v60  ;;  %v462_v10 = vsub.s32 32, %v461_v1 }
  0x38   :  { %vm193_vm12 = vc.u32 %v2357_v63, %v2351_v59  ;;  %v455_v14 = vor.u32 8388608, %v454_v32  ;;  %v464_v16 = vshll.u32 %v2238_v34, %v461_v1  ;;  %v467_v21 = vshll.u32 %v2239_v36, %v461_v1 }
  0x39   :  { %v96_v3 = vshll.u32 %v2359_v0, 30  ;;  %v195_v12 = vsel %vm193_vm12, %v194_v8, %v2352_v60  ;;  %v553_v31 = vand.u32 2139095040, %v2364_v44  ;;  %v465_v19 = vshrl.u32 %v2239_v36, %v462_v10 }
  0x3a   :  { %v196_v13 = vadd.s32 %v195_v12, %v191_v2  ;;  %v468_v22 = vshrl.u32 %v2240_v38, %v462_v10  ;;  %v550_v23 = vand.u32 2147483647, %v2364_v44  ;;  %v460_v25 = vshrl.u32 %v459_v56, 5 }
  0x3b   :  { %v2370_v11 = vsub.s32 %v93_v48, %v96_v3  ;;  %v470_v26 = vshll.u32 %v2240_v38, %v461_v1  ;;  %v471_v27 = vshrl.u32 %v2241_v40, %v462_v10  ;;  %v473_v35 = vshll.u32 %v2241_v40, %v461_v1 }
  0x3c   :  { %v197_v20 = vadd.s32 536870912, %v196_v13  ;;  %v2386_v37 = vshll.u32 %v455_v14, 8  ;;  %v554_v39 = vshrl.u32 %v553_v31, 23  ;;  %v89_v41 = vadd.s32 %v2322_v18, %v2319_v17 }
  0x3d   :  { %v99_v15 = vsub.s32 0, %v2370_v11  ;;  %v466_v43 = vor.u32 %v465_v19, %v464_v16  ;;  %v474_v29 = vshrl.u32 %v2242_v42, %v462_v10  ;;  %v469_v46 = vor.u32 %v468_v22, %v467_v21 }
  0x3e   :  { %v2383_v33 = vshrl.u32 %v197_v20, 30  ;;  %v476_v47 = vshll.u32 %v2242_v42, %v461_v1  ;;  %v477_v48 = vshrl.u32 %v2243_v50, %v462_v10  ;;  %v472_v51 = vor.u32 %v471_v27, %v470_v26 }
  0x3f   :  { %v2110_v24 = vmin.u32 %v99_v15, %v2370_v11  ;;  %v475_v52 = vor.u32 %v474_v29, %v473_v35  ;;  %vm479_vm14 = vcmp.lt.s32.totalorder %v460_v25, 1  ;;  %v463_v54 = vshrl.u32 %v2238_v34, %v462_v10 }
  0x40   :  { %v199_v45 = vshll.u32 %v2383_v33, 30  ;;  %vm480_vm15 = vcmp.lt.s32.totalorder %v460_v25, 2  ;;  %vm482_vm0 = vcmp.lt.s32.totalorder %v460_v25, 4  ;;  %v119_v18 = vsub.s32 4, %v2359_v0 }
  0x41   :  { %v101_v30 = vclz %v2110_v24  ;;  %vm481_vm3 = vcmp.lt.s32.totalorder %v460_v25, 3  ;;  %v484_v55 = vsel %vm482_vm0, %v472_v51, 2102212464  ;;  %v478_v58 = vor.u32 %v477_v48, %v476_v47 }
  0x42   :  { %v2395_v53 = vsub.s32 %v196_v13, %v199_v45  ;;  %v487_v60 = vsel %vm479_vm14, %v466_v43, %v469_v46  ;;  %v488_v7 = vsel %vm482_vm0, %v475_v52, 920167782  ;;  %v483_v32 = vsel %vm479_vm14, %v463_v54, %v466_v43 }
  0x43   :  { %v2111_v49 = vadd.s32 4294967294, %v101_v30  ;;  %v485_v3 = vsel %vm481_vm3, %v469_v46, %v484_v55  ;;  %v2129_v8 = vadd.s32 4294967169, %v554_v39  ;;  %v489_v13 = vsel %vm481_vm3, %v472_v51, %v488_v7 }
  0x44   :  { %v202_v57 = vsub.s32 0, %v2395_v53  ;;  %v491_v14 = vsel %vm479_vm14, %v469_v46, %v472_v51  ;;  %vm138_vm4 = vcmp.lt.s32.totalorder %v2272_v5, 0  ;;  %v490_v15 = vsel %vm480_vm15, %v487_v60, %v489_v13 }
  0x45   :  { %vm2112_vm2 = vcmp.lt.s32.totalorder %v2111_v49, 0  ;;  %v492_v16 = vsel %vm482_vm0, %v478_v58, 1326507024  ;;  %v486_v21 = vsel %vm480_vm15, %v483_v32, %v485_v3  ;;  %v192_v29 = vadd.s32 %v2351_v59, %v2357_v63 }
  0x46   :  { %v104_v56 = vsel %vm2112_vm2, 0, %v2111_v49  ;;  %v2114_v2 = vmin.u32 %v202_v57, %v2395_v53  ;;  %v493_v22 = vsel %vm481_vm3, %v475_v52, %v492_v16  ;;  %v222_v25 = vsub.s32 4, %v2383_v33 }
  0x47   :  { %v105_v61 = vsub.s32 32, %v104_v56  ;;  %v106_v62 = vshll.u32 %v2370_v11, %v104_v56  ;;  %v109_v1 = vsub.s32 4294967266, %v104_v56  ;;  %v120_v11 = vsel %vm35_vm13, %v119_v18, %v2359_v0 }
  0x48   :  { %v204_v31 = vclz %v2114_v2  ;;  %v494_v26 = vsel %vm480_vm15, %v491_v14, %v493_v22  ;;  %v2425_v27 = vmul.u32.u64.low %v2386_v37, %v490_v15  ;;  %v2426_v35 = vmul.u32.u64.high %v2386_v37, %v490_v15, %v2425_v27 }
  0x49   :  { %v107_v10 = vshrl.u32 %v89_v41, %v105_v61  ;;  %v110_v12 = vadd.s32 127, %v109_v1  ;;  %v2430_v41 = vmul.u32.u64.low %v2386_v37, %v494_v26  ;;  %v2431_v30 = vmul.u32.u64.high %v2386_v37, %v494_v26, %v2430_v41 }
  0x4a   :  { %v2115_v24 = vadd.s32 4294967294, %v204_v31  ;;  %v122_v43 = vsel %vm2400_vm1, 0, %v120_v11  ;;  %v502_v47 = vmul.u32 %v2386_v37, %v486_v21  ;;  %v560_v48 = vadd.s32 1, %v2129_v8 }
  0x4b   :  { %v108_v19 = vor.u32 %v107_v10, %v106_v62  ;;  %v111_v20 = vshll.u32 %v110_v12, 23  ;;  %v505_v54 = vadd.s32 1, %v2426_v35  ;;  %vm2443_vm6 = vcmp.le.f32.partialorder %v136_v9, 0.7853982 }
  0x4c   :  { %vm2116_vm5 = vcmp.lt.s32.totalorder %v2115_v24, 0  ;;  %v332_v59 = vadd.s32 3, %v122_v43  ;;  %vm504_vm7 = vc.u32 %v2431_v30, %v2425_v27  ;;  %v223_v9 = vsel %vm138_vm4, %v222_v25, %v2383_v33 }
  0x4d   :  { %v112_v0 = vor.u32 4788187, %v111_v20  ;;  %v115_v39 = vcvt.s32.f32 %v108_v19  ;;  %v207_v46 = vsel %vm2116_vm5, 0, %v2115_v24  ;;  %v506_v56 = vsel %vm504_vm7, %v505_v54, %v2426_v35 }
  0x4e   :  { %v208_v49 = vsub.s32 32, %v207_v46  ;;  %v209_v51 = vshll.u32 %v2395_v53, %v207_v46  ;;  %v212_v52 = vsub.s32 4294967266, %v207_v46  ;;  %v2452_v53 = vand.u32 8388607, %v550_v23 }
  0x4f   :  { %v113_v45 = vand.u32 2147483647, %v112_v0  ;;  %vm449_vm8 = vcmp.lt.s32.totalorder %v2274_v6, 0  ;;  %v507_v58 = vadd.s32 %v506_v56, %v502_v47  ;;  %vm561_vm9 = vcmp.gt.s32.totalorder %v560_v48, 0 }
  0x50   :  { %v210_v63 = vshrl.u32 %v192_v29, %v208_v49  ;;  %v213_v37 = vadd.s32 127, %v212_v52  ;;  %v2458_v60 = vand.u32 3, %v122_v43  ;;  %v562_v1 = vsel %vm561_vm9, %v560_v48, 0 }
  0x51   :  { %v116_v18 = vmul.f32 %v115_v39, %v113_v45  ;;  %v2462_v2 = vand.u32 3, %v332_v59  ;;  %v508_v32 = vadd.s32 536870912, %v507_v58  ;;  %v564_v3 = vand.u32 31, %v562_v1 }
  0x52   :  { %v211_v61 = vor.u32 %v210_v63, %v209_v51  ;;  %v214_v62 = vshll.u32 %v213_v37, 23  ;;  %v225_v12 = vsel %vm2443_vm6, 0, %v223_v9  ;;  %vm2471_vm10 = vcmp.le.f32.partialorder %v447_v28, 0.7853982 }
  0x53   :  { %v117_v57 = vxor.u32 2147483648, %v116_v18  ;;  %v509_v14 = vshrl.u32 %v508_v32, 30  ;;  %v565_v11 = vsub.s32 32, %v564_v3  ;;  %v567_v31 = vshll.u32 %v2238_v34, %v564_v3 }
  0x54   :  { %v215_v8 = vor.u32 4788187, %v214_v62  ;;  %v218_v10 = vcvt.s32.f32 %v211_v61  ;;  %v570_v17 = vshll.u32 %v2239_v36, %v564_v3  ;;  %v573_v16 = vshll.u32 %v2240_v38, %v564_v3 }
  0x55   :  { %v118_v7 = vsel %vm35_vm13, %v117_v57, %v116_v18  ;;  %vm131_vm11 = vcmp.eq.s32.totalorder %v2458_v60, 2  ;;  %v510_v19 = vshll.u32 %v509_v14, 30  ;;  %v533_v20 = vsub.s32 4, %v509_v14 }
  0x56   :  { %v121_v33 = vsel %vm2400_vm1, %v2270_v4, %v118_v7  ;;  %v216_v15 = vand.u32 2147483647, %v215_v8  ;;  %v568_v28 = vshrl.u32 %v2239_v36, %v565_v11  ;;  %vm128_vm12 = vcmp.eq.s32.totalorder %v2458_v60, 0 }
  0x57   :  { %2170 = vcosq.f32 %v121_v33  ;;  %vm335_vm13 = vcmp.eq.s32.totalorder %v2462_v2, 0  ;;  %v571_v22 = vshrl.u32 %v2240_v38, %v565_v11  ;;  %v574_v24 = vshrl.u32 %v2241_v40, %v565_v11 }
  0x58   :  { %2172 = vsinq.f32 %v121_v33  ;;  %v219_v21 = vmul.f32 %v218_v10, %v216_v15  ;;  %v576_v26 = vshll.u32 %v2241_v40, %v564_v3  ;;  %vm127_vm14 = vcmp.lt.s32.totalorder %v2458_v60, 2 }
  0x59   :  { %v2486_v35 = vsub.s32 %v507_v58, %v510_v19  ;;  %v436_v0 = vadd.s32 3, %v225_v12  ;;  %v569_v39 = vor.u32 %v568_v28, %v567_v31  ;;  %v577_v41 = vshrl.u32 %v2242_v42, %v565_v11 }
  0x5a   :  { %vm125_vm15 = vweird.f32 %v2270_v4  ;;  %v220_v36 = vxor.u32 2147483648, %v219_v21  ;;  %vm334_vm0 = vcmp.lt.s32.totalorder %v2462_v2, 2  ;;  %v534_v38 = vsel %vm449_vm8, %v533_v20, %v509_v14 }
  0x5b   :  { %v2493_v43 = vor.u32 %v571_v22, %v570_v17  ;;  %v2495_v29 = vor.u32 %v574_v24, %v573_v16  ;;  %vm338_vm1 = vcmp.eq.s32.totalorder %v2462_v2, 2  ;;  %v513_v40 = vsub.s32 0, %v2486_v35 }
  0x5c   :  { %v2499_v25 = vshrl.u32 %v562_v1, 5  ;;  %v2501_v45 = vor.u32 %v577_v41, %v576_v26  ;;  %v221_v46 = vsel %vm138_vm4, %v220_v36, %v219_v21  ;;  %v2505_v47 = vand.u32 3, %v225_v12 }
  0x5d   :  { %v2508_v48 = vshll.u32 %v2242_v42, %v564_v3  ;;  %v2511_v49 = vshrl.u32 %v2243_v50, %v565_v11  ;;  %v224_v51 = vsel %vm2443_vm6, %v2272_v5, %v221_v46  ;;  %v2126_v52 = vmin.u32 %v513_v40, %v2486_v35 }
  0x5e   :  { %v536_v54 = vsel %vm2471_vm10, 0, %v534_v38  ;;  %v566_v18 = vshrl.u32 %v2238_v34, %v565_v11  ;;  %2174 = vcosq.f32 %v224_v51  ;;  %v2520_v59 = vand.u32 3, %v436_v0 }
  0x5f   :  { %v558_v42 = vor.u32 8388608, %v2452_v53  ;;  %v581_v50 = vor.u32 %v2511_v49, %v2508_v48  ;;  %2176 = vsinq.f32 %v224_v51  ;;  %v503_v55 = vadd.s32 %v2425_v27, %v2431_v30 }
  0x60   :  { %v515_v37 = vclz %v2126_v52  ;;  %vm582_vm2 = vcmp.lt.s32.totalorder %v2499_v25, 1  ;;  %v746_v9 = vadd.s32 3, %v536_v54  ;;  %vm583_vm3 = vcmp.lt.s32.totalorder %v2499_v25, 2 }
  0x61   :  { %v2171_v63 = vpop.eup %2170  ;;  %vm584_vm4 = vcmp.lt.s32.totalorder %v2499_v25, 3  ;;  %vm231_vm5 = vcmp.eq.s32.totalorder %v2505_v47, 0  ;;  %vm585_vm6 = vcmp.lt.s32.totalorder %v2499_v25, 4  ;;  %v586_v58 = vsel %vm582_vm2, %v566_v18, %v569_v39 }
  0x62   :  { %v2173_v56 = vpop.eup %2172  ;;  %v132_v57 = vxor.u32 2147483648, %v2171_v63  ;;  %v2127_v53 = vadd.s32 4294967294, %v515_v37  ;;  %vm230_vm7 = vcmp.lt.s32.totalorder %v2505_v47, 2  ;;  %v587_v61 = vsel %vm585_vm6, %v2495_v29, 2102212464 }
  0x63   :  { %v129_v34 = vxor.u32 2147483648, %v2173_v56  ;;  %v590_v62 = vsel %vm582_vm2, %v569_v39, %v2493_v43  ;;  %vm228_vm9 = vweird.f32 %v2272_v5  ;;  %v588_v32 = vsel %vm584_vm4, %v2493_v43, %v587_v61 }
  0x64   :  { %v133_v27 = vsel %vm131_vm11, %v132_v57, %v2173_v56  ;;  %v340_v30 = vsel %vm338_vm1, %v132_v57, %v2173_v56  ;;  %vm2128_vm11 = vcmp.lt.s32.totalorder %v2127_v53, 0  ;;  %vm234_vm1 = vcmp.eq.s32.totalorder %v2505_v47, 2 }
  0x65   :  { %v130_v1 = vsel %vm128_vm12, %v2171_v63, %v129_v34  ;;  %v337_v7 = vsel %vm335_vm13, %v2171_v63, %v129_v34  ;;  %v518_v33 = vsel %vm2128_vm11, 0, %v2127_v53  ;;  %v2558_v8 = vsel %vm583_vm3, %v586_v58, %v588_v32 }
  0x66   :  { %v134_v3 = vsel %vm127_vm14, %v130_v1, %v133_v27  ;;  %v341_v12 = vsel %vm334_vm0, %v337_v7, %v340_v30  ;;  %v519_v14 = vsub.s32 32, %v518_v33  ;;  %vm439_vm12 = vcmp.eq.s32.totalorder %v2520_v59, 0 }
  0x67   :  { %v2562_v10 = vsel %vm125_vm15, nan, %v134_v3  ;;  %vm438_vm13 = vcmp.lt.s32.totalorder %v2520_v59, 2  ;;  %vm442_vm14 = vcmp.eq.s32.totalorder %v2520_v59, 2  ;;  %v2571_v31 = vshll.u32 %v558_v42, 8 }
  0x68   :  { %v863_v60 = vmul.f32 0.48860252, %v2562_v10  ;;  %v869_v11 = vmul.f32 1.5, %v2562_v10  ;;  %v520_v15 = vshll.u32 %v2486_v35, %v518_v33  ;;  %v521_v17 = vshrl.u32 %v503_v55, %v519_v14  ;;  %v2175_v19 = vpop.eup %2174 }
  0x69   :  { %v2574_v16 = vand.u32 3, %v536_v54  ;;  %v2576_v2 = vand.u32 3, %v746_v9  ;;  %v881_v28 = vmul.f32 1.6666666, %v2562_v10  ;;  %v895_v21 = vmul.f32 1.75, %v2562_v10  ;;  %v2177_v24 = vpop.eup %2176 }
  0x6a   :  { %867 = vst [vmem:[#allocation5 + $0x20] sm:$0xff] %v863_v60  ;;  %v871_v20 = vmul.f32 %v869_v11, %v2562_v10  ;;  %v2583_v22 = vsel %vm125_vm15, nan, %v341_v12  ;;  %v235_v26 = vxor.u32 2147483648, %v2175_v19  ;;  %v885_v35 = vmul.f32 0.6666667, %v2562_v10 }
  0x6b   :  { %v909_v0 = vmul.f32 1.8, %v2562_v10  ;;  %v523_v39 = vsub.s32 4294967266, %v518_v33  ;;  %v232_v41 = vxor.u32 2147483648, %v2177_v24  ;;  %v591_v38 = vsel %vm585_vm6, %v2501_v45, 920167782 }
  0x6c   :  { %v2141_v36 = vadd.f32 -0.5, %v871_v20  ;;  %v594_v4 = vsel %vm582_vm2, %v2493_v43, %v2495_v29  ;;  %v236_v40 = vsel %vm234_vm1, %v235_v26, %v2177_v24  ;;  %v923_v46 = vmul.f32 1.8333334, %v2562_v10 }
  0x6d   :  { %v522_v51 = vor.u32 %v521_v17, %v520_v15  ;;  %v524_v52 = vadd.s32 127, %v523_v39  ;;  %v233_v54 = vsel %vm231_vm5, %v2175_v19, %v232_v41  ;;  %v444_v63 = vsel %vm442_vm14, %v235_v26, %v2177_v24 }
  0x6e   :  { %v875_v18 = vmul.f32 0.63078314, %v2141_v36  ;;  %v883_v42 = vmul.f32 %v2141_v36, %v881_v28  ;;  %v237_v55 = vsel %vm230_vm7, %v233_v54, %v236_v40  ;;  %v899_v37 = vmul.f32 0.75, %v2141_v36 }
  0x6f   :  { %v525_v43 = vshll.u32 %v524_v52, 23  ;;  %v592_v56 = vsel %vm584_vm4, %v2495_v29, %v591_v38  ;;  %v2608_v57 = vsel %vm228_vm9, nan, %v237_v55  ;;  %v441_v34 = vsel %vm439_vm12, %v2175_v19, %v232_v41 }
  0x70   :  { %879 = vst [vmem:[#allocation5 + $0x60] sm:$0xff] %v875_v18  ;;  %v887_v9 = vsub.f32 %v883_v42, %v885_v35  ;;  %v593_v53 = vsel %vm583_vm3, %v590_v62, %v592_v56  ;;  %v864_v47 = vmul.f32 0.48860252, %v2608_v57  ;;  %v870_v58 = vmul.f32 1.5, %v2608_v57 }
  0x71   :  { %v937_v27 = vmul.f32 1.8571428, %v2562_v10  ;;  %v2618_v29 = vmul.f32 1.875, %v2562_v10  ;;  %v2621_v1 = vmul.f32 1.8888888, %v2562_v10  ;;  %v529_v3 = vcvt.s32.f32 %v522_v51 }
  0x72   :  { %v889_v30 = vmul.f32 0.7463527, %v887_v9  ;;  %v897_v61 = vmul.f32 %v895_v21, %v887_v9  ;;  %v2624_v7 = vmul.f32 0.48860252, %v2583_v22  ;;  %868 = vst [vmem:[#allocation5 + $0x28] sm:$0xff] %v864_v47  ;;  %v872_v62 = vmul.f32 %v870_v58, %v2608_v57 }
  0x73   :  { %v882_v32 = vmul.f32 1.6666666, %v2608_v57  ;;  %v2630_v33 = vsel %vm438_vm13, %v441_v34, %v444_v63  ;;  %v886_v12 = vmul.f32 0.6666667, %v2608_v57  ;;  %v913_v60 = vmul.f32 0.8, %v887_v9 }
  0x74   :  { %893 = vst [vmem:[#allocation5 + $0xc0] sm:$0xff] %v889_v30  ;;  %v901_v14 = vsub.f32 %v897_v61, %v899_v37  ;;  %v526_v11 = vor.u32 4788187, %v525_v43  ;;  %v2142_v15 = vadd.f32 -0.5, %v872_v62  ;;  %v896_v17 = vmul.f32 1.75, %v2608_v57 }
  0x75   :  { %v910_v19 = vmul.f32 1.8, %v2608_v57  ;;  %v595_v20 = vsel %vm585_vm6, %v581_v50, 1326507024  ;;  %v2641_v21 = vmul.f32 1.8333334, %v2608_v57  ;;  %v605_v25 = vmul.u32 %v2571_v31, %v2558_v8 }
  0x76   :  { %v903_v59 = vmul.f32 0.8462844, %v901_v14  ;;  %v911_v28 = vmul.f32 %v909_v0, %v901_v14  ;;  %v527_v24 = vand.u32 2147483647, %v526_v11  ;;  %v876_v26 = vmul.f32 0.63078314, %v2142_v15 }
  0x77   :  { %v884_v35 = vmul.f32 %v2142_v15, %v882_v32  ;;  %v2644_v39 = vmul.f32 1.8571428, %v2608_v57  ;;  %v596_v41 = vsel %vm584_vm4, %v2501_v45, %v595_v20  ;;  %v927_v49 = vmul.f32 0.8333333, %v901_v14 }
  0x78   :  { %907 = vst [vmem:[#allocation5 + $0x140] sm:$0xff] %v903_v59  ;;  %v915_v48 = vsub.f32 %v911_v28, %v913_v60  ;;  %v530_v36 = vmul.f32 %v529_v3, %v527_v24  ;;  %v597_v50 = vsel %vm583_vm3, %v594_v4, %v596_v41  ;;  %880 = vst [vmem:[#allocation5 + $0x68] sm:$0xff] %v876_v26  ;;  %v900_v38 = vmul.f32 0.75, %v2142_v15 }
  0x79   :  { %v888_v0 = vsub.f32 %v884_v35, %v886_v12  ;;  %v2652_v40 = vmul.u32.u64.low %v2571_v31, %v597_v50  ;;  %v2653_v51 = vmul.u32.u64.high %v2571_v31, %v597_v50, %v2652_v40  ;;  %v2656_v18 = vmul.f32 1.875, %v2608_v57 }
  0x7a   :  { %v917_v52 = vmul.f32 0.9356026, %v915_v48  ;;  %v925_v54 = vmul.f32 %v923_v46, %v915_v48  ;;  %v531_v45 = vxor.u32 2147483648, %v530_v36  ;;  %v941_v55 = vmul.f32 0.85714287, %v915_v48 }
  0x7b   :  { %v890_v42 = vmul.f32 0.7463527, %v888_v0  ;;  %v898_v63 = vmul.f32 %v896_v17, %v888_v0  ;;  %v2663_v43 = vmul.u32.u64.low %v2571_v31, %v593_v53  ;;  %v2664_v56 = vmul.u32.u64.high %v2571_v31, %v593_v53, %v2663_v43 }
  0x7c   :  { %921 = vst [vmem:[#allocation5 + $0x1e0] sm:$0xff] %v917_v52  ;;  %v929_v4 = vsub.f32 %v925_v54, %v927_v49  ;;  %v532_v37 = vsel %vm449_vm8, %v531_v45, %v530_v36  ;;  %v914_v9 = vmul.f32 0.8, %v888_v0  ;;  %v2670_v47 = vmul.f32 3.0, %v2562_v10 }
  0x7d   :  { %894 = vst [vmem:[#allocation5 + $0xc8] sm:$0xff] %v890_v42  ;;  %v902_v46 = vsub.f32 %v898_v63, %v900_v38  ;;  %v535_v34 = vsel %vm2471_vm10, %v2274_v6, %v532_v37  ;;  %v2673_v30 = vmul.f32 3.0, %v2608_v57  ;;  %vm545_vm8 = vcmp.eq.s32.totalorder %v2574_v16, 2 }
  0x7e   :  { %v931_v8 = vmul.f32 1.0171072, %v929_v4  ;;  %v939_v58 = vmul.f32 %v937_v27, %v929_v4  ;;  %2178 = vcosq.f32 %v535_v34  ;;  %v955_v31 = vmul.f32 0.875, %v929_v4 }
  0x7f   :  { %v904_v61 = vmul.f32 0.8462844, %v902_v46  ;;  %v912_v62 = vmul.f32 %v910_v19, %v902_v46  ;;  %2180 = vsinq.f32 %v535_v34  ;;  %v2677_v13 = vadd.s32 %v2663_v43, %v2653_v51 }
  0x80   :  { %935 = vst [vmem:[#allocation5 + $0x2a0] sm:$0xff] %v931_v8  ;;  %v943_v53 = vsub.f32 %v939_v58, %v941_v55  ;;  %vm607_vm10 = vc.u32 %v2653_v51, %v2663_v43  ;;  %v608_v32 = vadd.s32 1, %v2664_v56  ;;  %v928_v3 = vmul.f32 0.8333333, %v902_v46 }
  0x81   :  { %908 = vst [vmem:[#allocation5 + $0x148] sm:$0xff] %v904_v61  ;;  %v916_v27 = vsub.f32 %v912_v62, %v914_v9  ;;  %vm542_vm15 = vcmp.eq.s32.totalorder %v2574_v16, 0  ;;  %vm749_vm0 = vcmp.eq.s32.totalorder %v2576_v2, 0  ;;  %vm752_vm2 = vcmp.eq.s32.totalorder %v2576_v2, 2 }
  0x82   :  { %v2687_v12 = vsel %vm228_vm9, nan, %v2630_v33  ;;  %v2691_v14 = vmul.f32 %v2670_v47, %v2583_v22  ;;  %v945_v60 = vmul.f32 1.0925485, %v943_v53  ;;  %v953_v11 = vmul.f32 %v2618_v29, %v943_v53 }
  0x83   :  { %vm541_vm3 = vcmp.lt.s32.totalorder %v2574_v16, 2  ;;  %vm748_vm4 = vcmp.lt.s32.totalorder %v2576_v2, 2  ;;  %v609_v15 = vsel %vm607_vm10, %v608_v32, %v2664_v56  ;;  %v2698_v17 = vmul.f32 2.5, %v2562_v10 }
  0x84   :  { %v918_v19 = vmul.f32 0.9356026, %v916_v27  ;;  %v926_v5 = vmul.f32 %v2641_v21, %v916_v27  ;;  %v966_v33 = vmul.f32 1.8888888, %v2608_v57  ;;  %vm539_vm5 = vweird.f32 %v2274_v6  ;;  %949 = vst [vmem:[#allocation5 + $0x380] sm:$0xff] %v945_v60 }
  0x85   :  { %v610_v20 = vadd.s32 %v609_v15, %v605_v25  ;;  %v957_v59 = vsub.f32 %v953_v11, %v955_v31  ;;  %v969_v29 = vmul.f32 0.8888889, %v943_v53  ;;  %vm552_vm6 = vcmp.lt.s32.totalorder %v2364_v44, 0 }
  0x86   :  { %v2705_v28 = vmul.f32 0.48860252, %v2687_v12  ;;  %v2709_v24 = vmul.f32 %v2673_v30, %v2687_v12  ;;  %922 = vst [vmem:[#allocation5 + $0x1e8] sm:$0xff] %v918_v19  ;;  %v930_v26 = vsub.f32 %v926_v5, %v928_v3  ;;  %v942_v21 = vmul.f32 0.85714287, %v916_v27 }
  0x87   :  { %vm2713_vm7 = vcmp.le.f32.partialorder %v550_v23, 0.7853982  ;;  %v611_v41 = vadd.s32 536870912, %v610_v20  ;;  %v1022_v48 = vmul.f32 1.5, %v2583_v22  ;;  %v959_v49 = vmul.f32 1.1631067, %v957_v59 }
  0x88   :  { %v967_v36 = vmul.f32 %v2621_v1, %v957_v59  ;;  %v1020_v50 = vmul.f32 %v2698_v17, %v2691_v14  ;;  %v2722_v0 = vmul.f32 2.5, %v2608_v57  ;;  %v932_v38 = vmul.f32 1.0171072, %v930_v26  ;;  %v2179_v52 = vpop.eup %2178 }
  0x89   :  { %v940_v40 = vmul.f32 %v2644_v39, %v930_v26  ;;  %v612_v51 = vshrl.u32 %v611_v41, 30  ;;  %v2726_v23 = vmul.f32 0.3641828, %v2691_v14  ;;  %963 = vst [vmem:[#allocation5 + $0x480] sm:$0xff] %v959_v49  ;;  %v956_v54 = vmul.f32 0.875, %v930_v26  ;;  %v2181_v63 = vpop.eup %2180 }
  0x8a   :  { %v971_v45 = vsub.f32 %v967_v36, %v969_v29  ;;  %v1023_v42 = vmul.f32 1.5, %v2687_v12  ;;  %v1040_v1 = vmul.f32 2.3333333, %v2562_v10  ;;  %936 = vst [vmem:[#allocation5 + $0x2a8] sm:$0xff] %v932_v38  ;;  %v546_v25 = vxor.u32 2147483648, %v2179_v52 }
  0x8b   :  { %v944_v55 = vsub.f32 %v940_v40, %v942_v21  ;;  %v613_v4 = vshll.u32 %v612_v51, 30  ;;  %v636_v37 = vsub.s32 4, %v612_v51  ;;  %v543_v39 = vxor.u32 2147483648, %v2181_v63 }
  0x8c   :  { %v973_v43 = vmul.f32 1.2296227, %v971_v45  ;;  %v1024_v56 = vsub.f32 %v1020_v50, %v1022_v48  ;;  %v1021_v46 = vmul.f32 %v2722_v0, %v2709_v24  ;;  %v547_v58 = vsel %vm545_vm8, %v546_v25, %v2181_v63 }
  0x8d   :  { %v946_v9 = vmul.f32 1.0925485, %v944_v55  ;;  %v954_v34 = vmul.f32 %v2656_v18, %v944_v55  ;;  %v970_v8 = vmul.f32 0.8888889, %v944_v55  ;;  %v544_v61 = vsel %vm542_vm15, %v2179_v52, %v543_v39 }
  0x8e   :  { %977 = vst [vmem:[#allocation5 + $0x5a0] sm:$0xff] %v973_v43  ;;  %v751_v62 = vsel %vm749_vm0, %v2179_v52, %v543_v39  ;;  %v754_v31 = vsel %vm752_vm2, %v546_v25, %v2181_v63  ;;  %v2741_v53 = vsub.s32 %v610_v20, %v613_v4  ;;  %v548_v18 = vsel %vm541_vm3, %v544_v61, %v547_v58 }
  0x8f   :  { %950 = vst [vmem:[#allocation5 + $0x388] sm:$0xff] %v946_v9  ;;  %v958_v32 = vsub.f32 %v954_v34, %v956_v54  ;;  %v755_v27 = vsel %vm748_vm4, %v751_v62, %v754_v31  ;;  %v637_v3 = vsel %vm552_vm6, %v636_v37, %v612_v51  ;;  %v2751_v60 = vsel %vm539_vm5, nan, %v548_v18 }
  0x90   :  { %v2755_v11 = vsel %vm539_vm5, nan, %v755_v27  ;;  %v616_v15 = vsub.s32 0, %v2741_v53  ;;  %v639_v16 = vsel %vm2713_vm7, 0, %v637_v3  ;;  %v1026_v20 = vmul.f32 0.3046972, %v1024_v56 }
  0x91   :  { %v960_v19 = vmul.f32 1.1631067, %v958_v32  ;;  %v968_v5 = vmul.f32 %v966_v33, %v958_v32  ;;  %v979_v2 = vmul.f32 0.0, %v2755_v11  ;;  %v850_v29 = vadd.s32 3, %v639_v16 }
  0x92   :  { %v2130_v59 = vmin.u32 %v616_v15, %v2741_v53  ;;  %v983_v26 = vmul.f32 0.0, %v2751_v60  ;;  %v2764_v21 = vmul.f32 0.3641828, %v2709_v24  ;;  %v1042_v48 = vmul.f32 %v1040_v1, %v1024_v56 }
  0x93   :  { %964 = vst [vmem:[#allocation5 + $0x488] sm:$0xff] %v960_v19  ;;  %v972_v6 = vsub.f32 %v968_v5, %v970_v8  ;;  %v2767_v41 = vsub.f32 %v2751_v60, %v979_v2  ;;  %v1044_v49 = vmul.f32 1.3333334, %v2691_v14  ;;  %v1025_v50 = vsub.f32 %v1021_v46, %v1023_v42 }
  0x94   :  { %v618_v33 = vclz %v2130_v59  ;;  %v2771_v36 = vadd.f32 %v983_v26, %v2755_v11  ;;  %v1062_v38 = vmul.f32 2.25, %v2562_v10  ;;  %v2779_v1 = vand.u32 3, %v639_v16 }
  0x95   :  { %v974_v40 = vmul.f32 1.2296227, %v972_v6  ;;  %v989_v51 = vmul.f32 %v2624_v7, %v2767_v41  ;;  %v1006_v52 = vmul.f32 %v2726_v23, %v2767_v41  ;;  %v1028_v54 = vmul.f32 %v1026_v20, %v2767_v41 }
  0x96   :  { %v2131_v45 = vadd.s32 4294967294, %v618_v33  ;;  %v2781_v14 = vand.u32 3, %v850_v29  ;;  %v2783_v63 = vmul.f32 0.3046972, %v1025_v50  ;;  %v995_v42 = vmul.f32 %v2624_v7, %v2771_v36 }
  0x97   :  { %978 = vst [vmem:[#allocation5 + $0x5a8] sm:$0xff] %v974_v40  ;;  %993 = vst [vmem:[#allocation5 + $0x30] sm:$0xff] %v989_v51  ;;  %v1012_v55 = vmul.f32 %v2726_v23, %v2771_v36  ;;  %v1034_v25 = vmul.f32 %v1026_v20, %v2771_v36  ;;  %v1046_v4 = vsub.f32 %v1042_v48, %v1044_v49  ;;  %v1041_v37 = vmul.f32 2.3333333, %v2608_v57 }
  0x98   :  { %1010 = vst [vmem:[#allocation5 + $0x70] sm:$0xff] %v1006_v52  ;;  %1032 = vst [vmem:[#allocation5 + $0xd0] sm:$0xff] %v1028_v54  ;;  %vm2132_vm9 = vcmp.lt.s32.totalorder %v2131_v45, 0  ;;  %v1045_v43 = vmul.f32 1.3333334, %v2709_v24  ;;  %v1066_v39 = vmul.f32 1.25, %v1024_v56  ;;  %v1176_v19 = vmul.f32 %v2767_v41, %v2751_v60 }
  0x99   :  { %v621_v46 = vsel %vm2132_vm9, 0, %v2131_v45  ;;  %998 = vst [vmem:[#allocation5 + $0x10] sm:$0xff] %v995_v42  ;;  %1016 = vst [vmem:[#allocation5 + $0x50] sm:$0xff] %v1012_v55  ;;  %v1048_v9 = vmul.f32 0.26761863, %v1046_v4  ;;  %v1064_v7 = vmul.f32 %v1062_v38, %v1046_v4  ;;  %v1063_v34 = vmul.f32 2.25, %v2608_v57 }
  0x9a   :  { %1038 = vst [vmem:[#allocation5 + $0xb0] sm:$0xff] %v1034_v25  ;;  %v622_v8 = vsub.s32 32, %v621_v46  ;;  %v623_v23 = vshll.u32 %v2741_v53, %v621_v46  ;;  %v626_v58 = vsub.s32 4294967266, %v621_v46  ;;  %v1043_v61 = vmul.f32 %v1041_v37, %v1025_v50 }
  0x9b   :  { %v1050_v62 = vmul.f32 %v1048_v9, %v2767_v41  ;;  %v1056_v31 = vmul.f32 %v1048_v9, %v2771_v36  ;;  %v1068_v32 = vsub.f32 %v1064_v7, %v1066_v39  ;;  %v1067_v24 = vmul.f32 1.25, %v1025_v50 }
  0x9c   :  { %v624_v56 = vshrl.u32 %v2677_v13, %v622_v8  ;;  %v627_v18 = vadd.s32 127, %v626_v58  ;;  %v1047_v27 = vsub.f32 %v1043_v61, %v1045_v43  ;;  %v1084_v3 = vmul.f32 2.2, %v2562_v10 }
  0x9d   :  { %1054 = vst [vmem:[#allocation5 + $0x150] sm:$0xff] %v1050_v62  ;;  %1060 = vst [vmem:[#allocation5 + $0x130] sm:$0xff] %v1056_v31  ;;  %v1070_v15 = vmul.f32 0.24157155, %v1068_v32  ;;  %v1088_v16 = vmul.f32 1.2, %v1046_v4  ;;  %vm642_vm10 = vweird.f32 %v2364_v44 }
  0x9e   :  { %v1085_v53 = vmul.f32 2.2, %v2608_v57  ;;  %v625_v5 = vor.u32 %v624_v56, %v623_v23  ;;  %v628_v2 = vshll.u32 %v627_v18, 23  ;;  %v2801_v20 = vmul.f32 0.26761863, %v1047_v27 }
  0x9f   :  { %v1065_v59 = vmul.f32 %v1063_v34, %v1047_v27  ;;  %v1072_v13 = vmul.f32 %v1070_v15, %v2767_v41  ;;  %v1078_v29 = vmul.f32 %v1070_v15, %v2771_v36  ;;  %v1086_v26 = vmul.f32 %v1084_v3, %v1068_v32 }
  0xa0   :  { %v1089_v6 = vmul.f32 1.2, %v1047_v27  ;;  %v629_v48 = vor.u32 4788187, %v628_v2  ;;  %v632_v49 = vcvt.s32.f32 %v625_v5  ;;  %v1106_v50 = vmul.f32 2.1666667, %v2562_v10 }
  0xa1   :  { %v1069_v33 = vsub.f32 %v1065_v59, %v1067_v24  ;;  %1076 = vst [vmem:[#allocation5 + $0x1f0] sm:$0xff] %v1072_v13  ;;  %1082 = vst [vmem:[#allocation5 + $0x1d0] sm:$0xff] %v1078_v29  ;;  %v1090_v38 = vsub.f32 %v1086_v26, %v1088_v16  ;;  %v1110_v40 = vmul.f32 1.1666666, %v1068_v32  ;;  %v1107_v51 = vmul.f32 2.1666667, %v2608_v57 }
  0xa2   :  { %v1128_v52 = vmul.f32 2.142857, %v2562_v10  ;;  %v630_v54 = vand.u32 2147483647, %v629_v48  ;;  %v1129_v43 = vmul.f32 2.142857, %v2608_v57  ;;  %v1178_v16 = vmul.f32 %v2771_v36, %v2755_v11 }
  0xa3   :  { %v2808_v45 = vmul.f32 0.24157155, %v1069_v33  ;;  %v1087_v42 = vmul.f32 %v1085_v53, %v1069_v33  ;;  %v1111_v55 = vmul.f32 1.1666666, %v1069_v33  ;;  %v1092_v25 = vmul.f32 0.221951, %v1090_v38 }
  0xa4   :  { %v1108_v4 = vmul.f32 %v1106_v50, %v1090_v38  ;;  %v1132_v37 = vmul.f32 1.1428572, %v1090_v38  ;;  %v633_v39 = vmul.f32 %v632_v49, %v630_v54  ;;  %v1150_v9 = vmul.f32 2.125, %v2562_v10 }
  0xa5   :  { %v1091_v46 = vsub.f32 %v1087_v42, %v1089_v6  ;;  %v1151_v7 = vmul.f32 2.125, %v2608_v57  ;;  %v1094_v34 = vmul.f32 %v1092_v25, %v2767_v41  ;;  %v1100_v8 = vmul.f32 %v1092_v25, %v2771_v36 }
  0xa6   :  { %v1112_v23 = vsub.f32 %v1108_v4, %v1110_v40  ;;  %v1172_v58 = vmul.f32 3.0, %v2583_v22  ;;  %v634_v61 = vxor.u32 2147483648, %v633_v39  ;;  %v1173_v53 = vmul.f32 3.0, %v2687_v12 }
  0xa7   :  { %v2816_v62 = vmul.f32 0.221951, %v1091_v46  ;;  %v1109_v31 = vmul.f32 %v1107_v51, %v1091_v46  ;;  %v1133_v32 = vmul.f32 1.1428572, %v1091_v46  ;;  %1098 = vst [vmem:[#allocation5 + $0x2b0] sm:$0xff] %v1094_v34  ;;  %1104 = vst [vmem:[#allocation5 + $0x290] sm:$0xff] %v1100_v8  ;;  %v2833_v33 = vsub.f32 %v1176_v19, %v1178_v16 }
  0xa8   :  { %v1114_v24 = vmul.f32 0.20647225, %v1112_v23  ;;  %v1130_v56 = vmul.f32 %v1128_v52, %v1112_v23  ;;  %v1154_v18 = vmul.f32 1.125, %v1112_v23  ;;  %v2819_v27 = vmul.f32 %v1172_v58, %v2583_v22 }
  0xa9   :  { %v635_v3 = vsel %vm552_vm6, %v634_v61, %v633_v39  ;;  %v1113_v15 = vsub.f32 %v1109_v31, %v1111_v55  ;;  %vm648_vm11 = vcmp.eq.s32.totalorder %v2779_v1, 2  ;;  %vm856_vm1 = vcmp.eq.s32.totalorder %v2781_v14, 2 }
  0xaa   :  { %v638_v5 = vsel %vm2713_vm7, %v2364_v44, %v635_v3  ;;  %v1116_v2 = vmul.f32 %v1114_v24, %v2767_v41  ;;  %v1122_v59 = vmul.f32 %v1114_v24, %v2771_v36  ;;  %v1134_v13 = vsub.f32 %v1130_v56, %v1132_v37 }
  0xab   :  { %2182 = vcosq.f32 %v638_v5  ;;  %v2831_v29 = vmul.f32 0.20647225, %v1113_v15  ;;  %v1131_v26 = vmul.f32 %v1129_v43, %v1113_v15  ;;  %v1155_v6 = vmul.f32 1.125, %v1113_v15 }
  0xac   :  { %2184 = vsinq.f32 %v638_v5  ;;  %1120 = vst [vmem:[#allocation5 + $0x390] sm:$0xff] %v1116_v2  ;;  %1126 = vst [vmem:[#allocation5 + $0x370] sm:$0xff] %v1122_v59  ;;  %v1136_v48 = vmul.f32 0.1938511, %v1134_v13  ;;  %v1152_v49 = vmul.f32 %v1150_v9, %v1134_v13  ;;  %v1188_v50 = vmul.f32 0.1820914, %v2819_v27 }
  0xad   :  { %v1135_v35 = vsub.f32 %v1131_v26, %v1133_v32  ;;  %v2839_v38 = vmul.f32 %v1173_v53, %v2687_v12  ;;  %v1182_v40 = vmul.f32 %v2771_v36, %v2751_v60  ;;  %vm645_vm12 = vcmp.eq.s32.totalorder %v2779_v1, 0 }
  0xae   :  { %vm853_vm13 = vcmp.eq.s32.totalorder %v2781_v14, 0  ;;  %v1138_v19 = vmul.f32 %v1136_v48, %v2767_v41  ;;  %v1144_v51 = vmul.f32 %v1136_v48, %v2771_v36  ;;  %v1156_v52 = vsub.f32 %v1152_v49, %v1154_v18 }
  0xaf   :  { %v1184_v54 = vmul.f32 %v2767_v41, %v2755_v11  ;;  %vm644_vm14 = vcmp.lt.s32.totalorder %v2779_v1, 2  ;;  %vm852_vm8 = vcmp.lt.s32.totalorder %v2781_v14, 2  ;;  %v2851_v42 = vmul.f32 0.1938511, %v1135_v35 }
  0xb0   :  { %v1153_v55 = vmul.f32 %v1151_v7, %v1135_v35  ;;  %v1190_v25 = vmul.f32 %v1188_v50, %v2833_v33  ;;  %v2855_v4 = vmul.f32 0.1820914, %v2839_v38  ;;  %1142 = vst [vmem:[#allocation5 + $0x490] sm:$0xff] %v1138_v19  ;;  %1148 = vst [vmem:[#allocation5 + $0x470] sm:$0xff] %v1144_v51  ;;  %v1158_v37 = vmul.f32 0.18330133, %v1156_v52 }
  0xb1   :  { %v2858_v43 = vadd.f32 %v1184_v54, %v1182_v40  ;;  %v2861_v39 = vmul.f32 5.0, %v2562_v10  ;;  %v2864_v46 = vmul.f32 5.0, %v2608_v57  ;;  %v1220_v7 = vmul.f32 3.5, %v2562_v10 }
  0xb2   :  { %v1157_v9 = vsub.f32 %v1153_v55, %v1155_v6  ;;  %1194 = vst [vmem:[#allocation5 + $0x80] sm:$0xff] %v1190_v25  ;;  %v1224_v34 = vmul.f32 2.5, %v2819_v27  ;;  %v1221_v8 = vmul.f32 3.5, %v2608_v57  ;;  %v1160_v23 = vmul.f32 %v1158_v37, %v2767_v41 }
  0xb3   :  { %v1166_v58 = vmul.f32 %v1158_v37, %v2771_v36  ;;  %v1196_v61 = vmul.f32 %v1188_v50, %v2858_v43  ;;  %v1204_v31 = vmul.f32 %v2861_v39, %v2819_v27  ;;  %v1205_v24 = vmul.f32 %v2864_v46, %v2839_v38 }
  0xb4   :  { %v2874_v32 = vmul.f32 0.18330133, %v1157_v9  ;;  %v1225_v56 = vmul.f32 2.5, %v2839_v38  ;;  %v1262_v18 = vmul.f32 2.75, %v2562_v10  ;;  %1164 = vst [vmem:[#allocation5 + $0x5b0] sm:$0xff] %v1160_v23  ;;  %v1263_v15 = vmul.f32 2.75, %v2608_v57 }
  0xb5   :  { %1170 = vst [vmem:[#allocation5 + $0x590] sm:$0xff] %v1166_v58  ;;  %1200 = vst [vmem:[#allocation5 + $0x40] sm:$0xff] %v1196_v61  ;;  %v1206_v41 = vmul.f32 0.09635372, %v1204_v31  ;;  %v1222_v3 = vmul.f32 %v1220_v7, %v1204_v31  ;;  %v1244_v36 = vmul.f32 2.0, %v1204_v31  ;;  %v2183_v16 = vpop.eup %2182  ;;  %v1223_v5 = vmul.f32 %v1221_v8, %v1205_v24 }
  0xb6   :  { %v2881_v53 = vmul.f32 0.09635372, %v1205_v24  ;;  %v1245_v2 = vmul.f32 2.0, %v1205_v24  ;;  %v2884_v59 = vmul.f32 2.6, %v2562_v10  ;;  %v2185_v13 = vpop.eup %2184  ;;  %v649_v26 = vxor.u32 2147483648, %v2183_v16 }
  0xb7   :  { %v1208_v6 = vmul.f32 %v1206_v41, %v2833_v33  ;;  %v1214_v48 = vmul.f32 %v1206_v41, %v2858_v43  ;;  %v1226_v49 = vsub.f32 %v1222_v3, %v1224_v34  ;;  %v646_v35 = vxor.u32 2147483648, %v2185_v13 }
  0xb8   :  { %v1227_v50 = vsub.f32 %v1223_v5, %v1225_v56  ;;  %v2889_v40 = vmul.f32 2.6, %v2608_v57  ;;  %v2892_v19 = vmul.f32 2.4285715, %v2562_v10  ;;  %v650_v51 = vsel %vm648_vm11, %v649_v26, %v2185_v13 }
  0xb9   :  { %v858_v52 = vsel %vm856_vm1, %v649_v26, %v2185_v13  ;;  %1212 = vst [vmem:[#allocation5 + $0xe0] sm:$0xff] %v1208_v6  ;;  %1218 = vst [vmem:[#allocation5 + $0xa0] sm:$0xff] %v1214_v48  ;;  %v1228_v54 = vmul.f32 0.063078314, %v1226_v49  ;;  %v1242_v55 = vmul.f32 %v1226_v49, %v2670_v47  ;;  %v647_v25 = vsel %vm645_vm12, %v2183_v16, %v646_v35 }
  0xba   :  { %v855_v37 = vsel %vm853_vm13, %v2183_v16, %v646_v35  ;;  %v2903_v9 = vmul.f32 0.063078314, %v1227_v50  ;;  %v1243_v7 = vmul.f32 %v1227_v50, %v2673_v30  ;;  %v651_v34 = vsel %vm644_vm14, %v647_v25, %v650_v51 }
  0xbb   :  { %v859_v8 = vsel %vm852_vm8, %v855_v37, %v858_v52  ;;  %v1230_v23 = vmul.f32 %v1228_v54, %v2833_v33  ;;  %v1236_v58 = vmul.f32 %v1228_v54, %v2858_v43  ;;  %v2914_v61 = vsel %vm642_vm10, nan, %v651_v34 }
  0xbc   :  { %v2918_v31 = vsel %vm642_vm10, nan, %v859_v8  ;;  %v1246_v24 = vsub.f32 %v1242_v55, %v1244_v36  ;;  %v1247_v56 = vsub.f32 %v1243_v7, %v1245_v2  ;;  %v984_v41 = vmul.f32 0.0, %v2914_v61 }
  0xbd   :  { %v980_v1 = vmul.f32 0.0, %v2918_v31  ;;  %1234 = vst [vmem:[#allocation5 + $0x160] sm:$0xff] %v1230_v23  ;;  %1240 = vst [vmem:[#allocation5 + $0x120] sm:$0xff] %v1236_v58  ;;  %v1266_v14 = vmul.f32 1.75, %v1226_v49  ;;  %v1267_v3 = vmul.f32 1.75, %v1227_v50 }
  0xbe   :  { %v1248_v16 = vmul.f32 0.045652732, %v1246_v24  ;;  %v2922_v5 = vmul.f32 0.045652732, %v1247_v56  ;;  %v1264_v13 = vmul.f32 %v1262_v18, %v1246_v24  ;;  %v1265_v26 = vmul.f32 %v1263_v15, %v1247_v56 }
  0xbf   :  { %v982_v6 = vsub.f32 %v2914_v61, %v980_v1  ;;  %v986_v44 = vadd.f32 %v984_v41, %v2918_v31  ;;  %v2926_v48 = vmul.f32 1.6, %v1246_v24  ;;  %v2928_v36 = vmul.f32 1.6, %v1247_v56 }
  0xc0   :  { %v1250_v2 = vmul.f32 %v1248_v16, %v2833_v33  ;;  %v1256_v35 = vmul.f32 %v1248_v16, %v2858_v43  ;;  %v1268_v51 = vsub.f32 %v1264_v13, %v1266_v14  ;;  %v1269_v49 = vsub.f32 %v1265_v26, %v1267_v3 }
  0xc1   :  { %v990_v50 = vmul.f32 %v2705_v28, %v982_v6  ;;  %v996_v52 = vmul.f32 %v2705_v28, %v986_v44  ;;  %v1007_v18 = vmul.f32 %v2764_v21, %v982_v6  ;;  %v1013_v15 = vmul.f32 %v2764_v21, %v986_v44 }
  0xc2   :  { %v1029_v54 = vmul.f32 %v2783_v63, %v982_v6  ;;  %v1035_v55 = vmul.f32 %v2783_v63, %v986_v44  ;;  %v1051_v25 = vmul.f32 %v2801_v20, %v982_v6  ;;  %v1057_v37 = vmul.f32 %v2801_v20, %v986_v44  ;;  %1254 = vst [vmem:[#allocation5 + $0x200] sm:$0xff] %v1250_v2 }
  0xc3   :  { %1260 = vst [vmem:[#allocation5 + $0x1c0] sm:$0xff] %v1256_v35  ;;  %994 = vst [vmem:[#allocation5 + $0x38] sm:$0xff] %v990_v50  ;;  %v1073_v28 = vmul.f32 %v2808_v45, %v982_v6  ;;  %v1079_v7 = vmul.f32 %v2808_v45, %v986_v44  ;;  %v1095_v21 = vmul.f32 %v2816_v62, %v982_v6  ;;  %v1270_v56 = vmul.f32 0.035093535, %v1268_v51 }
  0xc4   :  { %999 = vst [vmem:[#allocation5 + $0x18] sm:$0xff] %v996_v52  ;;  %1011 = vst [vmem:[#allocation5 + $0x78] sm:$0xff] %v1007_v18  ;;  %v1101_v34 = vmul.f32 %v2816_v62, %v986_v44  ;;  %v1117_v63 = vmul.f32 %v2831_v29, %v982_v6  ;;  %v1123_v20 = vmul.f32 %v2831_v29, %v986_v44  ;;  %v1271_v1 = vmul.f32 0.035093535, %v1269_v49 }
  0xc5   :  { %1017 = vst [vmem:[#allocation5 + $0x58] sm:$0xff] %v1013_v15  ;;  %1033 = vst [vmem:[#allocation5 + $0xd8] sm:$0xff] %v1029_v54  ;;  %v1139_v8 = vmul.f32 %v2851_v42, %v982_v6  ;;  %v1145_v23 = vmul.f32 %v2851_v42, %v986_v44  ;;  %v1161_v45 = vmul.f32 %v2874_v32, %v982_v6  ;;  %v1308_v3 = vmul.f32 1.5, %v1268_v51 }
  0xc6   :  { %1039 = vst [vmem:[#allocation5 + $0xb8] sm:$0xff] %v1035_v55  ;;  %1055 = vst [vmem:[#allocation5 + $0x158] sm:$0xff] %v1051_v25  ;;  %v1167_v62 = vmul.f32 %v2874_v32, %v986_v44  ;;  %v1177_v58 = vmul.f32 %v982_v6, %v2914_v61  ;;  %v1179_v24 = vmul.f32 %v986_v44, %v2918_v31 }
  0xc7   :  { %1061 = vst [vmem:[#allocation5 + $0x138] sm:$0xff] %v1057_v37  ;;  %1077 = vst [vmem:[#allocation5 + $0x1f8] sm:$0xff] %v1073_v28  ;;  %v1183_v29 = vmul.f32 %v986_v44, %v2914_v61  ;;  %v1185_v42 = vmul.f32 %v982_v6, %v2918_v31  ;;  %v1286_v32 = vmul.f32 %v2884_v59, %v1268_v51  ;;  %v1309_v44 = vmul.f32 1.5, %v1269_v49 }
  0xc8   :  { %1083 = vst [vmem:[#allocation5 + $0x1d8] sm:$0xff] %v1079_v7  ;;  %1099 = vst [vmem:[#allocation5 + $0x2b8] sm:$0xff] %v1095_v21  ;;  %v2954_v41 = vsub.f32 %v1177_v58, %v1179_v24  ;;  %v1287_v14 = vmul.f32 %v2889_v40, %v1269_v49  ;;  %v1272_v13 = vmul.f32 %v1270_v56, %v2833_v33 }
  0xc9   :  { %1105 = vst [vmem:[#allocation5 + $0x298] sm:$0xff] %v1101_v34  ;;  %1121 = vst [vmem:[#allocation5 + $0x398] sm:$0xff] %v1117_v63  ;;  %v2958_v16 = vadd.f32 %v1185_v42, %v1183_v29  ;;  %v1278_v26 = vmul.f32 %v1270_v56, %v2858_v43  ;;  %v1352_v15 = vmul.f32 %v2833_v33, %v2751_v60 }
  0xca   :  { %1127 = vst [vmem:[#allocation5 + $0x378] sm:$0xff] %v1123_v20  ;;  %1143 = vst [vmem:[#allocation5 + $0x498] sm:$0xff] %v1139_v8  ;;  %v1191_v6 = vmul.f32 %v2855_v4, %v2954_v41  ;;  %v1209_v2 = vmul.f32 %v2881_v53, %v2954_v41  ;;  %v1231_v35 = vmul.f32 %v2903_v9, %v2954_v41 }
  0xcb   :  { %1149 = vst [vmem:[#allocation5 + $0x478] sm:$0xff] %v1145_v23  ;;  %1165 = vst [vmem:[#allocation5 + $0x5b8] sm:$0xff] %v1161_v45  ;;  %v1251_v59 = vmul.f32 %v2922_v5, %v2954_v41  ;;  %v1197_v40 = vmul.f32 %v2855_v4, %v2958_v16  ;;  %v1215_v51 = vmul.f32 %v2881_v53, %v2958_v16 }
  0xcc   :  { %1171 = vst [vmem:[#allocation5 + $0x598] sm:$0xff] %v1167_v62  ;;  %v1237_v49 = vmul.f32 %v2903_v9, %v2958_v16  ;;  %v1257_v50 = vmul.f32 %v2922_v5, %v2958_v16  ;;  %1276 = vst [vmem:[#allocation5 + $0x2c0] sm:$0xff] %v1272_v13  ;;  %v1273_v52 = vmul.f32 %v1271_v1, %v2954_v41  ;;  %v1327_v9 = vmul.f32 2.4285715, %v2608_v57 }
  0xcd   :  { %1282 = vst [vmem:[#allocation5 + $0x280] sm:$0xff] %v1278_v26  ;;  %1195 = vst [vmem:[#allocation5 + $0x88] sm:$0xff] %v1191_v6  ;;  %v1279_v18 = vmul.f32 %v1271_v1, %v2958_v16  ;;  %v1290_v4 = vsub.f32 %v1286_v32, %v2926_v48  ;;  %v1291_v53 = vsub.f32 %v1287_v14, %v2928_v36  ;;  %v1348_v5 = vmul.f32 5.0, %v2583_v22 }
  0xce   :  { %1213 = vst [vmem:[#allocation5 + $0xe8] sm:$0xff] %v1209_v2  ;;  %1235 = vst [vmem:[#allocation5 + $0x168] sm:$0xff] %v1231_v35  ;;  %v1354_v54 = vmul.f32 %v2858_v43, %v2755_v11  ;;  %v1355_v62 = vmul.f32 %v2958_v16, %v2918_v31  ;;  %v1358_v58 = vmul.f32 %v2858_v43, %v2751_v60 }
  0xcf   :  { %1255 = vst [vmem:[#allocation5 + $0x208] sm:$0xff] %v1251_v59  ;;  %1201 = vst [vmem:[#allocation5 + $0x48] sm:$0xff] %v1197_v40  ;;  %v1292_v55 = vmul.f32 0.028097313, %v1290_v4  ;;  %v1293_v48 = vmul.f32 0.028097313, %v1291_v53  ;;  %v1306_v36 = vmul.f32 %v1290_v4, %v2698_v17  ;;  %v1307_v25 = vmul.f32 %v1291_v53, %v2722_v0 }
  0xd0   :  { %1219 = vst [vmem:[#allocation5 + $0xa8] sm:$0xff] %v1215_v51  ;;  %1241 = vst [vmem:[#allocation5 + $0x128] sm:$0xff] %v1237_v49  ;;  %v1330_v37 = vmul.f32 1.4285715, %v1290_v4  ;;  %v1331_v28 = vmul.f32 1.4285715, %v1291_v53  ;;  %v2991_v7 = vmul.f32 %v1348_v5, %v2819_v27  ;;  %v2993_v21 = vsub.f32 %v1352_v15, %v1354_v54 }
  0xd1   :  { %1261 = vst [vmem:[#allocation5 + $0x1c8] sm:$0xff] %v1257_v50  ;;  %1277 = vst [vmem:[#allocation5 + $0x2c8] sm:$0xff] %v1273_v52  ;;  %v1294_v34 = vmul.f32 %v1292_v55, %v2833_v33  ;;  %v1295_v63 = vmul.f32 %v1293_v48, %v2954_v41  ;;  %v1300_v20 = vmul.f32 %v1292_v55, %v2858_v43  ;;  %v1349_v0 = vmul.f32 5.0, %v2687_v12 }
  0xd2   :  { %1283 = vst [vmem:[#allocation5 + $0x288] sm:$0xff] %v1279_v18  ;;  %v1301_v8 = vmul.f32 %v1293_v48, %v2958_v16  ;;  %v1310_v23 = vsub.f32 %v1306_v36, %v1308_v3  ;;  %v1311_v45 = vsub.f32 %v1307_v25, %v1309_v44  ;;  %v1364_v17 = vmul.f32 0.039336238, %v2991_v7 }
  0xd3   :  { %1298 = vst [vmem:[#allocation5 + $0x3a0] sm:$0xff] %v1294_v34  ;;  %1299 = vst [vmem:[#allocation5 + $0x3a8] sm:$0xff] %v1295_v63  ;;  %v1353_v27 = vmul.f32 %v2954_v41, %v2914_v61  ;;  %v1360_v24 = vmul.f32 %v2833_v33, %v2755_v11  ;;  %v3012_v14 = vmul.f32 %v1349_v0, %v2839_v38  ;;  %v1378_v49 = vmul.f32 7.0, %v2562_v10 }
  0xd4   :  { %1304 = vst [vmem:[#allocation5 + $0x360] sm:$0xff] %v1300_v20  ;;  %1305 = vst [vmem:[#allocation5 + $0x368] sm:$0xff] %v1301_v8  ;;  %v1312_v29 = vmul.f32 0.023169639, %v1310_v23  ;;  %v1313_v42 = vmul.f32 0.023169639, %v1311_v45  ;;  %v1328_v56 = vmul.f32 %v2892_v19, %v1310_v23  ;;  %v1329_v1 = vmul.f32 %v1327_v9, %v1311_v45 }
  0xd5   :  { %v1366_v32 = vmul.f32 %v1364_v17, %v2993_v21  ;;  %v3014_v3 = vsub.f32 %v1353_v27, %v1355_v62  ;;  %v3016_v13 = vadd.f32 %v1360_v24, %v1358_v58  ;;  %v1365_v59 = vmul.f32 0.039336238, %v3012_v14 }
  0xd6   :  { %v1314_v26 = vmul.f32 %v1312_v29, %v2833_v33  ;;  %v1315_v44 = vmul.f32 %v1313_v42, %v2954_v41  ;;  %v1320_v6 = vmul.f32 %v1312_v29, %v2858_v43  ;;  %v1321_v2 = vmul.f32 %v1313_v42, %v2958_v16 }
  0xd7   :  { %v1332_v35 = vsub.f32 %v1328_v56, %v1330_v37  ;;  %v1333_v19 = vsub.f32 %v1329_v1, %v1331_v28  ;;  %1370 = vst [vmem:[#allocation5 + $0xf0] sm:$0xff] %v1366_v32  ;;  %v1372_v38 = vmul.f32 %v1364_v17, %v3016_v13  ;;  %v1359_v40 = vmul.f32 %v2958_v16, %v2914_v61 }
  0xd8   :  { %1318 = vst [vmem:[#allocation5 + $0x4a0] sm:$0xff] %v1314_v26  ;;  %1319 = vst [vmem:[#allocation5 + $0x4a8] sm:$0xff] %v1315_v44  ;;  %v1361_v51 = vmul.f32 %v2954_v41, %v2918_v31  ;;  %v1379_v50 = vmul.f32 7.0, %v2608_v57  ;;  %v1367_v4 = vmul.f32 %v1365_v59, %v3014_v3  ;;  %v1396_v53 = vmul.f32 4.5, %v2562_v10 }
  0xd9   :  { %1324 = vst [vmem:[#allocation5 + $0x460] sm:$0xff] %v1320_v6  ;;  %1325 = vst [vmem:[#allocation5 + $0x468] sm:$0xff] %v1321_v2  ;;  %v1334_v52 = vmul.f32 0.019539988, %v1332_v35  ;;  %v1335_v18 = vmul.f32 0.019539988, %v1333_v19  ;;  %v1380_v5 = vmul.f32 %v1378_v49, %v2991_v7  ;;  %v1508_v6 = vmul.f32 %v2993_v21, %v2751_v60 }
  0xda   :  { %1376 = vst [vmem:[#allocation5 + $0x90] sm:$0xff] %v1372_v38  ;;  %v3032_v9 = vadd.f32 %v1361_v51, %v1359_v40  ;;  %v1381_v15 = vmul.f32 %v1379_v50, %v3012_v14  ;;  %v1400_v54 = vmul.f32 3.5, %v2991_v7  ;;  %1371 = vst [vmem:[#allocation5 + $0xf8] sm:$0xff] %v1367_v4  ;;  %v1397_v20 = vmul.f32 4.5, %v2608_v57 }
  0xdb   :  { %v1336_v55 = vmul.f32 %v1334_v52, %v2833_v33  ;;  %v1337_v48 = vmul.f32 %v1335_v18, %v2954_v41  ;;  %v1342_v36 = vmul.f32 %v1334_v52, %v2858_v43  ;;  %v1343_v25 = vmul.f32 %v1335_v18, %v2958_v16 }
  0xdc   :  { %v1373_v37 = vmul.f32 %v1365_v59, %v3032_v9  ;;  %v1382_v28 = vmul.f32 0.016858388, %v1380_v5  ;;  %v1383_v34 = vmul.f32 0.016858388, %v1381_v15  ;;  %v1398_v63 = vmul.f32 %v1396_v53, %v1380_v5 }
  0xdd   :  { %1340 = vst [vmem:[#allocation5 + $0x5c0] sm:$0xff] %v1336_v55  ;;  %1341 = vst [vmem:[#allocation5 + $0x5c8] sm:$0xff] %v1337_v48  ;;  %v1401_v33 = vmul.f32 3.5, %v3012_v14  ;;  %v1418_v41 = vmul.f32 3.6666667, %v2562_v10  ;;  %v1399_v0 = vmul.f32 %v1397_v20, %v1381_v15  ;;  %v1440_v58 = vmul.f32 3.25, %v2562_v10 }
  0xde   :  { %1346 = vst [vmem:[#allocation5 + $0x580] sm:$0xff] %v1342_v36  ;;  %1347 = vst [vmem:[#allocation5 + $0x588] sm:$0xff] %v1343_v25  ;;  %v1422_v8 = vmul.f32 2.6666667, %v1380_v5  ;;  %v1384_v43 = vmul.f32 %v1382_v28, %v2993_v21  ;;  %v1385_v16 = vmul.f32 %v1383_v34, %v3014_v3  ;;  %v1390_v23 = vmul.f32 %v1382_v28, %v3016_v13 }
  0xdf   :  { %1377 = vst [vmem:[#allocation5 + $0x98] sm:$0xff] %v1373_v37  ;;  %v1391_v45 = vmul.f32 %v1383_v34, %v3032_v9  ;;  %v1402_v17 = vsub.f32 %v1398_v63, %v1400_v54  ;;  %v1419_v27 = vmul.f32 3.6666667, %v2608_v57  ;;  %v1423_v62 = vmul.f32 2.6666667, %v1381_v15 }
  0xe0   :  { %1388 = vst [vmem:[#allocation5 + $0x170] sm:$0xff] %v1384_v43  ;;  %1389 = vst [vmem:[#allocation5 + $0x178] sm:$0xff] %v1385_v16  ;;  %v1441_v24 = vmul.f32 3.25, %v2608_v57  ;;  %v1482_v29 = vmul.f32 2.8333333, %v2562_v10  ;;  %v1403_v1 = vsub.f32 %v1399_v0, %v1401_v33  ;;  %v1504_v44 = vmul.f32 7.0, %v2583_v22 }
  0xe1   :  { %1394 = vst [vmem:[#allocation5 + $0x110] sm:$0xff] %v1390_v23  ;;  %1395 = vst [vmem:[#allocation5 + $0x118] sm:$0xff] %v1391_v45  ;;  %v3054_v42 = vmul.f32 2.8333333, %v2608_v57  ;;  %v1404_v56 = vmul.f32 0.009318825, %v1402_v17  ;;  %v1420_v32 = vmul.f32 %v1418_v41, %v1402_v17  ;;  %v1510_v2 = vmul.f32 %v3016_v13, %v2755_v11 }
  0xe2   :  { %v1444_v26 = vmul.f32 2.25, %v1402_v17  ;;  %v1505_v35 = vmul.f32 7.0, %v2687_v12  ;;  %v1405_v59 = vmul.f32 0.009318825, %v1403_v1  ;;  %v1421_v51 = vmul.f32 %v1419_v27, %v1403_v1 }
  0xe3   :  { %v1406_v19 = vmul.f32 %v1404_v56, %v2993_v21  ;;  %v1412_v38 = vmul.f32 %v1404_v56, %v3016_v13  ;;  %v1424_v40 = vsub.f32 %v1420_v32, %v1422_v8  ;;  %v1445_v49 = vmul.f32 2.25, %v1403_v1 }
  0xe4   :  { %v3065_v50 = vmul.f32 %v1504_v44, %v2991_v7  ;;  %v3067_v52 = vsub.f32 %v1508_v6, %v1510_v2  ;;  %v1407_v18 = vmul.f32 %v1405_v59, %v3014_v3  ;;  %v1413_v4 = vmul.f32 %v1405_v59, %v3032_v9 }
  0xe5   :  { %1410 = vst [vmem:[#allocation5 + $0x210] sm:$0xff] %v1406_v19  ;;  %1416 = vst [vmem:[#allocation5 + $0x1b0] sm:$0xff] %v1412_v38  ;;  %v1426_v53 = vmul.f32 0.0058489223, %v1424_v40  ;;  %v1442_v5 = vmul.f32 %v1440_v58, %v1424_v40  ;;  %v1425_v15 = vsub.f32 %v1421_v51, %v1423_v62  ;;  %v1464_v54 = vmul.f32 2.0, %v1424_v40 }
  0xe6   :  { %v1520_v55 = vmul.f32 0.00596034, %v3065_v50  ;;  %v3073_v48 = vmul.f32 %v1505_v35, %v3012_v14  ;;  %1411 = vst [vmem:[#allocation5 + $0x218] sm:$0xff] %v1407_v18  ;;  %1417 = vst [vmem:[#allocation5 + $0x1b8] sm:$0xff] %v1413_v4  ;;  %v1509_v37 = vmul.f32 %v3014_v3, %v2914_v61  ;;  %v1511_v8 = vmul.f32 %v3032_v9, %v2918_v31 }
  0xe7   :  { %v1428_v7 = vmul.f32 %v1426_v53, %v2993_v21  ;;  %v1434_v36 = vmul.f32 %v1426_v53, %v3016_v13  ;;  %v1446_v25 = vsub.f32 %v1442_v5, %v1444_v26  ;;  %v1427_v28 = vmul.f32 0.0058489223, %v1425_v15 }
  0xe8   :  { %v1443_v34 = vmul.f32 %v1441_v24, %v1425_v15  ;;  %v1465_v63 = vmul.f32 2.0, %v1425_v15  ;;  %v1522_v20 = vmul.f32 %v1520_v55, %v3067_v52  ;;  %v1521_v45 = vmul.f32 0.00596034, %v3073_v48 }
  0xe9   :  { %1432 = vst [vmem:[#allocation5 + $0x2d0] sm:$0xff] %v1428_v7  ;;  %1438 = vst [vmem:[#allocation5 + $0x270] sm:$0xff] %v1434_v36  ;;  %v1448_v33 = vmul.f32 0.0039735604, %v1446_v25  ;;  %v1462_v14 = vmul.f32 %v1446_v25, %v2670_v47  ;;  %v1486_v41 = vmul.f32 1.8333334, %v1446_v25  ;;  %v1429_v43 = vmul.f32 %v1427_v28, %v3014_v3 }
  0xea   :  { %v1435_v16 = vmul.f32 %v1427_v28, %v3032_v9  ;;  %v1447_v23 = vsub.f32 %v1443_v34, %v1445_v49  ;;  %1526 = vst [vmem:[#allocation5 + $0x180] sm:$0xff] %v1522_v20  ;;  %v3088_v62 = vsub.f32 %v1509_v37, %v1511_v8  ;;  %v1514_v56 = vmul.f32 %v3016_v13, %v2751_v60 }
  0xeb   :  { %v1450_v17 = vmul.f32 %v1448_v33, %v2993_v21  ;;  %v1456_v0 = vmul.f32 %v1448_v33, %v3016_v13  ;;  %v1466_v27 = vsub.f32 %v1462_v14, %v1464_v54  ;;  %1433 = vst [vmem:[#allocation5 + $0x2d8] sm:$0xff] %v1429_v43  ;;  %v1516_v44 = vmul.f32 %v2993_v21, %v2755_v11 }
  0xec   :  { %1439 = vst [vmem:[#allocation5 + $0x278] sm:$0xff] %v1435_v16  ;;  %v1449_v47 = vmul.f32 0.0039735604, %v1447_v23  ;;  %v1463_v58 = vmul.f32 %v1447_v23, %v2673_v30  ;;  %v1487_v24 = vmul.f32 1.8333334, %v1447_v23  ;;  %v1523_v26 = vmul.f32 %v1521_v45, %v3088_v62 }
  0xed   :  { %1454 = vst [vmem:[#allocation5 + $0x3b0] sm:$0xff] %v1450_v17  ;;  %1460 = vst [vmem:[#allocation5 + $0x350] sm:$0xff] %v1456_v0  ;;  %v1468_v1 = vmul.f32 0.0028519854, %v1466_v27  ;;  %v1484_v32 = vmul.f32 %v1482_v29, %v1466_v27  ;;  %v1515_v30 = vmul.f32 %v3032_v9, %v2914_v61  ;;  %v3102_v29 = vadd.f32 %v1516_v44, %v1514_v56 }
  0xee   :  { %v1451_v6 = vmul.f32 %v1449_v47, %v3014_v3  ;;  %v1457_v2 = vmul.f32 %v1449_v47, %v3032_v9  ;;  %v1467_v35 = vsub.f32 %v1463_v58, %v1465_v63  ;;  %1527 = vst [vmem:[#allocation5 + $0x188] sm:$0xff] %v1523_v26  ;;  %v1517_v49 = vmul.f32 %v3014_v3, %v2918_v31 }
  0xef   :  { %v1470_v19 = vmul.f32 %v1468_v1, %v2993_v21  ;;  %v1476_v59 = vmul.f32 %v1468_v1, %v3016_v13  ;;  %v1488_v38 = vsub.f32 %v1484_v32, %v1486_v41  ;;  %v1534_v18 = vmul.f32 9.0, %v2562_v10 }
  0xf0   :  { %1455 = vst [vmem:[#allocation5 + $0x3b8] sm:$0xff] %v1451_v6  ;;  %1461 = vst [vmem:[#allocation5 + $0x358] sm:$0xff] %v1457_v2  ;;  %v1469_v40 = vmul.f32 0.0028519854, %v1467_v35  ;;  %v1485_v51 = vmul.f32 %v3054_v42, %v1467_v35  ;;  %v1528_v53 = vmul.f32 %v1520_v55, %v3102_v29  ;;  %v1535_v5 = vmul.f32 9.0, %v2608_v57 }
  0xf1   :  { %1474 = vst [vmem:[#allocation5 + $0x4b0] sm:$0xff] %v1470_v19  ;;  %1480 = vst [vmem:[#allocation5 + $0x450] sm:$0xff] %v1476_v59  ;;  %v1490_v4 = vmul.f32 0.0021319874, %v1488_v38  ;;  %v1552_v15 = vmul.f32 5.5, %v2562_v10  ;;  %v3113_v42 = vadd.f32 %v1517_v49, %v1515_v30  ;;  %v1536_v28 = vmul.f32 %v1534_v18, %v3065_v50 }
  0xf2   :  { %v1471_v54 = vmul.f32 %v1469_v40, %v3014_v3  ;;  %v1477_v7 = vmul.f32 %v1469_v40, %v3032_v9  ;;  %v1489_v36 = vsub.f32 %v1485_v51, %v1487_v24  ;;  %1532 = vst [vmem:[#allocation5 + $0x100] sm:$0xff] %v1528_v53  ;;  %v1537_v55 = vmul.f32 %v1535_v5, %v3073_v48 }
  0xf3   :  { %v1492_v25 = vmul.f32 %v1490_v4, %v2993_v21  ;;  %v1498_v37 = vmul.f32 %v1490_v4, %v3016_v13  ;;  %v1529_v63 = vmul.f32 %v1521_v45, %v3113_v42  ;;  %v1556_v20 = vmul.f32 4.5, %v3065_v50 }
  0xf4   :  { %1475 = vst [vmem:[#allocation5 + $0x4b8] sm:$0xff] %v1471_v54  ;;  %1481 = vst [vmem:[#allocation5 + $0x458] sm:$0xff] %v1477_v7  ;;  %v1491_v34 = vmul.f32 0.0021319874, %v1489_v36  ;;  %v1553_v33 = vmul.f32 5.5, %v2608_v57  ;;  %v1554_v41 = vmul.f32 %v1552_v15, %v1536_v28  ;;  %v1557_v13 = vmul.f32 4.5, %v3073_v48 }
  0xf5   :  { %1496 = vst [vmem:[#allocation5 + $0x5d0] sm:$0xff] %v1492_v25  ;;  %1502 = vst [vmem:[#allocation5 + $0x570] sm:$0xff] %v1498_v37  ;;  %v1538_v14 = vmul.f32 0.002196468, %v1536_v28  ;;  %v1539_v21 = vmul.f32 0.002196468, %v1537_v55  ;;  %v1644_v5 = vmul.f32 %v3067_v52, %v2751_v60  ;;  %v1646_v15 = vmul.f32 %v3102_v29, %v2755_v11 }
  0xf6   :  { %v1493_v8 = vmul.f32 %v1491_v34, %v3014_v3  ;;  %v1499_v43 = vmul.f32 %v1491_v34, %v3032_v9  ;;  %1533 = vst [vmem:[#allocation5 + $0x108] sm:$0xff] %v1529_v63  ;;  %v1555_v16 = vmul.f32 %v1553_v33, %v1537_v55  ;;  %v1574_v23 = vmul.f32 4.3333335, %v2562_v10 }
  0xf7   :  { %v1540_v45 = vmul.f32 %v1538_v14, %v3067_v52  ;;  %v1541_v17 = vmul.f32 %v1539_v21, %v3088_v62  ;;  %v1546_v0 = vmul.f32 %v1538_v14, %v3102_v29  ;;  %v1547_v27 = vmul.f32 %v1539_v21, %v3113_v42 }
  0xf8   :  { %1497 = vst [vmem:[#allocation5 + $0x5d8] sm:$0xff] %v1493_v8  ;;  %1503 = vst [vmem:[#allocation5 + $0x578] sm:$0xff] %v1499_v43  ;;  %v1558_v47 = vsub.f32 %v1554_v41, %v1556_v20  ;;  %v1559_v58 = vsub.f32 %v1555_v16, %v1557_v13  ;;  %v1578_v24 = vmul.f32 3.3333333, %v1536_v28  ;;  %v1575_v3 = vmul.f32 4.3333335, %v2608_v57 }
  0xf9   :  { %1544 = vst [vmem:[#allocation5 + $0x220] sm:$0xff] %v1540_v45  ;;  %1545 = vst [vmem:[#allocation5 + $0x228] sm:$0xff] %v1541_v17  ;;  %v1579_v9 = vmul.f32 3.3333333, %v1537_v55  ;;  %v1596_v56 = vmul.f32 3.75, %v2562_v10  ;;  %v1597_v1 = vmul.f32 3.75, %v2608_v57  ;;  %v1645_v7 = vmul.f32 %v3088_v62, %v2914_v61 }
  0xfa   :  { %1550 = vst [vmem:[#allocation5 + $0x1a0] sm:$0xff] %v1546_v0  ;;  %1551 = vst [vmem:[#allocation5 + $0x1a8] sm:$0xff] %v1547_v27  ;;  %v1618_v32 = vmul.f32 3.4, %v2562_v10  ;;  %v1560_v26 = vmul.f32 0.0010678623, %v1558_v47  ;;  %v1576_v6 = vmul.f32 %v1574_v23, %v1558_v47  ;;  %v1577_v2 = vmul.f32 %v1575_v3, %v1559_v58 }
  0xfb   :  { %v1561_v44 = vmul.f32 0.0010678623, %v1559_v58  ;;  %v1600_v35 = vmul.f32 2.75, %v1558_v47  ;;  %v1601_v30 = vmul.f32 2.75, %v1559_v58  ;;  %v1619_v19 = vmul.f32 3.4, %v2608_v57 }
  0xfc   :  { %v1640_v59 = vmul.f32 9.0, %v2583_v22  ;;  %v1562_v38 = vmul.f32 %v1560_v26, %v3067_v52  ;;  %v1568_v51 = vmul.f32 %v1560_v26, %v3102_v29  ;;  %v1580_v18 = vsub.f32 %v1576_v6, %v1578_v24 }
  0xfd   :  { %v1563_v40 = vmul.f32 %v1561_v44, %v3088_v62  ;;  %v1569_v49 = vmul.f32 %v1561_v44, %v3113_v42  ;;  %v1581_v4 = vsub.f32 %v1577_v2, %v1579_v9  ;;  %v1641_v54 = vmul.f32 9.0, %v2687_v12 }
  0xfe   :  { %v3141_v53 = vmul.f32 %v1640_v59, %v3065_v50  ;;  %1566 = vst [vmem:[#allocation5 + $0x2e0] sm:$0xff] %v1562_v38  ;;  %1572 = vst [vmem:[#allocation5 + $0x260] sm:$0xff] %v1568_v51  ;;  %v1647_v36 = vmul.f32 %v3113_v42, %v2918_v31  ;;  %v1582_v50 = vmul.f32 0.00059903675, %v1580_v18  ;;  %v1598_v37 = vmul.f32 %v1596_v56, %v1580_v18 }
  0xff   :  { %1567 = vst [vmem:[#allocation5 + $0x2e8] sm:$0xff] %v1563_v40  ;;  %1573 = vst [vmem:[#allocation5 + $0x268] sm:$0xff] %v1569_v49  ;;  %v1583_v25 = vmul.f32 0.00059903675, %v1581_v4  ;;  %v1599_v28 = vmul.f32 %v1597_v1, %v1581_v4  ;;  %v1622_v55 = vmul.f32 2.4, %v1580_v18  ;;  %v3152_v63 = vsub.f32 %v1644_v5, %v1646_v15 }
 0x100   :  { %v1623_v34 = vmul.f32 2.4, %v1581_v4  ;;  %v1656_v20 = vmul.f32 0.00069458416, %v3141_v53  ;;  %v1584_v33 = vmul.f32 %v1582_v50, %v3067_v52  ;;  %v1590_v21 = vmul.f32 %v1582_v50, %v3102_v29 }
 0x101   :  { %v1585_v14 = vmul.f32 %v1583_v25, %v3088_v62  ;;  %v1591_v41 = vmul.f32 %v1583_v25, %v3113_v42  ;;  %v1602_v13 = vsub.f32 %v1598_v37, %v1600_v35  ;;  %v1603_v8 = vsub.f32 %v1599_v28, %v1601_v30 }
 0x102   :  { %v1658_v43 = vmul.f32 %v1656_v20, %v3152_v63  ;;  %v3161_v16 = vmul.f32 %v1641_v54, %v3073_v48  ;;  %1588 = vst [vmem:[#allocation5 + $0x3c0] sm:$0xff] %v1584_v33  ;;  %1594 = vst [vmem:[#allocation5 + $0x340] sm:$0xff] %v1590_v21  ;;  %v3163_v23 = vsub.f32 %v1645_v7, %v1647_v36  ;;  %v1670_v56 = vmul.f32 11.0, %v2562_v10 }
 0x103   :  { %1589 = vst [vmem:[#allocation5 + $0x3c8] sm:$0xff] %v1585_v14  ;;  %1595 = vst [vmem:[#allocation5 + $0x348] sm:$0xff] %v1591_v41  ;;  %v1650_v45 = vmul.f32 %v3102_v29, %v2751_v60  ;;  %v1652_v17 = vmul.f32 %v3067_v52, %v2755_v11  ;;  %v1651_v0 = vmul.f32 %v3113_v42, %v2914_v61  ;;  %v1604_v27 = vmul.f32 0.00036818974, %v1602_v13 }
 0x104   :  { %v1605_v47 = vmul.f32 0.00036818974, %v1603_v8  ;;  %v1620_v58 = vmul.f32 %v1618_v32, %v1602_v13  ;;  %v1621_v48 = vmul.f32 %v1619_v19, %v1603_v8  ;;  %1662 = vst [vmem:[#allocation5 + $0x230] sm:$0xff] %v1658_v43  ;;  %v1657_v24 = vmul.f32 0.00069458416, %v3161_v16 }
 0x105   :  { %v3172_v3 = vadd.f32 %v1652_v17, %v1650_v45  ;;  %v1653_v9 = vmul.f32 %v3088_v62, %v2918_v31  ;;  %v1606_v1 = vmul.f32 %v1604_v27, %v3067_v52  ;;  %v1612_v44 = vmul.f32 %v1604_v27, %v3102_v29 }
 0x106   :  { %v1607_v26 = vmul.f32 %v1605_v47, %v3088_v62  ;;  %v1613_v6 = vmul.f32 %v1605_v47, %v3113_v42  ;;  %v1624_v32 = vsub.f32 %v1620_v58, %v1622_v55  ;;  %v1625_v2 = vsub.f32 %v1621_v48, %v1623_v34 }
 0x107   :  { %v1659_v35 = vmul.f32 %v1657_v24, %v3163_v23  ;;  %v1664_v30 = vmul.f32 %v1656_v20, %v3172_v3  ;;  %1610 = vst [vmem:[#allocation5 + $0x4c0] sm:$0xff] %v1606_v1  ;;  %1616 = vst [vmem:[#allocation5 + $0x440] sm:$0xff] %v1612_v44  ;;  %v3183_v19 = vadd.f32 %v1653_v9, %v1651_v0  ;;  %v1671_v38 = vmul.f32 11.0, %v2608_v57 }
 0x108   :  { %1611 = vst [vmem:[#allocation5 + $0x4c8] sm:$0xff] %v1607_v26  ;;  %1617 = vst [vmem:[#allocation5 + $0x448] sm:$0xff] %v1613_v6  ;;  %v1672_v59 = vmul.f32 %v1670_v56, %v3141_v53  ;;  %v1688_v40 = vmul.f32 6.5, %v2562_v10  ;;  %v1626_v51 = vmul.f32 0.00024140003, %v1624_v32  ;;  %v1692_v18 = vmul.f32 5.5, %v3141_v53 }
 0x109   :  { %v1627_v49 = vmul.f32 0.00024140003, %v1625_v2  ;;  %1663 = vst [vmem:[#allocation5 + $0x238] sm:$0xff] %v1659_v35  ;;  %1668 = vst [vmem:[#allocation5 + $0x190] sm:$0xff] %v1664_v30  ;;  %v1689_v4 = vmul.f32 6.5, %v2608_v57  ;;  %v1665_v5 = vmul.f32 %v1657_v24, %v3183_v19  ;;  %v1673_v54 = vmul.f32 %v1671_v38, %v3161_v16 }
 0x10a   :  { %v1674_v15 = vmul.f32 0.00022766899, %v1672_v59  ;;  %v1690_v7 = vmul.f32 %v1688_v40, %v1672_v59  ;;  %v1628_v36 = vmul.f32 %v1626_v51, %v3067_v52  ;;  %v1634_v25 = vmul.f32 %v1626_v51, %v3102_v29 }
 0x10b   :  { %v1629_v50 = vmul.f32 %v1627_v49, %v3088_v62  ;;  %v1635_v37 = vmul.f32 %v1627_v49, %v3113_v42  ;;  %1669 = vst [vmem:[#allocation5 + $0x198] sm:$0xff] %v1665_v5  ;;  %v1675_v55 = vmul.f32 0.00022766899, %v1673_v54  ;;  %v1691_v33 = vmul.f32 %v1689_v4, %v1673_v54 }
 0x10c   :  { %v1676_v28 = vmul.f32 %v1674_v15, %v3152_v63  ;;  %v1682_v34 = vmul.f32 %v1674_v15, %v3172_v3  ;;  %v1694_v20 = vsub.f32 %v1690_v7, %v1692_v18  ;;  %1632 = vst [vmem:[#allocation5 + $0x5e0] sm:$0xff] %v1628_v36  ;;  %1638 = vst [vmem:[#allocation5 + $0x560] sm:$0xff] %v1634_v25  ;;  %v1693_v52 = vmul.f32 5.5, %v3161_v16 }
 0x10d   :  { %1633 = vst [vmem:[#allocation5 + $0x5e8] sm:$0xff] %v1629_v50  ;;  %1639 = vst [vmem:[#allocation5 + $0x568] sm:$0xff] %v1635_v37  ;;  %v1712_v14 = vmul.f32 4.0, %v1672_v59  ;;  %v1713_v62 = vmul.f32 4.0, %v1673_v54  ;;  %v1677_v29 = vmul.f32 %v1675_v55, %v3163_v23  ;;  %v1683_v42 = vmul.f32 %v1675_v55, %v3183_v19 }
 0x10e   :  { %1680 = vst [vmem:[#allocation5 + $0x2f0] sm:$0xff] %v1676_v28  ;;  %1686 = vst [vmem:[#allocation5 + $0x250] sm:$0xff] %v1682_v34  ;;  %v1696_v21 = vmul.f32 9.983946e-05, %v1694_v20  ;;  %v1710_v41 = vmul.f32 %v1694_v20, %v2861_v39  ;;  %v1695_v13 = vsub.f32 %v1691_v33, %v1693_v52  ;;  %v1730_v8 = vmul.f32 4.25, %v2562_v10 }
 0x10f   :  { %v1734_v43 = vmul.f32 3.25, %v1694_v20  ;;  %v1731_v45 = vmul.f32 4.25, %v2608_v57  ;;  %1681 = vst [vmem:[#allocation5 + $0x2f8] sm:$0xff] %v1677_v29  ;;  %1687 = vst [vmem:[#allocation5 + $0x258] sm:$0xff] %v1683_v42  ;;  %v1752_v47 = vmul.f32 11.0, %v2583_v22  ;;  %v1756_v39 = vmul.f32 %v3152_v63, %v2751_v60 }
 0x110   :  { %v1698_v17 = vmul.f32 %v1696_v21, %v3152_v63  ;;  %v1704_v0 = vmul.f32 %v1696_v21, %v3172_v3  ;;  %v1714_v27 = vsub.f32 %v1710_v41, %v1712_v14  ;;  %v1697_v58 = vmul.f32 9.983946e-05, %v1695_v13 }
 0x111   :  { %v1711_v48 = vmul.f32 %v1695_v13, %v2864_v46  ;;  %v1735_v24 = vmul.f32 3.25, %v1695_v13  ;;  %v3211_v1 = vmul.f32 %v1752_v47, %v3141_v53  ;;  %v1758_v26 = vmul.f32 %v3172_v3, %v2755_v11 }
 0x112   :  { %1702 = vst [vmem:[#allocation5 + $0x3d0] sm:$0xff] %v1698_v17  ;;  %1708 = vst [vmem:[#allocation5 + $0x330] sm:$0xff] %v1704_v0  ;;  %v1716_v9 = vmul.f32 5.1058727e-05, %v1714_v27  ;;  %v1732_v56 = vmul.f32 %v1730_v8, %v1714_v27  ;;  %v1699_v44 = vmul.f32 %v1697_v58, %v3163_v23  ;;  %v1705_v6 = vmul.f32 %v1697_v58, %v3183_v19 }
 0x113   :  { %v1715_v32 = vsub.f32 %v1711_v48, %v1713_v62  ;;  %v1753_v46 = vmul.f32 11.0, %v2687_v12  ;;  %v3220_v59 = vsub.f32 %v1756_v39, %v1758_v26  ;;  %v1768_v40 = vmul.f32 6.572238e-05, %v3211_v1 }
 0x114   :  { %v1718_v2 = vmul.f32 %v1716_v9, %v3152_v63  ;;  %v1724_v35 = vmul.f32 %v1716_v9, %v3172_v3  ;;  %v1736_v30 = vsub.f32 %v1732_v56, %v1734_v43  ;;  %1703 = vst [vmem:[#allocation5 + $0x3d8] sm:$0xff] %v1699_v44  ;;  %1709 = vst [vmem:[#allocation5 + $0x338] sm:$0xff] %v1705_v6  ;;  %v1782_v33 = vmul.f32 13.0, %v2562_v10 }
 0x115   :  { %v1717_v53 = vmul.f32 5.1058727e-05, %v1715_v32  ;;  %v1733_v38 = vmul.f32 %v1731_v45, %v1715_v32  ;;  %v3224_v51 = vmul.f32 %v1753_v46, %v3161_v16  ;;  %v1757_v18 = vmul.f32 %v3163_v23, %v2914_v61 }
 0x116   :  { %1722 = vst [vmem:[#allocation5 + $0x4d0] sm:$0xff] %v1718_v2  ;;  %1728 = vst [vmem:[#allocation5 + $0x430] sm:$0xff] %v1724_v35  ;;  %v1738_v49 = vmul.f32 2.8852823e-05, %v1736_v30  ;;  %v1759_v4 = vmul.f32 %v3183_v19, %v2918_v31  ;;  %v1762_v5 = vmul.f32 %v3172_v3, %v2751_v60  ;;  %v1770_v16 = vmul.f32 %v1768_v40, %v3220_v59 }
 0x117   :  { %v1719_v15 = vmul.f32 %v1717_v53, %v3163_v23  ;;  %v1725_v54 = vmul.f32 %v1717_v53, %v3183_v19  ;;  %v1737_v7 = vsub.f32 %v1733_v38, %v1735_v24  ;;  %v1769_v37 = vmul.f32 6.572238e-05, %v3224_v51 }
 0x118   :  { %v1740_v36 = vmul.f32 %v1738_v49, %v3152_v63  ;;  %v1746_v50 = vmul.f32 %v1738_v49, %v3172_v3  ;;  %v3237_v25 = vsub.f32 %v1757_v18, %v1759_v4  ;;  %1774 = vst [vmem:[#allocation5 + $0x300] sm:$0xff] %v1770_v16  ;;  %v1764_v55 = vmul.f32 %v3152_v63, %v2755_v11 }
 0x119   :  { %1723 = vst [vmem:[#allocation5 + $0x4d8] sm:$0xff] %v1719_v15  ;;  %1729 = vst [vmem:[#allocation5 + $0x438] sm:$0xff] %v1725_v54  ;;  %v1739_v28 = vmul.f32 2.8852823e-05, %v1737_v7  ;;  %v1763_v34 = vmul.f32 %v3183_v19, %v2914_v61  ;;  %v1765_v20 = vmul.f32 %v3163_v23, %v2918_v31  ;;  %v1783_v52 = vmul.f32 13.0, %v2608_v57 }
 0x11a   :  { %1744 = vst [vmem:[#allocation5 + $0x5f0] sm:$0xff] %v1740_v36  ;;  %1750 = vst [vmem:[#allocation5 + $0x550] sm:$0xff] %v1746_v50  ;;  %v1771_v3 = vmul.f32 %v1769_v37, %v3237_v25  ;;  %v1800_v14 = vmul.f32 7.5, %v2562_v10  ;;  %v3252_v29 = vadd.f32 %v1764_v55, %v1762_v5  ;;  %v1784_v21 = vmul.f32 %v1782_v33, %v3211_v1 }
 0x11b   :  { %v1741_v62 = vmul.f32 %v1739_v28, %v3163_v23  ;;  %v1747_v63 = vmul.f32 %v1739_v28, %v3183_v19  ;;  %v3254_v42 = vadd.f32 %v1765_v20, %v1763_v34  ;;  %v1785_v41 = vmul.f32 %v1783_v52, %v3224_v51 }
 0x11c   :  { %1775 = vst [vmem:[#allocation5 + $0x308] sm:$0xff] %v1771_v3  ;;  %v1804_v13 = vmul.f32 6.5, %v3211_v1  ;;  %v1801_v8 = vmul.f32 7.5, %v2608_v57  ;;  %v1776_v43 = vmul.f32 %v1768_v40, %v3252_v29  ;;  %v1805_v19 = vmul.f32 6.5, %v3224_v51 }
 0x11d   :  { %1745 = vst [vmem:[#allocation5 + $0x5f8] sm:$0xff] %v1741_v62  ;;  %1751 = vst [vmem:[#allocation5 + $0x558] sm:$0xff] %v1747_v63  ;;  %v1777_v23 = vmul.f32 %v1769_v37, %v3254_v42  ;;  %v1822_v45 = vmul.f32 5.6666665, %v2562_v10  ;;  %v1786_v17 = vmul.f32 1.9580128e-05, %v1784_v21  ;;  %v1802_v27 = vmul.f32 %v1800_v14, %v1784_v21 }
 0x11e   :  { %v1787_v0 = vmul.f32 1.9580128e-05, %v1785_v41  ;;  %v1803_v47 = vmul.f32 %v1801_v8, %v1785_v41  ;;  %1780 = vst [vmem:[#allocation5 + $0x240] sm:$0xff] %v1776_v43  ;;  %v1826_v58 = vmul.f32 4.6666665, %v1784_v21  ;;  %v1848_v39 = vmul.f32 %v3220_v59, %v2751_v60 }
 0x11f   :  { %1781 = vst [vmem:[#allocation5 + $0x248] sm:$0xff] %v1777_v23  ;;  %v1823_v48 = vmul.f32 5.6666665, %v2608_v57  ;;  %v1827_v24 = vmul.f32 4.6666665, %v1785_v41  ;;  %v1788_v9 = vmul.f32 %v1786_v17, %v3220_v59  ;;  %v1794_v26 = vmul.f32 %v1786_v17, %v3252_v29 }
 0x120   :  { %v1789_v56 = vmul.f32 %v1787_v0, %v3237_v25  ;;  %v1795_v44 = vmul.f32 %v1787_v0, %v3254_v42  ;;  %v1806_v6 = vsub.f32 %v1802_v27, %v1804_v13  ;;  %v1807_v32 = vsub.f32 %v1803_v47, %v1805_v19 }
 0x121   :  { %v1844_v46 = vmul.f32 13.0, %v2583_v22  ;;  %v1850_v2 = vmul.f32 %v3252_v29, %v2755_v11  ;;  %1792 = vst [vmem:[#allocation5 + $0x3e0] sm:$0xff] %v1788_v9  ;;  %1798 = vst [vmem:[#allocation5 + $0x320] sm:$0xff] %v1794_v26  ;;  %v1845_v35 = vmul.f32 13.0, %v2687_v12  ;;  %v1849_v30 = vmul.f32 %v3237_v25, %v2914_v61 }
 0x122   :  { %1793 = vst [vmem:[#allocation5 + $0x3e8] sm:$0xff] %v1789_v56  ;;  %1799 = vst [vmem:[#allocation5 + $0x328] sm:$0xff] %v1795_v44  ;;  %v1851_v53 = vmul.f32 %v3254_v42, %v2918_v31  ;;  %v1854_v38 = vmul.f32 %v3252_v29, %v2751_v60  ;;  %v1808_v40 = vmul.f32 7.878532e-06, %v1806_v6  ;;  %v1809_v49 = vmul.f32 7.878532e-06, %v1807_v32 }
 0x123   :  { %v1824_v18 = vmul.f32 %v1822_v45, %v1806_v6  ;;  %v1825_v4 = vmul.f32 %v1823_v48, %v1807_v32  ;;  %v1846_v5 = vmul.f32 %v1844_v46, %v3211_v1  ;;  %v3282_v15 = vsub.f32 %v1848_v39, %v1850_v2 }
 0x124   :  { %v3285_v54 = vmul.f32 %v1845_v35, %v3224_v51  ;;  %v3287_v7 = vsub.f32 %v1849_v30, %v1851_v53  ;;  %v1810_v16 = vmul.f32 %v1808_v40, %v3220_v59  ;;  %v1811_v36 = vmul.f32 %v1809_v49, %v3237_v25 }
 0x125   :  { %v1816_v50 = vmul.f32 %v1808_v40, %v3252_v29  ;;  %v1817_v37 = vmul.f32 %v1809_v49, %v3254_v42  ;;  %v1828_v28 = vsub.f32 %v1824_v18, %v1826_v58  ;;  %v1829_v55 = vsub.f32 %v1825_v4, %v1827_v24 }
 0x126   :  { %v1860_v34 = vmul.f32 5.2330092e-06, %v1846_v5  ;;  %v1861_v1 = vmul.f32 5.2330092e-06, %v3285_v54  ;;  %1814 = vst [vmem:[#allocation5 + $0x4e0] sm:$0xff] %v1810_v16  ;;  %1815 = vst [vmem:[#allocation5 + $0x4e8] sm:$0xff] %v1811_v36  ;;  %v1856_v51 = vmul.f32 %v3220_v59, %v2755_v11  ;;  %v1855_v20 = vmul.f32 %v3254_v42, %v2914_v61 }
 0x127   :  { %1820 = vst [vmem:[#allocation5 + $0x420] sm:$0xff] %v1816_v50  ;;  %1821 = vst [vmem:[#allocation5 + $0x428] sm:$0xff] %v1817_v37  ;;  %v1857_v3 = vmul.f32 %v3237_v25, %v2918_v31  ;;  %v1874_v33 = vmul.f32 15.0, %v2562_v10  ;;  %v1830_v52 = vmul.f32 3.7248835e-06, %v1828_v28  ;;  %v1875_v8 = vmul.f32 15.0, %v2608_v57 }
 0x128   :  { %v1831_v14 = vmul.f32 3.7248835e-06, %v1829_v55  ;;  %v1862_v62 = vmul.f32 %v1860_v34, %v3282_v15  ;;  %v1863_v63 = vmul.f32 %v1861_v1, %v3287_v7  ;;  %v1858_v21 = vadd.f32 %v1856_v51, %v1854_v38 }
 0x129   :  { %v1859_v41 = vadd.f32 %v1857_v3, %v1855_v20  ;;  %v1876_v13 = vmul.f32 %v1874_v33, %v1846_v5  ;;  %v1832_v43 = vmul.f32 %v1830_v52, %v3220_v59  ;;  %v1838_v19 = vmul.f32 %v1830_v52, %v3252_v29 }
 0x12a   :  { %v1833_v23 = vmul.f32 %v1831_v14, %v3237_v25  ;;  %v1839_v45 = vmul.f32 %v1831_v14, %v3254_v42  ;;  %1866 = vst [vmem:[#allocation5 + $0x3f0] sm:$0xff] %v1862_v62  ;;  %1867 = vst [vmem:[#allocation5 + $0x3f8] sm:$0xff] %v1863_v63  ;;  %v1868_v17 = vmul.f32 %v1860_v34, %v1858_v21  ;;  %v1892_v58 = vmul.f32 8.5, %v2562_v10 }
 0x12b   :  { %v1869_v0 = vmul.f32 %v1861_v1, %v1859_v41  ;;  %v1878_v27 = vmul.f32 1.4384167e-06, %v1876_v13  ;;  %v1877_v47 = vmul.f32 %v1875_v8, %v3285_v54  ;;  %1836 = vst [vmem:[#allocation5 + $0x600] sm:$0xff] %v1832_v43  ;;  %1842 = vst [vmem:[#allocation5 + $0x540] sm:$0xff] %v1838_v19  ;;  %v1896_v59 = vmul.f32 7.5, %v1846_v5 }
 0x12c   :  { %1837 = vst [vmem:[#allocation5 + $0x608] sm:$0xff] %v1833_v23  ;;  %1843 = vst [vmem:[#allocation5 + $0x548] sm:$0xff] %v1839_v45  ;;  %v1893_v25 = vmul.f32 8.5, %v2608_v57  ;;  %v1897_v29 = vmul.f32 7.5, %v3285_v54  ;;  %v1914_v39 = vmul.f32 15.0, %v2583_v22  ;;  %v1894_v9 = vmul.f32 %v1892_v58, %v1876_v13 }
 0x12d   :  { %1872 = vst [vmem:[#allocation5 + $0x310] sm:$0xff] %v1868_v17  ;;  %1873 = vst [vmem:[#allocation5 + $0x318] sm:$0xff] %v1869_v0  ;;  %v1880_v42 = vmul.f32 %v1878_v27, %v3282_v15  ;;  %v1879_v48 = vmul.f32 1.4384167e-06, %v1877_v47  ;;  %v1886_v24 = vmul.f32 %v1878_v27, %v1858_v21  ;;  %v1918_v26 = vmul.f32 %v3282_v15, %v2751_v60 }
 0x12e   :  { %v1895_v56 = vmul.f32 %v1893_v25, %v1877_v47  ;;  %v1920_v44 = vmul.f32 %v1858_v21, %v2755_v11  ;;  %v1916_v46 = vmul.f32 %v1914_v39, %v1846_v5  ;;  %v1915_v2 = vmul.f32 15.0, %v2687_v12 }
 0x12f   :  { %1884 = vst [vmem:[#allocation5 + $0x4f0] sm:$0xff] %v1880_v42  ;;  %v1881_v6 = vmul.f32 %v1879_v48, %v3287_v7  ;;  %1890 = vst [vmem:[#allocation5 + $0x410] sm:$0xff] %v1886_v24  ;;  %v1887_v32 = vmul.f32 %v1879_v48, %v1859_v41  ;;  %v1898_v35 = vsub.f32 %v1894_v9, %v1896_v59  ;;  %v1944_v14 = vmul.f32 17.0, %v2562_v10 }
 0x130   :  { %v1899_v30 = vsub.f32 %v1895_v56, %v1897_v29  ;;  %v1922_v53 = vsub.f32 %v1918_v26, %v1920_v44  ;;  %v1919_v38 = vmul.f32 %v3287_v7, %v2914_v61  ;;  %v1930_v40 = vmul.f32 3.5960417e-07, %v1916_v46 }
 0x131   :  { %1885 = vst [vmem:[#allocation5 + $0x4f8] sm:$0xff] %v1881_v6  ;;  %1891 = vst [vmem:[#allocation5 + $0x418] sm:$0xff] %v1887_v32  ;;  %v1917_v49 = vmul.f32 %v1915_v2, %v3285_v54  ;;  %v1921_v18 = vmul.f32 %v1859_v41, %v2918_v31  ;;  %v1924_v4 = vmul.f32 %v1858_v21, %v2751_v60  ;;  %v1900_v16 = vmul.f32 5.3764063e-07, %v1898_v35 }
 0x132   :  { %v1901_v36 = vmul.f32 5.3764063e-07, %v1899_v30  ;;  %v1926_v5 = vmul.f32 %v3282_v15, %v2755_v11  ;;  %v1925_v50 = vmul.f32 %v1859_v41, %v2914_v61  ;;  %v1932_v37 = vmul.f32 %v1930_v40, %v1922_v53 }
 0x133   :  { %v1923_v28 = vsub.f32 %v1919_v38, %v1921_v18  ;;  %v1931_v55 = vmul.f32 3.5960417e-07, %v1917_v49  ;;  %v1927_v34 = vmul.f32 %v3287_v7, %v2918_v31  ;;  %v1902_v1 = vmul.f32 %v1900_v16, %v3282_v15 }
 0x134   :  { %v1903_v54 = vmul.f32 %v1901_v36, %v3287_v7  ;;  %v1908_v51 = vmul.f32 %v1900_v16, %v1858_v21  ;;  %v1909_v20 = vmul.f32 %v1901_v36, %v1859_v41  ;;  %1936 = vst [vmem:[#allocation5 + $0x500] sm:$0xff] %v1932_v37  ;;  %v1928_v33 = vadd.f32 %v1926_v5, %v1924_v4 }
 0x135   :  { %v1933_v3 = vmul.f32 %v1931_v55, %v1923_v28  ;;  %v1929_v52 = vadd.f32 %v1927_v34, %v1925_v50  ;;  %1906 = vst [vmem:[#allocation5 + $0x610] sm:$0xff] %v1902_v1  ;;  %v1945_v62 = vmul.f32 17.0, %v2608_v57  ;;  %v1962_v63 = vmul.f32 17.0, %v2583_v22 }
 0x136   :  { %1907 = vst [vmem:[#allocation5 + $0x618] sm:$0xff] %v1903_v54  ;;  %1912 = vst [vmem:[#allocation5 + $0x530] sm:$0xff] %v1908_v51  ;;  %v1966_v15 = vmul.f32 %v1922_v53, %v2751_v60  ;;  %v1963_v7 = vmul.f32 17.0, %v2687_v12  ;;  %v1938_v21 = vmul.f32 %v1930_v40, %v1928_v33  ;;  %v1946_v13 = vmul.f32 %v1944_v14, %v1916_v46 }
 0x137   :  { %1913 = vst [vmem:[#allocation5 + $0x538] sm:$0xff] %v1909_v20  ;;  %1937 = vst [vmem:[#allocation5 + $0x508] sm:$0xff] %v1933_v3  ;;  %v1939_v41 = vmul.f32 %v1931_v55, %v1929_v52  ;;  %v1968_v8 = vmul.f32 %v1928_v33, %v2755_v11  ;;  %v1947_v43 = vmul.f32 %v1945_v62, %v1917_v49 }
 0x138   :  { %v1964_v10 = vmul.f32 %v1962_v63, %v1916_v46  ;;  %v1965_v23 = vmul.f32 %v1963_v7, %v1917_v49  ;;  %v1967_v19 = vmul.f32 %v1923_v28, %v2914_v61  ;;  %1942 = vst [vmem:[#allocation5 + $0x400] sm:$0xff] %v1938_v21  ;;  %v1948_v57 = vmul.f32 9.22046e-08, %v1946_v13 }
 0x139   :  { %1943 = vst [vmem:[#allocation5 + $0x408] sm:$0xff] %v1939_v41  ;;  %v1970_v45 = vsub.f32 %v1966_v15, %v1968_v8  ;;  %v1969_v22 = vmul.f32 %v1929_v52, %v2918_v31  ;;  %v1972_v17 = vmul.f32 %v1928_v33, %v2751_v60  ;;  %v1949_v12 = vmul.f32 9.22046e-08, %v1947_v43 }
 0x13a   :  { %v1978_v0 = vmul.f32 2.1732834e-08, %v1964_v10  ;;  %v1979_v27 = vmul.f32 2.1732834e-08, %v1965_v23  ;;  %v1974_v47 = vmul.f32 %v1922_v53, %v2755_v11  ;;  %v1950_v58 = vmul.f32 %v1948_v57, %v1922_v53 }
 0x13b   :  { %v1956_v59 = vmul.f32 %v1948_v57, %v1928_v33  ;;  %v1971_v25 = vsub.f32 %v1967_v19, %v1969_v22  ;;  %v1973_v29 = vmul.f32 %v1929_v52, %v2914_v61  ;;  %v1951_v42 = vmul.f32 %v1949_v12, %v1923_v28 }
 0x13c   :  { %v1957_v48 = vmul.f32 %v1949_v12, %v1929_v52  ;;  %v1980_v24 = vmul.f32 %v1978_v0, %v1970_v45  ;;  %v1976_v39 = vadd.f32 %v1974_v47, %v1972_v17  ;;  %1954 = vst [vmem:[#allocation5 + $0x620] sm:$0xff] %v1950_v58  ;;  %v1975_v56 = vmul.f32 %v1923_v28, %v2918_v31 }
 0x13d   :  { %1960 = vst [vmem:[#allocation5 + $0x520] sm:$0xff] %v1956_v59  ;;  %v1981_v9 = vmul.f32 %v1979_v27, %v1971_v25  ;;  %1955 = vst [vmem:[#allocation5 + $0x628] sm:$0xff] %v1951_v42 }
 0x13e   :  { %1961 = vst [vmem:[#allocation5 + $0x528] sm:$0xff] %v1957_v48  ;;  %1984 = vst [vmem:[#allocation5 + $0x630] sm:$0xff] %v1980_v24  ;;  %v1986_v60 = vmul.f32 %v1978_v0, %v1976_v39  ;;  %v1977_v11 = vadd.f32 %v1975_v56, %v1973_v29 }
 0x13f   :  { %1985 = vst [vmem:[#allocation5 + $0x638] sm:$0xff] %v1981_v9 }
 0x140   :  { %1990 = vst [vmem:[#allocation5 + $0x510] sm:$0xff] %v1986_v60  ;;  %v1987_v26 = vmul.f32 %v1979_v27, %v1977_v11 }
 0x142   :  { %1991 = vst [vmem:[#allocation5 + $0x518] sm:$0xff] %v1987_v26 }
 0x143   :  { %2219 = shalt.err (!%p2216_p12)
}
 0x144   :  { %s2220_s24 = scalar_lea.hbm %s3359_s1, 25600 }
 0x145   :  { %p2221_p13 = scmp.ne.s32.totalorder %s3359_s1, %s2220_s24  ;;  %p2224_p0 = scmp.lt.u32.totalorder %s2220_s24, %s3359_s1 }
 0x147   :  { %p2226_p1 = pnand %p2224_p0, %p2221_p13 }
 0x149   :  { %2229 = shalt.err (!%p2226_p1)
}
 0x14a   :  { %2003 = dma.vmem_to_hbm [thread:$0]  %s1998_s20, 25600, %s3359_s1, [#allocation4], %s2235_s16, %s2235_s16, %s2236_s17  }
 0x14b   :  { %2232 = dma.done.wait [#allocation4], 25600  }
 0x14c   :  { %2233 = vsyncadd [#allocation4], 4294941696 }
 0x14d   :  { %2007 = vsyncpa [#allocation3], 1 }
 0x14e   :  { %2008 = vsyncpa [#allocation4], 1 }

</bundles_post_ra>
